<compile_context>
chip_gen: v7x
topology: tpu7x:2x2x1
jax: 0.10.0
libtpu: 0.0.40
codegen_flags: <defaults>
</compile_context>

<pallas_src>
import functools

import jax
import jax.numpy as jnp
import numpy as np
from jax import lax
from jax.experimental import pallas as pl
from jax.experimental.pallas import tpu as pltpu


def _round_up(x, m):
    return (x + m - 1) // m * m


def _mf_fused_kernel(
    utab_ref, itab_ref,            # (3, U_pad, d_pad) / (3, I_pad, d_pad) bf16 chunk tables
    uid_ref, pid_ref, nid_ref,     # (TB, 1) int32 index tiles
    ps_ref, ns_ref,                # (TB, 1) f32 score tiles
    u_out, p_out, n_out,           # (TB, d_pad) f32 gathered-embedding outputs
    reg_ref, loss_ref,             # (1, 1) scalar outputs
    acc_sq, acc_err,               # (1, d_pad) / (1, 1) f32 scratch accumulators
    *, inv_b, compute_loss,
):
    t = pl.program_id(0)
    nt = pl.num_programs(0)
    tb, d_pad = u_out.shape

    @pl.when(t == 0)
    def _init():
        acc_sq[...] = jnp.zeros_like(acc_sq)
        acc_err[...] = jnp.zeros_like(acc_err)

    def gather(tab3_ref, idx_col):
        # Exact row gather of f32 rows stored as three bf16 chunks:
        # one-hot entries (0.0 / 1.0) are exact in bf16, each bf16 matmul
        # accumulates in f32, and hi + mid + lo reconstructs the f32 row.
        rows = tab3_ref.shape[1]
        onehot = idx_col == lax.broadcasted_iota(jnp.int32, (tb, rows), 1)
        onehot = onehot.astype(jnp.float32).astype(jnp.bfloat16)
        out = jnp.dot(onehot, tab3_ref[0], preferred_element_type=jnp.float32)
        out = out + jnp.dot(onehot, tab3_ref[1], preferred_element_type=jnp.float32)
        out = out + jnp.dot(onehot, tab3_ref[2], preferred_element_type=jnp.float32)
        return out

    uf = gather(utab_ref, uid_ref[...])
    pf = gather(itab_ref, pid_ref[...])
    nf = gather(itab_ref, nid_ref[...])

    # Lane-dense (TB, d_pad) embedding outputs (written once, never re-read).
    u_out[...] = uf
    p_out[...] = pf
    n_out[...] = nf

    # Regularizer pieces: fold the (TB, d_pad) squares into a (1, d_pad)
    # running sum (scratch size independent of the batch tile).
    sq = uf * uf + pf * pf + nf * nf
    acc_sq[...] += jnp.sum(sq, axis=0, keepdims=True)

    if compute_loss:
        pos_pred = jnp.sum(uf * pf, axis=1, keepdims=True)   # (TB, 1)
        neg_pred = jnp.sum(uf * nf, axis=1, keepdims=True)   # (TB, 1)
        dp = pos_pred - ps_ref[...]
        dn = neg_pred - ns_ref[...]
        acc_err[...] += jnp.sum(dp * dp + dn * dn, axis=0, keepdims=True)

    @pl.when(t == nt - 1)
    def _finalize():
        # reg = (sum of all squared entries over the 3 groups) / B
        reg_ref[...] = jnp.sum(acc_sq[...], axis=1, keepdims=True) * inv_b
        if compute_loss:
            # rating_loss = MSE(pos) + MSE(neg) = (sum_pos + sum_neg) / B
            loss_ref[...] = acc_err[...] * inv_b
        else:
            loss_ref[...] = jnp.zeros_like(loss_ref)


def _split_bf16x3(tab_f32):
    """Exact f32 == hi + mid + lo split into three bf16 chunks, stacked on axis 0."""
    hi = tab_f32.astype(jnp.bfloat16)
    r1 = tab_f32 - hi.astype(jnp.float32)
    mid = r1.astype(jnp.bfloat16)
    r2 = r1 - mid.astype(jnp.float32)
    lo = r2.astype(jnp.bfloat16)
    return jnp.stack([hi, mid, lo], axis=0)


def _vmem_capacity_bytes():
    try:
        cap = int(getattr(pltpu.get_tpu_info(), "vmem_capacity_bytes", 0))
        if cap > 0:
            return cap
    except Exception:
        pass
    return 64 * 1024 * 1024   # conservative default (v7x per-core VMEM)


def _mf_forward_xla(user_table, item_table, user_idx, pos_idx, neg_idx,
                    pos_scores, neg_scores):
    """Plain-XLA forward (also used as the correctness reference)."""
    u = jnp.take(user_table, jnp.asarray(user_idx, jnp.int32), axis=0)
    p = jnp.take(item_table, jnp.asarray(pos_idx, jnp.int32), axis=0)
    n = jnp.take(item_table, jnp.asarray(neg_idx, jnp.int32), axis=0)
    reg = (jnp.mean(jnp.sum(u * u, axis=1)) + jnp.mean(jnp.sum(p * p, axis=1))
           + jnp.mean(jnp.sum(n * n, axis=1)))
    rating_loss = None
    if pos_scores is not None and neg_scores is not None:
        pos_pred = jnp.sum(u * p, axis=1)
        neg_pred = jnp.sum(u * n, axis=1)
        rating_loss = (jnp.mean((pos_pred - jnp.asarray(pos_scores, jnp.float32)) ** 2)
                       + jnp.mean((neg_pred - jnp.asarray(neg_scores, jnp.float32)) ** 2))
    return u, p, n, reg, rating_loss


def mf_forward(user_table, item_table, user_idx, pos_idx, neg_idx,
               pos_scores=None, neg_scores=None, *, max_tile_rows=2048):
    """Pallas implementation of MF.forward(user_list, pos_item_list,
    neg_item_list, pos_scores, neg_scores)."""
    user_table = jnp.asarray(user_table, jnp.float32)
    item_table = jnp.asarray(item_table, jnp.float32)
    n_users, dim = user_table.shape
    n_items = item_table.shape[0]
    b = int(user_idx.shape[0])
    have_scores = (pos_scores is not None) and (neg_scores is not None)

    d_pad = _round_up(dim, 128)
    # One extra all-zero sentinel row per table: padded batch rows gather it
    # and therefore contribute exactly 0 to both accumulators.
    u_rows = _round_up(n_users + 1, 8)
    i_rows = _round_up(n_items + 1, 8)

    # ---- VMEM budget -> tile size (and explicit vmem_limit_bytes). ----
    vmem_cap = _vmem_capacity_bytes()
    vmem_limit = (vmem_cap * 3) // 4                        # headroom below physical
    budget = vmem_limit // 2                                # conservative share
    table_bytes = 2 * 3 * (u_rows + i_rows) * d_pad * 2     # bf16 chunks, 2 buffers
    fixed_bytes = table_bytes + 8 * d_pad * 4 + (1 << 16)   # scratch + slack
    # Per batch row: 3 double-buffered (row, d_pad) f32 output tiles plus five
    # (row, 1) int32/f32 tiles (lane-padded to 128 lanes in VMEM).
    per_row = 2 * (3 * d_pad * 4 + 5 * 512)
    tb_budget = (budget - fixed_bytes) // per_row

    if tb_budget < 8:
        # TODO(synk): embedding tables too large to keep resident in VMEM; fall
        # back to a plain XLA gather + reduction for that regime.
        return _mf_forward_xla(user_table, item_table, user_idx, pos_idx,
                               neg_idx, pos_scores, neg_scores)

    b8 = _round_up(b, 8)
    tb = min(int(max_tile_rows), int(tb_budget) // 8 * 8, b8)
    tb = max(8, tb)
    n_tiles = -(-b8 // tb)
    tb = _round_up(-(-b // n_tiles), 8)    # rebalance tiles to minimize padding
    b_pad = n_tiles * tb

    # ---- Padded / packed operands. ----
    utab3 = _split_bf16x3(jnp.pad(user_table,
                                  ((0, u_rows - n_users), (0, d_pad - dim))))
    itab3 = _split_bf16x3(jnp.pad(item_table,
                                  ((0, i_rows - n_items), (0, d_pad - dim))))

    def _pad_idx(idx, sentinel):
        idx = jnp.asarray(idx, jnp.int32).reshape(-1)
        if b_pad != b:
            idx = jnp.concatenate(
                [idx, jnp.full((b_pad - b,), sentinel, jnp.int32)])
        return idx.reshape(b_pad, 1)

    def _pad_col(x):
        x = (jnp.asarray(x, jnp.float32) if x is not None
             else jnp.zeros((b,), jnp.float32)).reshape(-1)
        if b_pad != b:
            x = jnp.concatenate([x, jnp.zeros((b_pad - b,), jnp.float32)])
        return x.reshape(b_pad, 1)

    uid = _pad_idx(user_idx, n_users)   # sentinel -> all-zero padded table row
    pid = _pad_idx(pos_idx, n_items)
    nid = _pad_idx(neg_idx, n_items)
    ps = _pad_col(pos_scores)
    ns = _pad_col(neg_scores)

    emb_out = pl.BlockSpec((tb, d_pad), lambda t: (t, 0))
    col_in = pl.BlockSpec((tb, 1), lambda t: (t, 0))
    scalar_out = pl.BlockSpec((1, 1), lambda t: (0, 0))

    grid_spec = pltpu.PrefetchScalarGridSpec(
        num_scalar_prefetch=0,
        grid=(n_tiles,),
        in_specs=[
            pl.BlockSpec((3, u_rows, d_pad), lambda t: (0, 0, 0)),  # user table (resident)
            pl.BlockSpec((3, i_rows, d_pad), lambda t: (0, 0, 0)),  # item table (resident)
            col_in, col_in, col_in,      # uid / pid / nid
            col_in, col_in,              # pos / neg scores
        ],
        out_specs=[emb_out, emb_out, emb_out, scalar_out, scalar_out],
        scratch_shapes=[
            pltpu.VMEM((1, d_pad), jnp.float32),   # squared-norm running sum
            pltpu.VMEM((1, 1), jnp.float32),       # squared-error running sum
        ],
    )

    out_shape = (
        jax.ShapeDtypeStruct((b_pad, d_pad), jnp.float32),
        jax.ShapeDtypeStruct((b_pad, d_pad), jnp.float32),
        jax.ShapeDtypeStruct((b_pad, d_pad), jnp.float32),
        jax.ShapeDtypeStruct((1, 1), jnp.float32),
        jax.ShapeDtypeStruct((1, 1), jnp.float32),
    )

    u_full, p_full, n_full, reg, loss = pl.pallas_call(
        functools.partial(_mf_fused_kernel, inv_b=1.0 / b,
                          compute_loss=have_scores),
        grid_spec=grid_spec,
        out_shape=out_shape,
        compiler_params=pltpu.CompilerParams(
            dimension_semantics=("arbitrary",),   # sequential reduction over tiles
            vmem_limit_bytes=int(vmem_limit),
        ),
    )(utab3, itab3, uid, pid, nid, ps, ns)

    u = u_full[:b, :dim]
    p = p_full[:b, :dim]
    n = n_full[:b, :dim]
    rating_loss = loss[0, 0] if have_scores else None
    return u, p, n, reg[0, 0], rating_loss


if __name__ == "__main__":
    # config = {'n_users': 64, 'n_items': 96, 'dim': 128}
    n_users, n_items, dim, batch = 64, 96, 128, 300   # batch not a tile multiple

    key = jax.random.PRNGKey(0)
    k_u, k_i, k_uid, k_pid, k_nid, k_ps, k_ns = jax.random.split(key, 7)

    # normal_(std=0.1) init, as in the module's __init__.
    user_table = 0.1 * jax.random.normal(k_u, (n_users, dim), jnp.float32)
    item_table = 0.1 * jax.random.normal(k_i, (n_items, dim), jnp.float32)

    user_idx = jax.random.randint(k_uid, (batch,), 0, n_users, jnp.int32)
    pos_idx = jax.random.randint(k_pid, (batch,), 0, n_items, jnp.int32)
    neg_idx = jax.random.randint(k_nid, (batch,), 0, n_items, jnp.int32)
    pos_scores = jax.random.uniform(k_ps, (batch,), jnp.float32)
    neg_scores = jax.random.uniform(k_ns, (batch,), jnp.float32)

    outs = mf_forward(user_table, item_table, user_idx, pos_idx, neg_idx,
                      pos_scores, neg_scores)
    outs = jax.block_until_ready(outs)

    refs = _mf_forward_xla(user_table, item_table, user_idx, pos_idx, neg_idx,
                           pos_scores, neg_scores)
    for got, want in zip(outs, refs):
        np.testing.assert_allclose(np.asarray(got), np.asarray(want),
                                   rtol=1e-5, atol=1e-5)

    # Optional-scores path: rating_loss must be None, embeddings/reg unchanged.
    u2, p2, n2, reg2, rl2 = jax.block_until_ready(
        mf_forward(user_table, item_table, user_idx, pos_idx, neg_idx))
    assert rl2 is None
    np.testing.assert_allclose(np.asarray(reg2), np.asarray(refs[3]),
                               rtol=1e-5, atol=1e-5)
    np.testing.assert_allclose(np.asarray(u2), np.asarray(refs[0]),
                               rtol=1e-5, atol=1e-5)

    print("KERNEL_OK")
</pallas_src>

<mosaic_0001>
module attributes {stable_mosaic.version = 11 : i64} {
  func.func @_mf_fused_kernel(%arg0: i32, %arg1: memref<3x72x128xbf16, #tpu.memory_space<vmem>>, %arg2: memref<3x104x128xbf16, #tpu.memory_space<vmem>>, %arg3: memref<304x1xi32, #tpu.memory_space<vmem>>, %arg4: memref<304x1xi32, #tpu.memory_space<vmem>>, %arg5: memref<304x1xi32, #tpu.memory_space<vmem>>, %arg6: memref<304x1xf32, #tpu.memory_space<vmem>>, %arg7: memref<304x1xf32, #tpu.memory_space<vmem>>, %arg8: memref<304x128xf32, #tpu.memory_space<vmem>>, %arg9: memref<304x128xf32, #tpu.memory_space<vmem>>, %arg10: memref<304x128xf32, #tpu.memory_space<vmem>>, %arg11: memref<1x1xf32, #tpu.memory_space<vmem>>, %arg12: memref<1x1xf32, #tpu.memory_space<vmem>>, %arg13: memref<1x128xf32, #tpu.memory_space<vmem>>, %arg14: memref<1x1xf32, #tpu.memory_space<vmem>>) attributes {dimension_semantics = [#tpu.dimension_semantics<arbitrary>], iteration_bounds = array<i64: 1>, scalar_prefetch = 0 : i64, scratch_operands = 2 : i64, tpu.core_type = #tpu.core_type<tc>, window_params = [{pipeline_mode = #tpu.pipeline_mode<synchronous>, transform_indices = @transform_0, window_bounds = array<i64: 3, 72, 128>}, {pipeline_mode = #tpu.pipeline_mode<synchronous>, transform_indices = @transform_1, window_bounds = array<i64: 3, 104, 128>}, {transform_indices = @transform_2, window_bounds = array<i64: 304, 1>}, {transform_indices = @transform_3, window_bounds = array<i64: 304, 1>}, {transform_indices = @transform_4, window_bounds = array<i64: 304, 1>}, {transform_indices = @transform_5, window_bounds = array<i64: 304, 1>}, {transform_indices = @transform_6, window_bounds = array<i64: 304, 1>}, {transform_indices = @transform_7, window_bounds = array<i64: 304, 128>}, {transform_indices = @transform_8, window_bounds = array<i64: 304, 128>}, {transform_indices = @transform_9, window_bounds = array<i64: 304, 128>}, {pipeline_mode = #tpu.pipeline_mode<synchronous>, transform_indices = @transform_10, window_bounds = array<i64: 1, 1>}, {pipeline_mode = #tpu.pipeline_mode<synchronous>, transform_indices = @transform_11, window_bounds = array<i64: 1, 1>}]} {
    %c0_i32 = arith.constant 0 : i32
    %0 = arith.cmpi eq, %arg0, %c0_i32 : i32
    %1 = arith.extui %0 : i1 to i32
    %c0_i32_0 = arith.constant 0 : i32
    %2 = arith.cmpi ne, %1, %c0_i32_0 : i32
    scf.if %2 {
      %cst_63 = arith.constant 0.000000e+00 : f32
      %91 = vector.broadcast %cst_63 : f32 to vector<1x128xf32>
      %c0_64 = arith.constant 0 : index
      %c0_65 = arith.constant 0 : index
      %92 = vector.load %arg13[%c0_64, %c0_65] : memref<1x128xf32, #tpu.memory_space<vmem>>, vector<1x128xf32>
      tpu.vector_store %arg13[%c0_64, %c0_65], %91 {strides = array<i32>} : memref<1x128xf32, #tpu.memory_space<vmem>>, vector<1x128xf32>,
      %cst_66 = arith.constant 0.000000e+00 : f32
      %93 = vector.broadcast %cst_66 : f32 to vector<1x1xf32>
      %c0_67 = arith.constant 0 : index
      %c0_68 = arith.constant 0 : index
      %94 = vector.load %arg14[%c0_67, %c0_68] : memref<1x1xf32, #tpu.memory_space<vmem>>, vector<1x1xf32>
      tpu.vector_store %arg14[%c0_67, %c0_68], %93 {strides = array<i32>} : memref<1x1xf32, #tpu.memory_space<vmem>>, vector<1x1xf32>,
    } else {
    }
    %c0 = arith.constant 0 : index
    %c0_1 = arith.constant 0 : index
    %3 = vector.load %arg3[%c0, %c0_1] : memref<304x1xi32, #tpu.memory_space<vmem>>, vector<304x1xi32>
    %4 = tpu.iota {dimensions = array<i32: 1>} : vector<304x72xi32>
    %5 = vector.broadcast %3 : vector<304x1xi32> to vector<304x72xi32>
    %6 = arith.cmpi eq, %5, %4 : vector<304x72xi32>
    %7 = arith.extui %6 : vector<304x72xi1> to vector<304x72xi32>
    %8 = arith.sitofp %7 : vector<304x72xi32> to vector<304x72xf32>
    %9 = arith.truncf %8 : vector<304x72xf32> to vector<304x72xbf16>
    %c0_2 = arith.constant 0 : index
    %c0_3 = arith.constant 0 : index
    %c0_4 = arith.constant 0 : index
    %10 = vector.load %arg1[%c0_2, %c0_3, %c0_4] : memref<3x72x128xbf16, #tpu.memory_space<vmem>>, vector<1x72x128xbf16>
    %11 = vector.shape_cast %10 : vector<1x72x128xbf16> to vector<72x128xbf16>
    %cst = arith.constant dense<0.000000e+00> : vector<304x128xf32>
    %12 = tpu.matmul %9, %11, %cst {dimension_numbers = #tpu.dot_dimension_numbers<[1], [0], [0], [1], [0, 0, 1, 1], [], []>} : vector<304x72xbf16>, vector<72x128xbf16>, vector<304x128xf32> -> vector<304x128xf32>
    %c1 = arith.constant 1 : index
    %c0_5 = arith.constant 0 : index
    %c0_6 = arith.constant 0 : index
    %13 = vector.load %arg1[%c1, %c0_5, %c0_6] : memref<3x72x128xbf16, #tpu.memory_space<vmem>>, vector<1x72x128xbf16>
    %14 = vector.shape_cast %13 : vector<1x72x128xbf16> to vector<72x128xbf16>
    %cst_7 = arith.constant dense<0.000000e+00> : vector<304x128xf32>
    %15 = tpu.matmul %9, %14, %cst_7 {dimension_numbers = #tpu.dot_dimension_numbers<[1], [0], [0], [1], [0, 0, 1, 1], [], []>} : vector<304x72xbf16>, vector<72x128xbf16>, vector<304x128xf32> -> vector<304x128xf32>
    %16 = arith.addf %12, %15 : vector<304x128xf32>
    %c2 = arith.constant 2 : index
    %c0_8 = arith.constant 0 : index
    %c0_9 = arith.constant 0 : index
    %17 = vector.load %arg1[%c2, %c0_8, %c0_9] : memref<3x72x128xbf16, #tpu.memory_space<vmem>>, vector<1x72x128xbf16>
    %18 = vector.shape_cast %17 : vector<1x72x128xbf16> to vector<72x128xbf16>
    %cst_10 = arith.constant dense<0.000000e+00> : vector<304x128xf32>
    %19 = tpu.matmul %9, %18, %cst_10 {dimension_numbers = #tpu.dot_dimension_numbers<[1], [0], [0], [1], [0, 0, 1, 1], [], []>} : vector<304x72xbf16>, vector<72x128xbf16>, vector<304x128xf32> -> vector<304x128xf32>
    %20 = arith.addf %16, %19 : vector<304x128xf32>
    %c0_11 = arith.constant 0 : index
    %c0_12 = arith.constant 0 : index
    %21 = vector.load %arg4[%c0_11, %c0_12] : memref<304x1xi32, #tpu.memory_space<vmem>>, vector<304x1xi32>
    %22 = tpu.iota {dimensions = array<i32: 1>} : vector<304x104xi32>
    %23 = vector.broadcast %21 : vector<304x1xi32> to vector<304x104xi32>
    %24 = arith.cmpi eq, %23, %22 : vector<304x104xi32>
    %25 = arith.extui %24 : vector<304x104xi1> to vector<304x104xi32>
    %26 = arith.sitofp %25 : vector<304x104xi32> to vector<304x104xf32>
    %27 = arith.truncf %26 : vector<304x104xf32> to vector<304x104xbf16>
    %c0_13 = arith.constant 0 : index
    %c0_14 = arith.constant 0 : index
    %c0_15 = arith.constant 0 : index
    %28 = vector.load %arg2[%c0_13, %c0_14, %c0_15] : memref<3x104x128xbf16, #tpu.memory_space<vmem>>, vector<1x104x128xbf16>
    %29 = vector.shape_cast %28 : vector<1x104x128xbf16> to vector<104x128xbf16>
    %cst_16 = arith.constant dense<0.000000e+00> : vector<304x128xf32>
    %30 = tpu.matmul %27, %29, %cst_16 {dimension_numbers = #tpu.dot_dimension_numbers<[1], [0], [0], [1], [0, 0, 1, 1], [], []>} : vector<304x104xbf16>, vector<104x128xbf16>, vector<304x128xf32> -> vector<304x128xf32>
    %c1_17 = arith.constant 1 : index
    %c0_18 = arith.constant 0 : index
    %c0_19 = arith.constant 0 : index
    %31 = vector.load %arg2[%c1_17, %c0_18, %c0_19] : memref<3x104x128xbf16, #tpu.memory_space<vmem>>, vector<1x104x128xbf16>
    %32 = vector.shape_cast %31 : vector<1x104x128xbf16> to vector<104x128xbf16>
    %cst_20 = arith.constant dense<0.000000e+00> : vector<304x128xf32>
    %33 = tpu.matmul %27, %32, %cst_20 {dimension_numbers = #tpu.dot_dimension_numbers<[1], [0], [0], [1], [0, 0, 1, 1], [], []>} : vector<304x104xbf16>, vector<104x128xbf16>, vector<304x128xf32> -> vector<304x128xf32>
    %34 = arith.addf %30, %33 : vector<304x128xf32>
    %c2_21 = arith.constant 2 : index
    %c0_22 = arith.constant 0 : index
    %c0_23 = arith.constant 0 : index
    %35 = vector.load %arg2[%c2_21, %c0_22, %c0_23] : memref<3x104x128xbf16, #tpu.memory_space<vmem>>, vector<1x104x128xbf16>
    %36 = vector.shape_cast %35 : vector<1x104x128xbf16> to vector<104x128xbf16>
    %cst_24 = arith.constant dense<0.000000e+00> : vector<304x128xf32>
    %37 = tpu.matmul %27, %36, %cst_24 {dimension_numbers = #tpu.dot_dimension_numbers<[1], [0], [0], [1], [0, 0, 1, 1], [], []>} : vector<304x104xbf16>, vector<104x128xbf16>, vector<304x128xf32> -> vector<304x128xf32>
    %38 = arith.addf %34, %37 : vector<304x128xf32>
    %c0_25 = arith.constant 0 : index
    %c0_26 = arith.constant 0 : index
    %39 = vector.load %arg5[%c0_25, %c0_26] : memref<304x1xi32, #tpu.memory_space<vmem>>, vector<304x1xi32>
    %40 = tpu.iota {dimensions = array<i32: 1>} : vector<304x104xi32>
    %41 = vector.broadcast %39 : vector<304x1xi32> to vector<304x104xi32>
    %42 = arith.cmpi eq, %41, %40 : vector<304x104xi32>
    %43 = arith.extui %42 : vector<304x104xi1> to vector<304x104xi32>
    %44 = arith.sitofp %43 : vector<304x104xi32> to vector<304x104xf32>
    %45 = arith.truncf %44 : vector<304x104xf32> to vector<304x104xbf16>
    %c0_27 = arith.constant 0 : index
    %c0_28 = arith.constant 0 : index
    %c0_29 = arith.constant 0 : index
    %46 = vector.load %arg2[%c0_27, %c0_28, %c0_29] : memref<3x104x128xbf16, #tpu.memory_space<vmem>>, vector<1x104x128xbf16>
    %47 = vector.shape_cast %46 : vector<1x104x128xbf16> to vector<104x128xbf16>
    %cst_30 = arith.constant dense<0.000000e+00> : vector<304x128xf32>
    %48 = tpu.matmul %45, %47, %cst_30 {dimension_numbers = #tpu.dot_dimension_numbers<[1], [0], [0], [1], [0, 0, 1, 1], [], []>} : vector<304x104xbf16>, vector<104x128xbf16>, vector<304x128xf32> -> vector<304x128xf32>
    %c1_31 = arith.constant 1 : index
    %c0_32 = arith.constant 0 : index
    %c0_33 = arith.constant 0 : index
    %49 = vector.load %arg2[%c1_31, %c0_32, %c0_33] : memref<3x104x128xbf16, #tpu.memory_space<vmem>>, vector<1x104x128xbf16>
    %50 = vector.shape_cast %49 : vector<1x104x128xbf16> to vector<104x128xbf16>
    %cst_34 = arith.constant dense<0.000000e+00> : vector<304x128xf32>
    %51 = tpu.matmul %45, %50, %cst_34 {dimension_numbers = #tpu.dot_dimension_numbers<[1], [0], [0], [1], [0, 0, 1, 1], [], []>} : vector<304x104xbf16>, vector<104x128xbf16>, vector<304x128xf32> -> vector<304x128xf32>
    %52 = arith.addf %48, %51 : vector<304x128xf32>
    %c2_35 = arith.constant 2 : index
    %c0_36 = arith.constant 0 : index
    %c0_37 = arith.constant 0 : index
    %53 = vector.load %arg2[%c2_35, %c0_36, %c0_37] : memref<3x104x128xbf16, #tpu.memory_space<vmem>>, vector<1x104x128xbf16>
    %54 = vector.shape_cast %53 : vector<1x104x128xbf16> to vector<104x128xbf16>
    %cst_38 = arith.constant dense<0.000000e+00> : vector<304x128xf32>
    %55 = tpu.matmul %45, %54, %cst_38 {dimension_numbers = #tpu.dot_dimension_numbers<[1], [0], [0], [1], [0, 0, 1, 1], [], []>} : vector<304x104xbf16>, vector<104x128xbf16>, vector<304x128xf32> -> vector<304x128xf32>
    %56 = arith.addf %52, %55 : vector<304x128xf32>
    %c0_39 = arith.constant 0 : index
    %c0_40 = arith.constant 0 : index
    %57 = vector.load %arg8[%c0_39, %c0_40] : memref<304x128xf32, #tpu.memory_space<vmem>>, vector<304x128xf32>
    tpu.vector_store %arg8[%c0_39, %c0_40], %20 {strides = array<i32>} : memref<304x128xf32, #tpu.memory_space<vmem>>, vector<304x128xf32>,
    %c0_41 = arith.constant 0 : index
    %c0_42 = arith.constant 0 : index
    %58 = vector.load %arg9[%c0_41, %c0_42] : memref<304x128xf32, #tpu.memory_space<vmem>>, vector<304x128xf32>
    tpu.vector_store %arg9[%c0_41, %c0_42], %38 {strides = array<i32>} : memref<304x128xf32, #tpu.memory_space<vmem>>, vector<304x128xf32>,
    %c0_43 = arith.constant 0 : index
    %c0_44 = arith.constant 0 : index
    %59 = vector.load %arg10[%c0_43, %c0_44] : memref<304x128xf32, #tpu.memory_space<vmem>>, vector<304x128xf32>
    tpu.vector_store %arg10[%c0_43, %c0_44], %56 {strides = array<i32>} : memref<304x128xf32, #tpu.memory_space<vmem>>, vector<304x128xf32>,
    %60 = arith.mulf %20, %20 : vector<304x128xf32>
    %61 = arith.mulf %38, %38 : vector<304x128xf32>
    %62 = arith.addf %60, %61 : vector<304x128xf32>
    %63 = arith.mulf %56, %56 : vector<304x128xf32>
    %64 = arith.addf %62, %63 : vector<304x128xf32>
    %c0_45 = arith.constant 0 : index
    %c0_46 = arith.constant 0 : index
    %65 = vector.load %arg13[%c0_45, %c0_46] : memref<1x128xf32, #tpu.memory_space<vmem>>, vector<1x128xf32>
    %cst_47 = arith.constant dense<0.000000e+00> : vector<128xf32>
    %66 = vector.multi_reduction <add>, %64, %cst_47 [0] : vector<304x128xf32> to vector<128xf32>
    %67 = vector.shape_cast %66 : vector<128xf32> to vector<1x128xf32>
    %68 = arith.addf %65, %67 : vector<1x128xf32>
    %c0_48 = arith.constant 0 : index
    %c0_49 = arith.constant 0 : index
    %69 = vector.load %arg13[%c0_48, %c0_49] : memref<1x128xf32, #tpu.memory_space<vmem>>, vector<1x128xf32>
    tpu.vector_store %arg13[%c0_48, %c0_49], %68 {strides = array<i32>} : memref<1x128xf32, #tpu.memory_space<vmem>>, vector<1x128xf32>,
    %70 = arith.mulf %20, %38 : vector<304x128xf32>
    %cst_50 = arith.constant dense<0.000000e+00> : vector<304xf32>
    %71 = vector.multi_reduction <add>, %70, %cst_50 [1] : vector<304x128xf32> to vector<304xf32>
    %72 = vector.shape_cast %71 : vector<304xf32> to vector<304x1xf32>
    %73 = arith.mulf %20, %56 : vector<304x128xf32>
    %cst_51 = arith.constant dense<0.000000e+00> : vector<304xf32>
    %74 = vector.multi_reduction <add>, %73, %cst_51 [1] : vector<304x128xf32> to vector<304xf32>
    %75 = vector.shape_cast %74 : vector<304xf32> to vector<304x1xf32>
    %c0_52 = arith.constant 0 : index
    %c0_53 = arith.constant 0 : index
    %76 = vector.load %arg6[%c0_52, %c0_53] : memref<304x1xf32, #tpu.memory_space<vmem>>, vector<304x1xf32>
    %77 = arith.subf %72, %76 : vector<304x1xf32>
    %c0_54 = arith.constant 0 : index
    %c0_55 = arith.constant 0 : index
    %78 = vector.load %arg7[%c0_54, %c0_55] : memref<304x1xf32, #tpu.memory_space<vmem>>, vector<304x1xf32>
    %79 = arith.subf %75, %78 : vector<304x1xf32>
    %c0_56 = arith.constant 0 : index
    %c0_57 = arith.constant 0 : index
    %80 = vector.load %arg14[%c0_56, %c0_57] : memref<1x1xf32, #tpu.memory_space<vmem>>, vector<1x1xf32>
    %81 = arith.mulf %77, %77 : vector<304x1xf32>
    %82 = arith.mulf %79, %79 : vector<304x1xf32>
    %83 = arith.addf %81, %82 : vector<304x1xf32>
    %cst_58 = arith.constant dense<0.000000e+00> : vector<1xf32>
    %84 = vector.multi_reduction <add>, %83, %cst_58 [0] : vector<304x1xf32> to vector<1xf32>
    %85 = vector.shape_cast %84 : vector<1xf32> to vector<1x1xf32>
    %86 = arith.addf %80, %85 : vector<1x1xf32>
    %c0_59 = arith.constant 0 : index
    %c0_60 = arith.constant 0 : index
    %87 = vector.load %arg14[%c0_59, %c0_60] : memref<1x1xf32, #tpu.memory_space<vmem>>, vector<1x1xf32>
    tpu.vector_store %arg14[%c0_59, %c0_60], %86 {strides = array<i32>} : memref<1x1xf32, #tpu.memory_space<vmem>>, vector<1x1xf32>,
    %c0_i32_61 = arith.constant 0 : i32
    %88 = arith.cmpi eq, %arg0, %c0_i32_61 : i32
    %89 = arith.extui %88 : i1 to i32
    %c0_i32_62 = arith.constant 0 : i32
    %90 = arith.cmpi ne, %89, %c0_i32_62 : i32
    scf.if %90 {
      %c0_63 = arith.constant 0 : index
      %c0_64 = arith.constant 0 : index
      %91 = vector.load %arg13[%c0_63, %c0_64] : memref<1x128xf32, #tpu.memory_space<vmem>>, vector<1x128xf32>
      %cst_65 = arith.constant dense<0.000000e+00> : vector<1xf32>
      %92 = vector.multi_reduction <add>, %91, %cst_65 [1] : vector<1x128xf32> to vector<1xf32>
      %93 = vector.shape_cast %92 : vector<1xf32> to vector<1x1xf32>
      %cst_66 = arith.constant 0.00333333341 : f32
      %94 = vector.broadcast %cst_66 : f32 to vector<1x1xf32>
      %95 = arith.mulf %93, %94 : vector<1x1xf32>
      %c0_67 = arith.constant 0 : index
      %c0_68 = arith.constant 0 : index
      %96 = vector.load %arg11[%c0_67, %c0_68] : memref<1x1xf32, #tpu.memory_space<vmem>>, vector<1x1xf32>
      tpu.vector_store %arg11[%c0_67, %c0_68], %95 {strides = array<i32>} : memref<1x1xf32, #tpu.memory_space<vmem>>, vector<1x1xf32>,
      %c0_69 = arith.constant 0 : index
      %c0_70 = arith.constant 0 : index
      %97 = vector.load %arg14[%c0_69, %c0_70] : memref<1x1xf32, #tpu.memory_space<vmem>>, vector<1x1xf32>
      %cst_71 = arith.constant 0.00333333341 : f32
      %98 = vector.broadcast %cst_71 : f32 to vector<1x1xf32>
      %99 = arith.mulf %97, %98 : vector<1x1xf32>
      %c0_72 = arith.constant 0 : index
      %c0_73 = arith.constant 0 : index
      %100 = vector.load %arg12[%c0_72, %c0_73] : memref<1x1xf32, #tpu.memory_space<vmem>>, vector<1x1xf32>
      tpu.vector_store %arg12[%c0_72, %c0_73], %99 {strides = array<i32>} : memref<1x1xf32, #tpu.memory_space<vmem>>, vector<1x1xf32>,
    } else {
    }
    return
  }
  func.func @transform_0(%arg0: i32) -> (i32, i32, i32) {
    %c0_i32 = arith.constant 0 : i32
    %c0_i32_0 = arith.constant 0 : i32
    %c0_i32_1 = arith.constant 0 : i32
    %c0_i32_2 = arith.constant 0 : i32
    return %c0_i32, %c0_i32_0, %c0_i32_1 : i32, i32, i32
  }
  func.func @transform_1(%arg0: i32) -> (i32, i32, i32) {
    %c0_i32 = arith.constant 0 : i32
    %c0_i32_0 = arith.constant 0 : i32
    %c0_i32_1 = arith.constant 0 : i32
    %c0_i32_2 = arith.constant 0 : i32
    return %c0_i32, %c0_i32_0, %c0_i32_1 : i32, i32, i32
  }
  func.func @transform_2(%arg0: i32) -> (i32, i32) {
    %c0_i32 = arith.constant 0 : i32
    %c0_i32_0 = arith.constant 0 : i32
    return %arg0, %c0_i32 : i32, i32
  }
  func.func @transform_3(%arg0: i32) -> (i32, i32) {
    %c0_i32 = arith.constant 0 : i32
    %c0_i32_0 = arith.constant 0 : i32
    return %arg0, %c0_i32 : i32, i32
  }
  func.func @transform_4(%arg0: i32) -> (i32, i32) {
    %c0_i32 = arith.constant 0 : i32
    %c0_i32_0 = arith.constant 0 : i32
    return %arg0, %c0_i32 : i32, i32
  }
  func.func @transform_5(%arg0: i32) -> (i32, i32) {
    %c0_i32 = arith.constant 0 : i32
    %c0_i32_0 = arith.constant 0 : i32
    return %arg0, %c0_i32 : i32, i32
  }
  func.func @transform_6(%arg0: i32) -> (i32, i32) {
    %c0_i32 = arith.constant 0 : i32
    %c0_i32_0 = arith.constant 0 : i32
    return %arg0, %c0_i32 : i32, i32
  }
  func.func @transform_7(%arg0: i32) -> (i32, i32) {
    %c0_i32 = arith.constant 0 : i32
    %c0_i32_0 = arith.constant 0 : i32
    return %arg0, %c0_i32 : i32, i32
  }
  func.func @transform_8(%arg0: i32) -> (i32, i32) {
    %c0_i32 = arith.constant 0 : i32
    %c0_i32_0 = arith.constant 0 : i32
    return %arg0, %c0_i32 : i32, i32
  }
  func.func @transform_9(%arg0: i32) -> (i32, i32) {
    %c0_i32 = arith.constant 0 : i32
    %c0_i32_0 = arith.constant 0 : i32
    return %arg0, %c0_i32 : i32, i32
  }
  func.func @transform_10(%arg0: i32) -> (i32, i32) {
    %c0_i32 = arith.constant 0 : i32
    %c0_i32_0 = arith.constant 0 : i32
    %c0_i32_1 = arith.constant 0 : i32
    return %c0_i32, %c0_i32_0 : i32, i32
  }
  func.func @transform_11(%arg0: i32) -> (i32, i32) {
    %c0_i32 = arith.constant 0 : i32
    %c0_i32_0 = arith.constant 0 : i32
    %c0_i32_1 = arith.constant 0 : i32
    return %c0_i32, %c0_i32_0 : i32, i32
  }
}

</mosaic_0001>

<bundles_post_ra>
// kernel: tpu_custom_call.1
= control target key start
LH: loop header
LB: loop body
LE: loop exit
PB: predicated region body
PF: predicated region fallthrough
CT: control target
= control target key end

     0   :  { %17 = vsyncpa [#allocation5], 0  ;;  %s8577_s0 = inlined_call_operand.vmem [shape: bf16[3,72,128], index: 0, kind: input, shape index: {}]   ;;  %s8578_s1 = inlined_call_operand.vmem [shape: bf16[3,104,128], index: 1, kind: input, shape index: {}]   ;;  %s8579_s2 = inlined_call_operand.vmem [shape: s32[304,1], index: 2, kind: input, shape index: {}]   ;;  %s8580_s3 = inlined_call_operand.vmem [shape: s32[304,1], index: 3, kind: input, shape index: {}]   ;;  %s8581_s4 = inlined_call_operand.vmem [shape: s32[304,1], index: 4, kind: input, shape index: {}]   ;;  %s8582_s5 = inlined_call_operand.vmem [shape: f32[304,1], index: 5, kind: input, shape index: {}]   ;;  %s8583_s6 = inlined_call_operand.vmem [shape: f32[304,1], index: 6, kind: input, shape index: {}]   ;;  %s8584_s7 = inlined_call_operand.hbm [shape: f32[304,128], index: 7, kind: output, shape index: {0}]   ;;  %s8585_s8 = inlined_call_operand.hbm [shape: f32[304,128], index: 8, kind: output, shape index: {1}]   ;;  %s8586_s9 = inlined_call_operand.hbm [shape: f32[304,128], index: 9, kind: output, shape index: {2}]   ;;  %s8587_s10 = inlined_call_operand.hbm [shape: f32[1,1], index: 10, kind: output, shape index: {3}]   ;;  %s8588_s11 = inlined_call_operand.hbm [shape: f32[1,1], index: 11, kind: output, shape index: {4}]  }
   0x1   :  { %18 = vsyncpa [#allocation7], 0  ;;  %v44_v0 = vld [vmem:[%s8579_s2 + $0x10] sm:$0xff]  ;;  %v42_v1 = vld [vmem:[%s8579_s2] sm:$0xff]  ;;  %v6176_v2 = vmov 0   ;;  %v6177_v3 = vmov 0.0  }
   0x2   :  { %5985 = vset.pattern.permute.xlu1 %v6176_v2  ;;  %5984 = vset.pattern.permute.xlu0 %v6176_v2  ;;  %39 = vst [vmem:[#allocation2] sm:$0x1] %v6177_v3  ;;  %v45_v4 = vld [vmem:[%s8579_s2 + $0x18] sm:$0xff]  ;;  %v43_v5 = vld [vmem:[%s8579_s2 + $0x8] sm:$0xff]  ;;  %v46_v7 = vld [vmem:[%s8579_s2 + $0x20] sm:$0xff]  ;;  %vm6178_vm0 = vmmov 0  }
   0x3   :  { %89 = vperm.xlu1 %5985, %v44_v0   ;;  %83 = vperm.xlu0 %5984, %v42_v1   ;;  %v47_v6 = vld [vmem:[%s8579_s2 + $0x28] sm:$0xff]  ;;  %v49_v8 = vld [vmem:[%s8579_s2 + $0x38] sm:$0xff]  ;;  %v48_v9 = vld [vmem:[%s8579_s2 + $0x30] sm:$0xff]  ;;  %vm433_vm1 = vcmask 1043456  }
   0x4   :  { %4834 = vmatprep.subr.bf16.mxu0 %v6177_v3  ;;  %4748 = vmatprep.subr.bf16.mxu1 %v6177_v3  ;;  %v51_v10 = vld [vmem:[%s8579_s2 + $0x48] sm:$0xff]  ;;  %v50_v11 = vld [vmem:[%s8579_s2 + $0x40] sm:$0xff]  ;;  %v53_v12 = vld [vmem:[%s8579_s2 + $0x58] sm:$0xff] }
   0x5   :  { %4758 = vmatprep.mubr.msk.bf16.mxu1 %vm6178_vm0, %v6177_v3  ;;  %4844 = vmatprep.mubr.msk.bf16.mxu0 %vm6178_vm0, %v6177_v3  ;;  %v52_v13 = vld [vmem:[%s8579_s2 + $0x50] sm:$0xff]  ;;  %v6292_v14 = vld [vmem:[%s8577_s0] sm:$0xff]   ;;  %v55_v16 = vld [vmem:[%s8579_s2 + $0x68] sm:$0xff] }
   0x6   :  { %v5987_v15 = vld [vmem:[%s8577_s0 + $0x24] sm:$0xff]   ;;  %4835 = vmatpush3.bf16.msra.mxu0 %v6292_v14  ;;  %v5989_v19 = vld [vmem:[%s8577_s0 + $0x2c] sm:$0xff]   ;;  %v57_v20 = vld [vmem:[%s8579_s2 + $0x78] sm:$0xff] }
   0x7   :  { %92 = vperm.xlu1 %5985, %v45_v4   ;;  %86 = vperm.xlu0 %5984, %v43_v5   ;;  %v54_v17 = vld [vmem:[%s8579_s2 + $0x60] sm:$0xff]  ;;  %v6307_v18 = vld [vmem:[%s8577_s0 + $0x8] sm:$0xff]   ;;  %v56_v21 = vld [vmem:[%s8579_s2 + $0x70] sm:$0xff] }
   0x8   :  { %4749 = vmatpush3.bf16.msra.mxu1 %v5987_v15  ;;  %4836 = vmatprep.subr.bf16.mxu0 %v6177_v3  ;;  %v6324_v22 = vld [vmem:[%s8577_s0 + $0x10] sm:$0xff]   ;;  %v59_v24 = vld [vmem:[%s8579_s2 + $0x88] sm:$0xff]  ;;  %v58_v25 = vld [vmem:[%s8579_s2 + $0x80] sm:$0xff] }
   0x9   :  { %4750 = vmatprep.subr.bf16.mxu1 %v6177_v3  ;;  %v5991_v23 = vld [vmem:[%s8577_s0 + $0x34] sm:$0xff]   ;;  %v5993_v27 = vld [vmem:[%s8577_s0 + $0x3c] sm:$0xff]   ;;  %v5995_v29 = vld [vmem:[%s8577_s0 + $0x44] ss:$0 sps:$4 sm:$0xff]  }
   0xa   :  { %4837 = vmatpush3.bf16.msra.mxu0 %v6307_v18  ;;  %v6341_v26 = vld [vmem:[%s8577_s0 + $0x18] sm:$0xff]   ;;  %v5994_v28 = vld [vmem:[%s8577_s0 + $0x20] ss:$0 sps:$4 sm:$0xff]   ;;  %v60_v31 = vld [vmem:[%s8579_s2 + $0x90] sm:$0xff]  ;;  %v435_v33 = vsel %vm433_vm1, %v5995_v29, 0 }
   0xb   :  { %98 = vperm.xlu1 %5985, %v47_v6   ;;  %95 = vperm.xlu0 %5984, %v46_v7   ;;  %v61_v30 = vld [vmem:[%s8579_s2 + $0x98] sm:$0xff]  ;;  %v6364_v32 = vsel %vm433_vm1, %v5994_v28, 0  ;;  %v63_v34 = vld [vmem:[%s8579_s2 + $0xa8] sm:$0xff]  ;;  %v62_v35 = vld [vmem:[%s8579_s2 + $0xa0] sm:$0xff] }
   0xc   :  { %4751 = vmatpush3.bf16.msra.mxu1 %v5989_v19  ;;  %4838 = vmatprep.subr.bf16.mxu0 %v6177_v3  ;;  %v65_v36 = vld [vmem:[%s8579_s2 + $0xb8] sm:$0xff]  ;;  %v64_v37 = vld [vmem:[%s8579_s2 + $0xb0] sm:$0xff]  ;;  %v67_v38 = vld [vmem:[%s8579_s2 + $0xc8] sm:$0xff] }
   0xd   :  { %4752 = vmatprep.subr.bf16.mxu1 %v6177_v3  ;;  %v66_v39 = vld [vmem:[%s8579_s2 + $0xc0] sm:$0xff]  ;;  %v69_v40 = vld [vmem:[%s8579_s2 + $0xd8] sm:$0xff]  ;;  %v68_v41 = vld [vmem:[%s8579_s2 + $0xd0] sm:$0xff] }
   0xe   :  { %4839 = vmatpush3.bf16.msra.mxu0 %v6324_v22  ;;  %v71_v42 = vld [vmem:[%s8579_s2 + $0xe8] sm:$0xff]  ;;  %v70_v43 = vld [vmem:[%s8579_s2 + $0xe0] sm:$0xff] }
   0xf   :  { %104 = vperm.xlu1 %5985, %v49_v8   ;;  %101 = vperm.xlu0 %5984, %v48_v9  }
  0x10   :  { %4753 = vmatpush3.bf16.msra.mxu1 %v5991_v23  ;;  %4840 = vmatprep.subr.bf16.mxu0 %v6177_v3 }
  0x11   :  { %4754 = vmatprep.subr.bf16.mxu1 %v6177_v3 }
  0x12   :  { %4841 = vmatpush3.bf16.msra.mxu0 %v6341_v26 }
  0x13   :  { %110 = vperm.xlu1 %5985, %v51_v10   ;;  %107 = vperm.xlu0 %5984, %v50_v11  }
  0x14   :  { %4755 = vmatpush3.bf16.msra.mxu1 %v5993_v27  ;;  %4842 = vmatprep.subr.bf16.mxu0 %v6177_v3 }
  0x15   :  { %4756 = vmatprep.subr.bf16.mxu1 %v6177_v3 }
  0x16   :  { %4843 = vmatpush3.bf16.msra.mxu0 %v6364_v32 }
  0x17   :  { %116 = vperm.xlu1 %5985, %v53_v12   ;;  %113 = vperm.xlu0 %5984, %v52_v13  }
  0x18   :  { %4757 = vmatpush3.bf16.msra.mxu1 %v435_v33  ;;  %4920 = vmatprep.subr.bf16.mxu0 %v6177_v3 }
  0x19   :  { %5546 = vmatprep.subr.bf16.mxu1 %v6177_v3 }
  0x1b   :  { %122 = vperm.xlu1 %5985, %v55_v16   ;;  %119 = vperm.xlu0 %5984, %v54_v17  }
  0x1f   :  { %128 = vperm.xlu1 %5985, %v57_v20   ;;  %125 = vperm.xlu0 %5984, %v56_v21  }
  0x23   :  { %134 = vperm.xlu1 %5985, %v59_v24   ;;  %131 = vperm.xlu0 %5984, %v58_v25  }
  0x27   :  { %140 = vperm.xlu1 %5985, %v61_v30   ;;  %137 = vperm.xlu0 %5984, %v60_v31  }
  0x2b   :  { %146 = vperm.xlu1 %5985, %v63_v34   ;;  %143 = vperm.xlu0 %5984, %v62_v35  }
  0x2f   :  { %152 = vperm.xlu1 %5985, %v65_v36   ;;  %149 = vperm.xlu0 %5984, %v64_v37  }
  0x33   :  { %158 = vperm.xlu1 %5985, %v67_v38   ;;  %155 = vperm.xlu0 %5984, %v66_v39  }
  0x37   :  { %164 = vperm.xlu1 %5985, %v69_v40   ;;  %161 = vperm.xlu0 %5984, %v68_v41  }
  0x38   :  { %19 = vsyncpa [#allocation10], 0  ;;  %v73_v44 = vld [vmem:[%s8579_s2 + $0xf8] sm:$0xff]  ;;  %v72_v45 = vld [vmem:[%s8579_s2 + $0xf0] sm:$0xff]  ;;  %v80_v16 = vlaneseq  ;;  %vm375_vm4 = vcmask 588800  }
  0x39   :  { %v75_v46 = vld [vmem:[%s8579_s2 + $0x108] sm:$0xff]  ;;  %v74_v47 = vld [vmem:[%s8579_s2 + $0x100] sm:$0xff]  ;;  %v77_v48 = vld [vmem:[%s8579_s2 + $0x118] sm:$0xff] }
  0x3a   :  { %v76_v49 = vld [vmem:[%s8579_s2 + $0x110] sm:$0xff]  ;;  %v79_v50 = vld [vmem:[%s8579_s2 + $0x128] sm:$0xff]  ;;  %v78_v51 = vld [vmem:[%s8579_s2 + $0x120] sm:$0xff]  ;;  %v6508_v20 = vand.u32 127, %v80_v16 }
  0x3b   :  { %170 = vperm.xlu1 %5985, %v71_v42   ;;  %167 = vperm.xlu0 %5984, %v70_v43   ;;  %v1101_v52 = vld [vmem:[%s8580_s3 + $0x8] sm:$0xff]  ;;  %v1100_v53 = vld [vmem:[%s8580_s3] sm:$0xff]  ;;  %v1103_v56 = vld [vmem:[%s8580_s3 + $0x18] sm:$0xff] }
  0x3c   :  { %v2204_v54 = vld [vmem:[%s8581_s4 + $0x8] sm:$0xff]  ;;  %v2203_v55 = vld [vmem:[%s8581_s4] sm:$0xff]  ;;  %v1102_v57 = vld [vmem:[%s8580_s3 + $0x10] sm:$0xff] }
  0x3d   :  { %v2206_v58 = vld [vmem:[%s8581_s4 + $0x18] sm:$0xff]  ;;  %v2205_v59 = vld [vmem:[%s8581_s4 + $0x10] sm:$0xff]  ;;  %v1105_v60 = vld [vmem:[%s8580_s3 + $0x28] sm:$0xff] }
  0x3e   :  { %v1104_v61 = vld [vmem:[%s8580_s3 + $0x20] sm:$0xff]  ;;  %v2208_v62 = vld [vmem:[%s8581_s4 + $0x28] sm:$0xff]  ;;  %v1107_v0 = vld [vmem:[%s8580_s3 + $0x38] sm:$0xff] }
  0x3f   :  { %176 = vperm.xlu1 %5985, %v73_v44   ;;  %173 = vperm.xlu0 %5984, %v72_v45   ;;  %v2207_v63 = vld [vmem:[%s8581_s4 + $0x20] sm:$0xff]  ;;  %v1106_v1 = vld [vmem:[%s8580_s3 + $0x30] sm:$0xff]  ;;  %v2210_v2 = vld [vmem:[%s8581_s4 + $0x38] sm:$0xff] }
  0x40   :  { %v2209_v4 = vld [vmem:[%s8581_s4 + $0x30] sm:$0xff]  ;;  %v1109_v5 = vld [vmem:[%s8580_s3 + $0x48] sm:$0xff]  ;;  %v1108_v6 = vld [vmem:[%s8580_s3 + $0x40] sm:$0xff] }
  0x41   :  { %v2212_v7 = vld [vmem:[%s8581_s4 + $0x48] sm:$0xff]  ;;  %v2211_v8 = vld [vmem:[%s8581_s4 + $0x40] sm:$0xff]  ;;  %v1111_v9 = vld [vmem:[%s8580_s3 + $0x58] sm:$0xff] }
  0x42   :  { %v1110_v10 = vld [vmem:[%s8580_s3 + $0x50] sm:$0xff]  ;;  %v2214_v11 = vld [vmem:[%s8581_s4 + $0x58] sm:$0xff]  ;;  %v1113_v13 = vld [vmem:[%s8580_s3 + $0x68] sm:$0xff] }
  0x43   :  { %182 = vperm.xlu1 %5985, %v75_v46   ;;  %179 = vperm.xlu0 %5984, %v74_v47   ;;  %v2213_v12 = vld [vmem:[%s8581_s4 + $0x50] sm:$0xff]  ;;  %v1112_v15 = vld [vmem:[%s8580_s3 + $0x60] sm:$0xff]  ;;  %v2216_v17 = vld [vmem:[%s8581_s4 + $0x68] sm:$0xff] }
  0x44   :  { %v2215_v19 = vld [vmem:[%s8581_s4 + $0x60] sm:$0xff]  ;;  %v1115_v23 = vld [vmem:[%s8580_s3 + $0x78] sm:$0xff]  ;;  %v1114_v24 = vld [vmem:[%s8580_s3 + $0x70] sm:$0xff] }
  0x45   :  { %v2218_v30 = vld [vmem:[%s8581_s4 + $0x78] sm:$0xff]  ;;  %v2217_v31 = vld [vmem:[%s8581_s4 + $0x70] sm:$0xff]  ;;  %v5996_v34 = vld [vmem:[%s8577_s0 + $0x48] sm:$0xff]  }
  0x46   :  { %v1117_v36 = vld [vmem:[%s8580_s3 + $0x88] sm:$0xff]  ;;  %v1116_v37 = vld [vmem:[%s8580_s3 + $0x80] sm:$0xff]  ;;  %v5997_v38 = vld [vmem:[%s8577_s0 + $0x50] sm:$0xff]  }
  0x47   :  { %188 = vperm.xlu1 %5985, %v77_v48   ;;  %185 = vperm.xlu0 %5984, %v76_v49   ;;  %v2219_v41 = vld [vmem:[%s8581_s4 + $0x80] sm:$0xff]  ;;  %v5998_v45 = vld [vmem:[%s8577_s0 + $0x58] sm:$0xff]   ;;  %v1118_v46 = vld [vmem:[%s8580_s3 + $0x90] sm:$0xff] }
  0x48   :  { %v5999_v47 = vld [vmem:[%s8577_s0 + $0x60] sm:$0xff]  }
  0x4b   :  { %194 = vperm.xlu1 %5985, %v79_v50   ;;  %191 = vperm.xlu0 %5984, %v78_v51   ;;  %v2222_v50 = vld [vmem:[%s8581_s4 + $0x98] sm:$0xff]  ;;  %v2221_v51 = vld [vmem:[%s8581_s4 + $0x90] sm:$0xff] }
  0x4f   :  { %1142 = vperm.xlu1 %5985, %v1101_v52   ;;  %1139 = vperm.xlu0 %5984, %v1100_v53   ;;  %v6000_v53 = vld [vmem:[%s8577_s0 + $0x68] ss:$0 sps:$4 sm:$0xff]  }
  0x53   :  { %2245 = vperm.xlu1 %5985, %v2204_v54   ;;  %2242 = vperm.xlu0 %5984, %v2203_v55   ;;  %v1121_v55 = vld [vmem:[%s8580_s3 + $0xa8] sm:$0xff] }
  0x57   :  { %1148 = vperm.xlu1 %5985, %v1103_v56   ;;  %1145 = vperm.xlu0 %5984, %v1102_v57   ;;  %v875_v56 = vsel %vm433_vm1, %v6000_v53, 0 }
  0x5b   :  { %2251 = vperm.xlu1 %5985, %v2206_v58   ;;  %2248 = vperm.xlu0 %5984, %v2205_v59   ;;  %v2224_v59 = vld [vmem:[%s8581_s4 + $0xa8] sm:$0xff] }
  0x5f   :  { %1154 = vperm.xlu1 %5985, %v1105_v60   ;;  %1151 = vperm.xlu0 %5984, %v1104_v61   ;;  %v2223_v60 = vld [vmem:[%s8581_s4 + $0xa0] sm:$0xff] }
  0x63   :  { %2257 = vperm.xlu1 %5985, %v2208_v62   ;;  %2254 = vperm.xlu0 %5984, %v2207_v63  }
  0x67   :  { %1160 = vperm.xlu1 %5985, %v1107_v0   ;;  %1157 = vperm.xlu0 %5984, %v1106_v1   ;;  %v1122_v0 = vld [vmem:[%s8580_s3 + $0xb0] sm:$0xff] }
  0x6b   :  { %2263 = vperm.xlu1 %5985, %v2210_v2   ;;  %2260 = vperm.xlu0 %5984, %v2209_v4   ;;  %v2226_v4 = vld [vmem:[%s8581_s4 + $0xb8] sm:$0xff] }
  0x6f   :  { %1166 = vperm.xlu1 %5985, %v1109_v5   ;;  %1163 = vperm.xlu0 %5984, %v1108_v6   ;;  %v2225_v5 = vld [vmem:[%s8581_s4 + $0xb0] sm:$0xff] }
  0x73   :  { %2269 = vperm.xlu1 %5985, %v2212_v7   ;;  %2266 = vperm.xlu0 %5984, %v2211_v8  }
  0x77   :  { %1172 = vperm.xlu1 %5985, %v1111_v9   ;;  %1169 = vperm.xlu0 %5984, %v1110_v10   ;;  %v1125_v9 = vld [vmem:[%s8580_s3 + $0xc8] sm:$0xff]  ;;  %v1124_v10 = vld [vmem:[%s8580_s3 + $0xc0] sm:$0xff] }
  0x7b   :  { %2275 = vperm.xlu1 %5985, %v2214_v11   ;;  %2272 = vperm.xlu0 %5984, %v2213_v12  }
  0x7f   :  { %1178 = vperm.xlu1 %5985, %v1113_v13   ;;  %1175 = vperm.xlu0 %5984, %v1112_v15   ;;  %v2228_v13 = vld [vmem:[%s8581_s4 + $0xc8] sm:$0xff]  ;;  %v2227_v15 = vld [vmem:[%s8581_s4 + $0xc0] sm:$0xff] }
  0x82   :  { %v84_v21 = vpop.permute.xlu0 %83  ;;  %v90_v25 = vpop.permute.xlu1 %89 }
  0x83   :  { %2281 = vperm.xlu1 %5985, %v2216_v17   ;;  %2278 = vperm.xlu0 %5984, %v2215_v19   ;;  %vm196_vm2 = vcmp.eq.s32.totalorder %v84_v21, %v6508_v20  ;;  %vm198_vm5 = vcmp.eq.s32.totalorder %v90_v25, %v6508_v20  ;;  %v1127_v21 = vld [vmem:[%s8580_s3 + $0xd8] sm:$0xff] }
  0x84   :  { %v4155_v28 = vsel %vm196_vm2, 1.0, %v6177_v3  ;;  %v4157_v39 = vsel %vm198_vm5, 1.0, %v6177_v3 }
  0x86   :  { %v87_v27 = vpop.permute.xlu0 %86  ;;  %v93_v35 = vpop.permute.xlu1 %92 }
  0x87   :  { %vm197_vm3 = vcmp.eq.s32.totalorder %v87_v27, %v6508_v20  ;;  %1184 = vperm.xlu1 %5985, %v1115_v23   ;;  %1181 = vperm.xlu0 %5984, %v1114_v24   ;;  %vm199_vm6 = vcmp.eq.s32.totalorder %v93_v35, %v6508_v20  ;;  %v1126_v23 = vld [vmem:[%s8580_s3 + $0xd0] sm:$0xff]  ;;  %v2230_v27 = vld [vmem:[%s8581_s4 + $0xd8] sm:$0xff]  ;;  %v1128_v35 = vld [vmem:[%s8580_s3 + $0xe0] sm:$0xff] }
  0x88   :  { %v4156_v29 = vsel %vm197_vm3, 1.0, %v6177_v3  ;;  %v4158_v40 = vsel %vm199_vm6, 1.0, %v6177_v3 }
  0x89   :  { %v6526_v33 = vpack.c.bf16 %v4156_v29, %v4155_v28  ;;  %v6562_v44 = vpack.c.bf16 %v4158_v40, %v4157_v39  ;;  %v2229_v28 = vld [vmem:[%s8581_s4 + $0xd0] sm:$0xff]  ;;  %v2231_v39 = vld [vmem:[%s8581_s4 + $0xe0] sm:$0xff] }
  0x8a   :  { %v99_v42 = vpop.permute.xlu1 %98  ;;  %v96_v43 = vpop.permute.xlu0 %95 }
  0x8b   :  { %2287 = vperm.xlu1 %5985, %v2218_v30   ;;  %2284 = vperm.xlu0 %5984, %v2217_v31   ;;  %vm201_vm7 = vcmp.eq.s32.totalorder %v99_v42, %v6508_v20  ;;  %vm200_vm8 = vcmp.eq.s32.totalorder %v96_v43, %v6508_v20  ;;  %v1131_v42 = vld [vmem:[%s8580_s3 + $0xf8] sm:$0xff]  ;;  %v1130_v43 = vld [vmem:[%s8580_s3 + $0xf0] sm:$0xff] }
  0x8c   :  { %4759 = vmatmul.mubr.msk.bf16.vlgmr.msra.gmra.mrb[0].mxu1 %vm375_vm4, %v6526_v33  ;;  %4845 = vmatmul.mubr.msk.bf16.vlgmr.msra.gmra.mrb[0].mxu0 %vm375_vm4, %v6526_v33  ;;  %v4160_v48 = vsel %vm201_vm7, 1.0, %v6177_v3  ;;  %v4159_v49 = vsel %vm200_vm8, 1.0, %v6177_v3 }
  0x8d   :  { %4921 = vmatpush3.bf16.msra.mxu0 %v5996_v34  ;;  %5551 = vmatpush3.bf16.msra.mxu1 %v6292_v14  ;;  %v2220_v14 = vld [vmem:[%s8581_s4 + $0x88] sm:$0xff]  ;;  %v6602_v54 = vpack.c.bf16 %v4160_v48, %v4159_v49 }
  0x8e   :  { %4762 = vmatprep.mubr.msk.bf16.mxu1 %vm6178_vm0, %v6177_v3  ;;  %4848 = vmatprep.mubr.msk.bf16.mxu0 %vm6178_vm0, %v6177_v3  ;;  %v105_v52 = vpop.permute.xlu1 %104  ;;  %v1129_v34 = vld [vmem:[%s8580_s3 + $0xe8] sm:$0xff] }
  0x8f   :  { %1190 = vperm.xlu1 %5985, %v1117_v36   ;;  %1187 = vperm.xlu0 %5984, %v1116_v37   ;;  %vm203_vm9 = vcmp.eq.s32.totalorder %v105_v52, %v6508_v20  ;;  %v1132_v52 = vld [vmem:[%s8580_s3 + $0x100] sm:$0xff] }
  0x90   :  { %4922 = vmatprep.subr.bf16.mxu0 %v6177_v3  ;;  %5547 = vmatprep.subr.bf16.mxu1 %v6177_v3  ;;  %v4162_v57 = vsel %vm203_vm9, 1.0, %v6177_v3 }
  0x91   :  { %4923 = vmatpush3.bf16.msra.mxu0 %v5997_v38  ;;  %5552 = vmatpush3.bf16.msra.mxu1 %v6307_v18  ;;  %v1119_v18 = vld [vmem:[%s8580_s3 + $0x98] sm:$0xff]  ;;  %v2232_v38 = vld [vmem:[%s8581_s4 + $0xe8] sm:$0xff] }
  0x92   :  { %4924 = vmatprep.subr.bf16.mxu0 %v6177_v3  ;;  %5548 = vmatprep.subr.bf16.mxu1 %v6177_v3  ;;  %v111_v61 = vpop.permute.xlu1 %110 }
  0x93   :  { %2293 = vperm.xlu1 %5985, %v2220_v14   ;;  %2290 = vperm.xlu0 %5984, %v2219_v41   ;;  %vm205_vm11 = vcmp.eq.s32.totalorder %v111_v61, %v6508_v20 }
  0x94   :  { %4763 = vmatmul.mubr.msk.bf16.gmra.mrb[4].mxu1 %vm375_vm4, %v6562_v44  ;;  %4849 = vmatmul.mubr.msk.bf16.gmra.mrb[4].mxu0 %vm375_vm4, %v6562_v44  ;;  %v4164_v1 = vsel %vm205_vm11, 1.0, %v6177_v3 }
  0x95   :  { %4766 = vmatprep.mubr.msk.bf16.mxu1 %vm6178_vm0, %v6177_v3  ;;  %4852 = vmatprep.mubr.msk.bf16.mxu0 %vm6178_vm0, %v6177_v3 }
  0x96   :  { %4925 = vmatpush3.bf16.msra.mxu0 %v5998_v45  ;;  %5553 = vmatpush3.bf16.msra.mxu1 %v6324_v22  ;;  %v102_v22 = vpop.permute.xlu0 %101  ;;  %v117_v6 = vpop.permute.xlu1 %116 }
  0x97   :  { %1196 = vperm.xlu1 %5985, %v1119_v18   ;;  %1193 = vperm.xlu0 %5984, %v1118_v46   ;;  %vm202_vm10 = vcmp.eq.s32.totalorder %v102_v22, %v6508_v20  ;;  %vm207_vm13 = vcmp.eq.s32.totalorder %v117_v6, %v6508_v20  ;;  %v2234_v46 = vld [vmem:[%s8581_s4 + $0xf8] sm:$0xff]  ;;  %v1137_v6 = vld [vmem:[%s8580_s3 + $0x128] sm:$0xff] }
  0x98   :  { %4926 = vmatprep.subr.bf16.mxu0 %v6177_v3  ;;  %5549 = vmatprep.subr.bf16.mxu1 %v6177_v3  ;;  %v4161_v58 = vsel %vm202_vm10, 1.0, %v6177_v3  ;;  %v4166_v11 = vsel %vm207_vm13, 1.0, %v6177_v3 }
  0x99   :  { %v6635_v63 = vpack.c.bf16 %v4162_v57, %v4161_v58 }
  0x9a   :  { %4927 = vmatpush3.bf16.msra.mxu0 %v5999_v47  ;;  %5554 = vmatpush3.bf16.msra.mxu1 %v6341_v26  ;;  %v1120_v26 = vld [vmem:[%s8580_s3 + $0xa0] sm:$0xff]  ;;  %v108_v62 = vpop.permute.xlu0 %107  ;;  %v123_v16 = vpop.permute.xlu1 %122  ;;  %v2233_v47 = vld [vmem:[%s8581_s4 + $0xf0] sm:$0xff] }
  0x9b   :  { %2299 = vperm.xlu1 %5985, %v2222_v50   ;;  %2296 = vperm.xlu0 %5984, %v2221_v51   ;;  %vm204_vm12 = vcmp.eq.s32.totalorder %v108_v62, %v6508_v20  ;;  %vm209_vm15 = vcmp.eq.s32.totalorder %v123_v16, %v6508_v20  ;;  %v1133_v51 = vld [vmem:[%s8580_s3 + $0x108] sm:$0xff] }
  0x9c   :  { %4767 = vmatmul.mubr.msk.bf16.gmra.mrb[8].mxu1 %vm375_vm4, %v6602_v54  ;;  %4853 = vmatmul.mubr.msk.bf16.gmra.mrb[8].mxu0 %vm375_vm4, %v6602_v54  ;;  %v4163_v2 = vsel %vm204_vm12, 1.0, %v6177_v3  ;;  %v4168_v24 = vsel %vm209_vm15, 1.0, %v6177_v3 }
  0x9d   :  { %4770 = vmatprep.mubr.msk.bf16.mxu1 %vm6178_vm0, %v6177_v3  ;;  %4856 = vmatprep.mubr.msk.bf16.mxu0 %vm6178_vm0, %v6177_v3  ;;  %v6661_v8 = vpack.c.bf16 %v4164_v1, %v4163_v2 }
  0x9e   :  { %4928 = vmatprep.subr.bf16.mxu0 %v6177_v3  ;;  %5550 = vmatprep.subr.bf16.mxu1 %v6177_v3  ;;  %v114_v7 = vpop.permute.xlu0 %113  ;;  %v129_v29 = vpop.permute.xlu1 %128 }
  0x9f   :  { %1202 = vperm.xlu1 %5985, %v1121_v55   ;;  %1199 = vperm.xlu0 %5984, %v1120_v26   ;;  %vm206_vm14 = vcmp.eq.s32.totalorder %v114_v7, %v6508_v20  ;;  %vm211_vm3 = vcmp.eq.s32.totalorder %v129_v29, %v6508_v20  ;;  %v2236_v55 = vld [vmem:[%s8581_s4 + $0x108] sm:$0xff]  ;;  %v2235_v26 = vld [vmem:[%s8581_s4 + $0x100] sm:$0xff] }
  0xa0   :  { %4929 = vmatpush3.bf16.msra.mxu0 %v875_v56  ;;  %5555 = vmatpush3.bf16.msra.mxu1 %v6364_v32  ;;  %v1123_v32 = vld [vmem:[%s8580_s3 + $0xb8] sm:$0xff]  ;;  %v4165_v12 = vsel %vm206_vm14, 1.0, %v6177_v3  ;;  %v4170_v36 = vsel %vm211_vm3, 1.0, %v6177_v3  ;;  %v1136_v7 = vld [vmem:[%s8580_s3 + $0x120] sm:$0xff] }
  0xa1   :  { %5276 = vmatprep.subr.bf16.mxu0 %v6177_v3  ;;  %5006 = vmatprep.subr.bf16.mxu1 %v6177_v3  ;;  %v6687_v19 = vpack.c.bf16 %v4166_v11, %v4165_v12  ;;  %v2240_v11 = vld [vmem:[%s8581_s4 + $0x128] sm:$0xff]  ;;  %v2239_v12 = vld [vmem:[%s8581_s4 + $0x120] sm:$0xff] }
  0xa2   :  { %v120_v17 = vpop.permute.xlu0 %119  ;;  %v135_v40 = vpop.permute.xlu1 %134 }
  0xa3   :  { %2305 = vperm.xlu1 %5985, %v2224_v59   ;;  %2302 = vperm.xlu0 %5984, %v2223_v60   ;;  %vm208_vm2 = vcmp.eq.s32.totalorder %v120_v17, %v6508_v20  ;;  %vm213_vm6 = vcmp.eq.s32.totalorder %v135_v40, %v6508_v20  ;;  %v1135_v59 = vld [vmem:[%s8580_s3 + $0x118] sm:$0xff]  ;;  %v1134_v60 = vld [vmem:[%s8580_s3 + $0x110] sm:$0xff]  ;;  %v6868_v17 = vld [vmem:[%s8578_s1 + $0x44] sm:$0xff]  }
  0xa4   :  { %4771 = vmatmul.mubr.msk.bf16.gmra.mrb[12].mxu1 %vm375_vm4, %v6635_v63  ;;  %4857 = vmatmul.mubr.msk.bf16.gmra.mrb[12].mxu0 %vm375_vm4, %v6635_v63  ;;  %v4167_v25 = vsel %vm208_vm2, 1.0, %v6177_v3  ;;  %v4172_v45 = vsel %vm213_vm6, 1.0, %v6177_v3 }
  0xa5   :  { %4774 = vmatprep.mubr.msk.bf16.mxu1 %vm6178_vm0, %v6177_v3  ;;  %4860 = vmatprep.mubr.msk.bf16.mxu0 %vm6178_vm0, %v6177_v3  ;;  %v6713_v31 = vpack.c.bf16 %v4168_v24, %v4167_v25 }
  0xa6   :  { %v126_v30 = vpop.permute.xlu0 %125  ;;  %v141_v48 = vpop.permute.xlu1 %140 }
  0xa7   :  { %1208 = vperm.xlu1 %5985, %v1123_v32   ;;  %1205 = vperm.xlu0 %5984, %v1122_v0   ;;  %vm210_vm5 = vcmp.eq.s32.totalorder %v126_v30, %v6508_v20  ;;  %vm215_vm8 = vcmp.eq.s32.totalorder %v141_v48, %v6508_v20  ;;  %v2238_v32 = vld [vmem:[%s8581_s4 + $0x118] sm:$0xff]  ;;  %v2237_v0 = vld [vmem:[%s8581_s4 + $0x110] sm:$0xff] }
  0xa8   :  { %v4169_v37 = vsel %vm210_vm5, 1.0, %v6177_v3  ;;  %v4174_v22 = vsel %vm215_vm8, 1.0, %v6177_v3 }
  0xa9   :  { %v6739_v41 = vpack.c.bf16 %v4170_v36, %v4169_v37  ;;  %v6007_v36 = vld [vmem:[%s8578_s1 + $0x64] ss:$0 sps:$4 sm:$0xff]  }
  0xaa   :  { %v132_v14 = vpop.permute.xlu0 %131  ;;  %v147_v56 = vpop.permute.xlu1 %146 }
  0xab   :  { %2311 = vperm.xlu1 %5985, %v2226_v4   ;;  %2308 = vperm.xlu0 %5984, %v2225_v5   ;;  %vm212_vm7 = vcmp.eq.s32.totalorder %v132_v14, %v6508_v20  ;;  %vm217_vm10 = vcmp.eq.s32.totalorder %v147_v56, %v6508_v20  ;;  %v6822_v5 = vld [vmem:[%s8578_s1 + $0x34] sm:$0xff]  }
  0xac   :  { %4775 = vmatmul.mubr.msk.bf16.gmra.mrb[16].mxu1 %vm375_vm4, %v6661_v8  ;;  %4861 = vmatmul.mubr.msk.bf16.gmra.mrb[16].mxu0 %vm375_vm4, %v6661_v8  ;;  %v4171_v18 = vsel %vm212_vm7, 1.0, %v6177_v3  ;;  %v4176_v61 = vsel %vm217_vm10, 1.0, %v6177_v3 }
  0xad   :  { %4778 = vmatprep.mubr.msk.bf16.mxu1 %vm6178_vm0, %v6177_v3  ;;  %4864 = vmatprep.mubr.msk.bf16.mxu0 %vm6178_vm0, %v6177_v3  ;;  %v6765_v50 = vpack.c.bf16 %v4172_v45, %v4171_v18 }
  0xae   :  { %v138_v49 = vpop.permute.xlu0 %137  ;;  %v153_v1 = vpop.permute.xlu1 %152 }
  0xaf   :  { %1214 = vperm.xlu1 %5985, %v1125_v9   ;;  %1211 = vperm.xlu0 %5984, %v1124_v10   ;;  %vm214_vm9 = vcmp.eq.s32.totalorder %v138_v49, %v6508_v20  ;;  %vm219_vm12 = vcmp.eq.s32.totalorder %v153_v1, %v6508_v20  ;;  %v6847_v10 = vld [vmem:[%s8578_s1 + $0x3c] sm:$0xff]  }
  0xb0   :  { %v4173_v53 = vsel %vm214_vm9, 1.0, %v6177_v3 }
  0xb1   :  { %v6791_v58 = vpack.c.bf16 %v4174_v22, %v4173_v53 }
  0xb2   :  { %v144_v57 = vpop.permute.xlu0 %143 }
  0xb3   :  { %2317 = vperm.xlu1 %5985, %v2228_v13   ;;  %2314 = vperm.xlu0 %5984, %v2227_v15   ;;  %vm216_vm11 = vcmp.eq.s32.totalorder %v144_v57, %v6508_v20  ;;  %v159_v13 = vpop.permute.xlu1 %158 }
  0xb4   :  { %4779 = vmatmul.mubr.msk.bf16.gmra.mrb[20].mxu1 %vm375_vm4, %v6687_v19  ;;  %4865 = vmatmul.mubr.msk.bf16.gmra.mrb[20].mxu0 %vm375_vm4, %v6687_v19  ;;  %v4175_v62 = vsel %vm216_vm11, 1.0, %v6177_v3  ;;  %vm221_vm14 = vcmp.eq.s32.totalorder %v159_v13, %v6508_v20 }
  0xb5   :  { %4782 = vmatprep.mubr.msk.bf16.mxu1 %vm6178_vm0, %v6177_v3  ;;  %4868 = vmatprep.mubr.msk.bf16.mxu0 %vm6178_vm0, %v6177_v3  ;;  %v6817_v4 = vpack.c.bf16 %v4176_v61, %v4175_v62 }
  0xb6   :  { %v150_v2 = vpop.permute.xlu0 %149 }
  0xb7   :  { %1220 = vperm.xlu1 %5985, %v1127_v21   ;;  %1217 = vperm.xlu0 %5984, %v1126_v23   ;;  %vm218_vm13 = vcmp.eq.s32.totalorder %v150_v2, %v6508_v20  ;;  %v4180_v21 = vsel %vm221_vm14, 1.0, %v6177_v3  ;;  %v165_v24 = vpop.permute.xlu1 %164 }
  0xb8   :  { %v4177_v9 = vsel %vm218_vm13, 1.0, %v6177_v3  ;;  %vm223_vm2 = vcmp.eq.s32.totalorder %v165_v24, %v6508_v20 }
  0xb9   :  { %v4182_v29 = vsel %vm223_vm2, 1.0, %v6177_v3 }
  0xba   :  { %v156_v15 = vpop.permute.xlu0 %155 }
  0xbb   :  { %2323 = vperm.xlu1 %5985, %v2230_v27   ;;  %2320 = vperm.xlu0 %5984, %v2229_v28   ;;  %vm220_vm15 = vcmp.eq.s32.totalorder %v156_v15, %v6508_v20  ;;  %v6896_v28 = vld [vmem:[%s8578_s1 + $0x54] sm:$0xff]  }
  0xbc   :  { %4783 = vmatmul.mubr.msk.bf16.gmra.mrb[24].mxu1 %vm375_vm4, %v6713_v31  ;;  %4869 = vmatmul.mubr.msk.bf16.gmra.mrb[24].mxu0 %vm375_vm4, %v6713_v31  ;;  %v4179_v23 = vsel %vm220_vm15, 1.0, %v6177_v3 }
  0xbd   :  { %4786 = vmatprep.mubr.msk.bf16.mxu1 %vm6178_vm0, %v6177_v3  ;;  %4872 = vmatprep.mubr.msk.bf16.mxu0 %vm6178_vm0, %v6177_v3  ;;  %v6883_v27 = vpack.c.bf16 %v4180_v21, %v4179_v23 }
  0xbe   :  { %v162_v25 = vpop.permute.xlu0 %161 }
  0xbf   :  { %1226 = vperm.xlu1 %5985, %v1129_v34   ;;  %1223 = vperm.xlu0 %5984, %v1128_v35   ;;  %vm222_vm3 = vcmp.eq.s32.totalorder %v162_v25, %v6508_v20  ;;  %v171_v34 = vpop.permute.xlu1 %170 }
  0xc0   :  { %v4181_v30 = vsel %vm222_vm3, 1.0, %v6177_v3  ;;  %vm225_vm5 = vcmp.eq.s32.totalorder %v171_v34, %v6508_v20  ;;  %vm1451_vm3 = vcmask 850944  }
  0xc1   :  { %v6914_v37 = vpack.c.bf16 %v4182_v29, %v4181_v30 }
  0xc2   :  { %v168_v35 = vpop.permute.xlu0 %167 }
  0xc3   :  { %2329 = vperm.xlu1 %5985, %v2232_v38   ;;  %2326 = vperm.xlu0 %5984, %v2231_v39   ;;  %vm224_vm6 = vcmp.eq.s32.totalorder %v168_v35, %v6508_v20  ;;  %v6929_v38 = vsel %vm433_vm1, %v6007_v36, 0  ;;  %v4184_v39 = vsel %vm225_vm5, 1.0, %v6177_v3  ;;  %v177_v14 = vpop.permute.xlu1 %176 }
  0xc4   :  { %4787 = vmatmul.mubr.msk.bf16.gmra.mrb[28].mxu1 %vm375_vm4, %v6739_v41  ;;  %4873 = vmatmul.mubr.msk.bf16.gmra.mrb[28].mxu0 %vm375_vm4, %v6739_v41  ;;  %v4183_v40 = vsel %vm224_vm6, 1.0, %v6177_v3  ;;  %vm227_vm7 = vcmp.eq.s32.totalorder %v177_v14, %v6508_v20 }
  0xc5   :  { %4790 = vmatprep.mubr.msk.bf16.mxu1 %vm6178_vm0, %v6177_v3  ;;  %4876 = vmatprep.mubr.msk.bf16.mxu0 %vm6178_vm0, %v6177_v3 }
  0xc7   :  { %1232 = vperm.xlu1 %5985, %v1131_v42   ;;  %1229 = vperm.xlu0 %5984, %v1130_v43   ;;  %v174_v42 = vpop.permute.xlu0 %173  ;;  %v4186_v43 = vsel %vm227_vm7, 1.0, %v6177_v3  ;;  %v183_v18 = vpop.permute.xlu1 %182 }
  0xc8   :  { %vm226_vm8 = vcmp.eq.s32.totalorder %v174_v42, %v6508_v20  ;;  %vm229_vm9 = vcmp.eq.s32.totalorder %v183_v18, %v6508_v20  ;;  %v6009_v42 = vld [vmem:[%s8578_s1 + $0x8] sm:$0xff]  }
  0xc9   :  { %v4185_v45 = vsel %vm226_vm8, 1.0, %v6177_v3 }
  0xcb   :  { %2335 = vperm.xlu1 %5985, %v2234_v46   ;;  %2332 = vperm.xlu0 %5984, %v2233_v47   ;;  %v180_v46 = vpop.permute.xlu0 %179  ;;  %v6949_v47 = vpack.c.bf16 %v4186_v43, %v4185_v45  ;;  %v189_v49 = vpop.permute.xlu1 %188 }
  0xcc   :  { %4791 = vmatmul.mubr.msk.bf16.gmra.mrb[32].mxu1 %vm375_vm4, %v6765_v50  ;;  %4877 = vmatmul.mubr.msk.bf16.gmra.mrb[32].mxu0 %vm375_vm4, %v6765_v50  ;;  %vm228_vm10 = vcmp.eq.s32.totalorder %v180_v46, %v6508_v20  ;;  %vm231_vm11 = vcmp.eq.s32.totalorder %v189_v49, %v6508_v20 }
  0xcd   :  { %4794 = vmatprep.mubr.msk.bf16.mxu1 %vm6178_vm0, %v6177_v3  ;;  %4880 = vmatprep.mubr.msk.bf16.mxu0 %vm6178_vm0, %v6177_v3  ;;  %v4187_v48 = vsel %vm228_vm10, 1.0, %v6177_v3 }
  0xcf   :  { %1238 = vperm.xlu1 %5985, %v1133_v51   ;;  %1235 = vperm.xlu0 %5984, %v1132_v52   ;;  %v186_v51 = vpop.permute.xlu0 %185  ;;  %v195_v53 = vpop.permute.xlu1 %194 }
  0xd0   :  { %vm233_vm13 = vcmp.eq.s32.totalorder %v195_v53, %v6508_v20 }
  0xd3   :  { %2341 = vperm.xlu1 %5985, %v2236_v55   ;;  %2338 = vperm.xlu0 %5984, %v2235_v26   ;;  %v192_v55 = vpop.permute.xlu0 %191  ;;  %v6991_v57 = vpop.permute.xlu1 %1142 }
  0xd4   :  { %4795 = vmatmul.mubr.msk.bf16.gmra.mrb[36].mxu1 %vm375_vm4, %v6791_v58  ;;  %4881 = vmatmul.mubr.msk.bf16.gmra.mrb[36].mxu0 %vm375_vm4, %v6791_v58  ;;  %vm232_vm14 = vcmp.eq.s32.totalorder %v192_v55, %v6508_v20  ;;  %vm1253_vm15 = vcmp.eq.s32.totalorder %v6991_v57, %v6508_v20 }
  0xd5   :  { %4798 = vmatprep.mubr.msk.bf16.mxu1 %vm6178_vm0, %v6177_v3  ;;  %4930 = vmatprep.mubr.msk.bf16.mxu0 %vm6178_vm0, %v6177_v3  ;;  %v4191_v56 = vsel %vm232_vm14, 1.0, %v6177_v3  ;;  %v4284_v30 = vsel %vm1253_vm15, 1.0, %v6177_v3 }
  0xd7   :  { %1244 = vperm.xlu1 %5985, %v1135_v59   ;;  %1241 = vperm.xlu0 %5984, %v1134_v60   ;;  %v6993_v59 = vpop.permute.xlu0 %1139 }
  0xd8   :  { %vm1252_vm2 = vcmp.eq.s32.totalorder %v6993_v59, %v6508_v20  ;;  %v6011_v59 = vld [vmem:[%s8578_s1 + $0x18] sm:$0xff]  }
  0xdb   :  { %2347 = vperm.xlu1 %5985, %v2238_v32   ;;  %2344 = vperm.xlu0 %5984, %v2237_v0   ;;  %v7007_v61 = vpop.permute.xlu0 %2242 }
  0xdc   :  { %4799 = vmatmul.mubr.msk.bf16.gmra.mrb[40].mxu1 %vm375_vm4, %v6817_v4  ;;  %4931 = vmatmul.mubr.msk.bf16.vlgmr.msra.gmra.mrb[0].mxu0 %vm375_vm4, %v6526_v33  ;;  %v4178_v33 = vsel %vm219_vm12, 1.0, %v6177_v3  ;;  %vm230_vm12 = vcmp.eq.s32.totalorder %v186_v51, %v6508_v20  ;;  %vm2355_vm6 = vcmp.eq.s32.totalorder %v7007_v61, %v6508_v20 }
  0xdd   :  { %5277 = vmatpush3.bf16.msra.mxu0 %v6822_v5  ;;  %4802 = vmatprep.mubr.msk.bf16.mxu1 %vm6178_vm0, %v6177_v3  ;;  %v6856_v16 = vpack.c.bf16 %v4178_v33, %v4177_v9  ;;  %v4189_v22 = vsel %vm230_vm12, 1.0, %v6177_v3  ;;  %v4425_v43 = vsel %vm2355_vm6, 1.0, %v6177_v3 }
  0xde   :  { %4934 = vmatprep.mubr.msk.bf16.mxu0 %vm6178_vm0, %v6177_v3  ;;  %5278 = vmatprep.subr.bf16.mxu0 %v6177_v3 }
  0xdf   :  { %1250 = vperm.xlu1 %5985, %v1137_v6   ;;  %1247 = vperm.xlu0 %5984, %v1136_v7   ;;  %v7011_v32 = vpop.permute.xlu0 %1145 }
  0xe0   :  { %vm1254_vm8 = vcmp.eq.s32.totalorder %v7011_v32, %v6508_v20 }
  0xe1   :  { %5279 = vmatpush3.bf16.msra.mxu0 %v6847_v10  ;;  %v4285_v18 = vsel %vm1254_vm8, 1.0, %v6177_v3 }
  0xe2   :  { %5280 = vmatprep.subr.bf16.mxu0 %v6177_v3 }
  0xe3   :  { %2353 = vperm.xlu1 %5985, %v2240_v11   ;;  %2350 = vperm.xlu0 %5984, %v2239_v12   ;;  %v7026_v0 = vpop.permute.xlu0 %2248 }
  0xe4   :  { %4803 = vmatmul.mubr.msk.bf16.gmra.mrb[44].mxu1 %vm375_vm4, %v6856_v16  ;;  %4935 = vmatmul.mubr.msk.bf16.gmra.mrb[4].mxu0 %vm375_vm4, %v6562_v44  ;;  %v6881_v44 = vld [vmem:[%s8578_s1 + $0x4c] sm:$0xff]  }
  0xe5   :  { %4806 = vmatprep.mubr.msk.bf16.mxu1 %vm6178_vm0, %v6177_v3  ;;  %4938 = vmatprep.mubr.msk.bf16.mxu0 %vm6178_vm0, %v6177_v3 }
  0xe6   :  { %5281 = vmatpush3.bf16.msra.mxu0 %v6868_v17 }
  0xe7   :  { %5282 = vmatprep.subr.bf16.mxu0 %v6177_v3  ;;  %v7041_v1 = vpop.permute.xlu0 %1151 }
  0xea   :  { %5283 = vmatpush3.bf16.msra.mxu0 %v6881_v44 }
  0xeb   :  { %5284 = vmatprep.subr.bf16.mxu0 %v6177_v3 }
  0xec   :  { %4807 = vmatmul.mubr.msk.bf16.gmra.mrb[48].mxu1 %vm375_vm4, %v6883_v27  ;;  %4939 = vmatmul.mubr.msk.bf16.gmra.mrb[8].mxu0 %vm375_vm4, %v6602_v54  ;;  %v6909_v54 = vld [vmem:[%s8578_s1 + $0x5c] sm:$0xff]  }
  0xed   :  { %4810 = vmatprep.mubr.msk.bf16.mxu1 %vm6178_vm0, %v6177_v3  ;;  %4942 = vmatprep.mubr.msk.bf16.mxu0 %vm6178_vm0, %v6177_v3 }
  0xee   :  { %5285 = vmatpush3.bf16.msra.mxu0 %v6896_v28 }
  0xef   :  { %5286 = vmatprep.subr.bf16.mxu0 %v6177_v3 }
  0xf2   :  { %5287 = vmatpush3.bf16.msra.mxu0 %v6909_v54 }
  0xf3   :  { %5288 = vmatprep.subr.bf16.mxu0 %v6177_v3 }
  0xf4   :  { %4811 = vmatmul.mubr.msk.bf16.gmra.mrb[52].mxu1 %vm375_vm4, %v6914_v37  ;;  %4943 = vmatmul.mubr.msk.bf16.gmra.mrb[12].mxu0 %vm375_vm4, %v6635_v63  ;;  %v6935_v63 = vpack.c.bf16 %v4184_v39, %v4183_v40 }
  0xf5   :  { %4814 = vmatprep.mubr.msk.bf16.mxu1 %vm6178_vm0, %v6177_v3  ;;  %4946 = vmatprep.mubr.msk.bf16.mxu0 %vm6178_vm0, %v6177_v3 }
  0xf6   :  { %5289 = vmatpush3.bf16.msra.mxu0 %v6929_v38 }
  0xf7   :  { %5366 = vmatprep.subr.bf16.mxu0 %v6177_v3 }
  0xfc   :  { %4815 = vmatmul.mubr.msk.bf16.gmra.mrb[56].mxu1 %vm375_vm4, %v6935_v63  ;;  %4947 = vmatmul.mubr.msk.bf16.gmra.mrb[16].mxu0 %vm375_vm4, %v6661_v8  ;;  %v4188_v8 = vsel %vm229_vm9, 1.0, %v6177_v3  ;;  %vm2357_vm9 = vcmp.eq.s32.totalorder %v7026_v0, %v6508_v20  ;;  %v6012_v0 = vld [vmem:[%s8578_s1 + $0x20] sm:$0xff]  }
  0xfd   :  { %4818 = vmatprep.mubr.msk.bf16.mxu1 %vm6178_vm0, %v6177_v3  ;;  %4950 = vmatprep.mubr.msk.bf16.mxu0 %vm6178_vm0, %v6177_v3  ;;  %v6963_v52 = vpack.c.bf16 %v4188_v8, %v4187_v48  ;;  %v4427_v55 = vsel %vm2357_vm9, 1.0, %v6177_v3 }
 0x104   :  { %4819 = vmatmul.mubr.msk.bf16.gmra.mrb[60].mxu1 %vm375_vm4, %v6949_v47  ;;  %4951 = vmatmul.mubr.msk.bf16.gmra.mrb[20].mxu0 %vm375_vm4, %v6687_v19  ;;  %v4190_v19 = vsel %vm231_vm11, 1.0, %v6177_v3  ;;  %vm1256_vm11 = vcmp.eq.s32.totalorder %v7041_v1, %v6508_v20 }
 0x105   :  { %4822 = vmatprep.mubr.msk.bf16.mxu1 %vm6178_vm0, %v6177_v3  ;;  %4954 = vmatprep.mubr.msk.bf16.mxu0 %vm6178_vm0, %v6177_v3  ;;  %v6977_v26 = vpack.c.bf16 %v4190_v19, %v4189_v22  ;;  %v6010_v22 = vld [vmem:[%s8578_s1 + $0x10] sm:$0xff]  }
 0x10c   :  { %4823 = vmatmul.mubr.msk.bf16.gmra.mrb[64].mxu1 %vm375_vm4, %v6963_v52  ;;  %4955 = vmatmul.mubr.msk.bf16.gmra.mrb[24].mxu0 %vm375_vm4, %v6713_v31  ;;  %v4192_v31 = vsel %vm233_vm13, 1.0, %v6177_v3 }
 0x10d   :  { %4826 = vmatprep.mubr.msk.bf16.mxu1 %vm6178_vm0, %v6177_v3  ;;  %4958 = vmatprep.mubr.msk.bf16.mxu0 %vm6178_vm0, %v6177_v3  ;;  %v6995_v60 = vpack.c.bf16 %v4192_v31, %v4191_v56  ;;  %v4287_v31 = vsel %vm1256_vm11, 1.0, %v6177_v3 }
 0x114   :  { %4827 = vmatmul.mubr.msk.bf16.gmra.mrb[68].mxu1 %vm375_vm4, %v6977_v26  ;;  %4959 = vmatmul.mubr.msk.bf16.gmra.mrb[28].mxu0 %vm375_vm4, %v6739_v41  ;;  %v7001_v41 = vpop.permute.xlu1 %2245 }
 0x115   :  { %4830 = vmatprep.mubr.msk.bf16.mxu1 %vm6178_vm0, %v6177_v3  ;;  %4962 = vmatprep.mubr.msk.bf16.mxu0 %vm6178_vm0, %v6177_v3  ;;  %vm2356_vm5 = vcmp.eq.s32.totalorder %v7001_v41, %v6508_v20 }
 0x118   :  { %v7009_v62 = vpop.permute.xlu1 %1148 }
 0x119   :  { %vm1255_vm7 = vcmp.eq.s32.totalorder %v7009_v62, %v6508_v20 }
 0x11a   :  { %v4286_v45 = vsel %vm1255_vm7, 1.0, %v6177_v3 }
 0x11b   :  { %v7198_v51 = vpack.c.bf16 %v4286_v45, %v4285_v18 }
 0x11c   :  { %4831 = vmatmul.mubr.msk.bf16.gmra.mrb[72].mxu1 %vm375_vm4, %v6995_v60  ;;  %4963 = vmatmul.mubr.msk.bf16.gmra.mrb[32].mxu0 %vm375_vm4, %v6765_v50  ;;  %v7023_v50 = vpop.permute.xlu1 %2251 }
 0x11d   :  { %4884 = vmatprep.mubr.msk.bf16.mxu1 %vm6178_vm0, %v6177_v3  ;;  %4966 = vmatprep.mubr.msk.bf16.mxu0 %vm6178_vm0, %v6177_v3 }
 0x124   :  { %4885 = vmatmul.mubr.msk.bf16.vlgmr.msra.gmra.mrb[40].mxu1 %vm375_vm4, %v6817_v4  ;;  %4967 = vmatmul.mubr.msk.bf16.gmra.mrb[36].mxu0 %vm375_vm4, %v6791_v58  ;;  %v7038_v58 = vpop.permute.xlu1 %1154 }
 0x125   :  { %5007 = vmatpush3.bf16.msra.mxu1 %v6822_v5  ;;  %4888 = vmatprep.mubr.msk.bf16.mxu1 %vm6178_vm0, %v6177_v3  ;;  %vm1257_vm10 = vcmp.eq.s32.totalorder %v7038_v58, %v6508_v20 }
 0x126   :  { %4970 = vmatprep.mubr.msk.bf16.mxu0 %vm6178_vm0, %v6177_v3  ;;  %5008 = vmatprep.subr.bf16.mxu1 %v6177_v3 }
 0x128   :  { %v7049_v2 = vpop.permute.xlu1 %2257 }
 0x129   :  { %5009 = vmatpush3.bf16.msra.mxu1 %v6847_v10  ;;  %vm2360_vm12 = vcmp.eq.s32.totalorder %v7049_v2, %v6508_v20 }
 0x12a   :  { %5010 = vmatprep.subr.bf16.mxu1 %v6177_v3  ;;  %v4430_v2 = vsel %vm2360_vm12, 1.0, %v6177_v3 }
 0x12c   :  { %4889 = vmatmul.mubr.msk.bf16.gmra.mrb[44].mxu1 %vm375_vm4, %v6856_v16  ;;  %4971 = vmatmul.mubr.msk.bf16.gmra.mrb[40].mxu0 %vm375_vm4, %v6817_v4  ;;  %v7055_v4 = vpop.permute.xlu0 %2254  ;;  %v7060_v5 = vpop.permute.xlu1 %1160 }
 0x12d   :  { %4892 = vmatprep.mubr.msk.bf16.mxu1 %vm6178_vm0, %v6177_v3  ;;  %4974 = vmatprep.mubr.msk.bf16.mxu0 %vm6178_vm0, %v6177_v3  ;;  %vm2359_vm13 = vcmp.eq.s32.totalorder %v7055_v4, %v6508_v20  ;;  %vm1259_vm14 = vcmp.eq.s32.totalorder %v7060_v5, %v6508_v20 }
 0x12e   :  { %5011 = vmatpush3.bf16.msra.mxu1 %v6868_v17  ;;  %v4429_v4 = vsel %vm2359_vm13, 1.0, %v6177_v3  ;;  %v4290_v5 = vsel %vm1259_vm14, 1.0, %v6177_v3 }
 0x12f   :  { %5012 = vmatprep.subr.bf16.mxu1 %v6177_v3 }
 0x130   :  { %v7063_v6 = vpop.permute.xlu0 %1157  ;;  %v7075_v7 = vpop.permute.xlu1 %2263 }
 0x131   :  { %vm1258_vm15 = vcmp.eq.s32.totalorder %v7063_v6, %v6508_v20 }
 0x132   :  { %5013 = vmatpush3.bf16.msra.mxu1 %v6881_v44  ;;  %v4289_v6 = vsel %vm1258_vm15, 1.0, %v6177_v3 }
 0x133   :  { %5014 = vmatprep.subr.bf16.mxu1 %v6177_v3 }
 0x134   :  { %4893 = vmatmul.mubr.msk.bf16.gmra.mrb[48].mxu1 %vm375_vm4, %v6883_v27  ;;  %4975 = vmatmul.mubr.msk.bf16.gmra.mrb[44].mxu0 %vm375_vm4, %v6856_v16  ;;  %v7077_v33 = vpop.permute.xlu0 %2260  ;;  %v7087_v9 = vpop.permute.xlu1 %1166 }
 0x135   :  { %4896 = vmatprep.mubr.msk.bf16.mxu1 %vm6178_vm0, %v6177_v3  ;;  %4978 = vmatprep.mubr.msk.bf16.mxu0 %vm6178_vm0, %v6177_v3  ;;  %vm1261_vm6 = vcmp.eq.s32.totalorder %v7087_v9, %v6508_v20 }
 0x136   :  { %5015 = vmatpush3.bf16.msra.mxu1 %v6896_v28 }
 0x137   :  { %5016 = vmatprep.subr.bf16.mxu1 %v6177_v3 }
 0x138   :  { %v7089_v10 = vpop.permute.xlu0 %1163  ;;  %v7095_v11 = vpop.permute.xlu1 %2269 }
 0x139   :  { %vm1260_vm7 = vcmp.eq.s32.totalorder %v7089_v10, %v6508_v20  ;;  %v4292_v10 = vsel %vm1261_vm6, 1.0, %v6177_v3  ;;  %vm2364_vm8 = vcmp.eq.s32.totalorder %v7095_v11, %v6508_v20 }
 0x13a   :  { %5017 = vmatpush3.bf16.msra.mxu1 %v6909_v54  ;;  %v4283_v54 = vsel %vm1252_vm2, 1.0, %v6177_v3  ;;  %vm2362_vm2 = vcmp.eq.s32.totalorder %v7075_v7, %v6508_v20  ;;  %v4291_v45 = vsel %vm1260_vm7, 1.0, %v6177_v3  ;;  %v4434_v11 = vsel %vm2364_vm8, 1.0, %v6177_v3 }
 0x13b   :  { %5018 = vmatprep.subr.bf16.mxu1 %v6177_v3 }
 0x13c   :  { %4897 = vmatmul.mubr.msk.bf16.gmra.mrb[52].mxu1 %vm375_vm4, %v6914_v37  ;;  %4979 = vmatmul.mubr.msk.bf16.gmra.mrb[48].mxu0 %vm375_vm4, %v6883_v27  ;;  %v7101_v12 = vpop.permute.xlu0 %2266  ;;  %v7103_v13 = vpop.permute.xlu1 %1172 }
 0x13d   :  { %4900 = vmatprep.mubr.msk.bf16.mxu1 %vm6178_vm0, %v6177_v3  ;;  %4982 = vmatprep.mubr.msk.bf16.mxu0 %vm6178_vm0, %v6177_v3  ;;  %vm1263_vm9 = vcmp.eq.s32.totalorder %v7103_v13, %v6508_v20 }
 0x13e   :  { %5019 = vmatpush3.bf16.msra.mxu1 %v6929_v38  ;;  %v7160_v38 = vpack.c.bf16 %v4284_v30, %v4283_v54  ;;  %v6014_v54 = vld [vmem:[%s8578_s1 + $0x30] ss:$0 sps:$4 sm:$0xff]   ;;  %v4294_v13 = vsel %vm1263_vm9, 1.0, %v6177_v3 }
 0x13f   :  { %5096 = vmatprep.subr.bf16.mxu1 %v6177_v3  ;;  %v1737_v7 = vsel %vm433_vm1, %v6014_v54, 0 }
 0x140   :  { %v7105_v15 = vpop.permute.xlu0 %1169  ;;  %v7115_v16 = vpop.permute.xlu1 %2275 }
 0x141   :  { %vm2366_vm11 = vcmp.eq.s32.totalorder %v7115_v16, %v6508_v20 }
 0x144   :  { %4901 = vmatmul.mubr.msk.bf16.gmra.mrb[56].mxu1 %vm375_vm4, %v6935_v63  ;;  %4983 = vmatmul.mubr.msk.bf16.gmra.mrb[52].mxu0 %vm375_vm4, %v6914_v37  ;;  %v7117_v17 = vpop.permute.xlu0 %2272  ;;  %v7127_v21 = vpop.permute.xlu1 %1178  ;;  %v6008_v37 = vld [vmem:[%s8578_s1] sm:$0xff]  }
 0x145   :  { %4904 = vmatprep.mubr.msk.bf16.mxu1 %vm6178_vm0, %v6177_v3  ;;  %4986 = vmatprep.mubr.msk.bf16.mxu0 %vm6178_vm0, %v6177_v3  ;;  %vm2365_vm12 = vcmp.eq.s32.totalorder %v7117_v17, %v6508_v20  ;;  %vm1265_vm13 = vcmp.eq.s32.totalorder %v7127_v21, %v6508_v20  ;;  %v4436_v17 = vsel %vm2366_vm11, 1.0, %v6177_v3 }
 0x146   :  { %v4435_v21 = vsel %vm2365_vm12, 1.0, %v6177_v3 }
 0x148   :  { %v7131_v44 = vpop.permute.xlu0 %1175  ;;  %v7143_v28 = vpop.permute.xlu1 %2281 }
 0x149   :  { %vm1264_vm14 = vcmp.eq.s32.totalorder %v7131_v44, %v6508_v20  ;;  %v4296_v44 = vsel %vm1265_vm13, 1.0, %v6177_v3  ;;  %vm2368_vm15 = vcmp.eq.s32.totalorder %v7143_v28, %v6508_v20 }
 0x14a   :  { %v4438_v28 = vsel %vm2368_vm15, 1.0, %v6177_v3 }
 0x14c   :  { %4905 = vmatmul.mubr.msk.bf16.gmra.mrb[60].mxu1 %vm375_vm4, %v6949_v47  ;;  %4987 = vmatmul.mubr.msk.bf16.gmra.mrb[56].mxu0 %vm375_vm4, %v6935_v63  ;;  %v7149_v29 = vpop.permute.xlu0 %2278  ;;  %v7164_v40 = vpop.permute.xlu1 %1184  ;;  %v4426_v63 = vsel %vm2356_vm5, 1.0, %v6177_v3  ;;  %vm2361_vm5 = vcmp.eq.s32.totalorder %v7077_v33, %v6508_v20  ;;  %v4432_v33 = vsel %vm2362_vm2, 1.0, %v6177_v3 }
 0x14d   :  { %4908 = vmatprep.mubr.msk.bf16.mxu1 %vm6178_vm0, %v6177_v3  ;;  %4990 = vmatprep.mubr.msk.bf16.mxu0 %vm6178_vm0, %v6177_v3  ;;  %v7196_v49 = vpack.c.bf16 %v4426_v63, %v4425_v43  ;;  %v4431_v9 = vsel %vm2361_vm5, 1.0, %v6177_v3  ;;  %vm2367_vm2 = vcmp.eq.s32.totalorder %v7149_v29, %v6508_v20  ;;  %vm1267_vm5 = vcmp.eq.s32.totalorder %v7164_v40, %v6508_v20 }
 0x14e   :  { %v4437_v29 = vsel %vm2367_vm2, 1.0, %v6177_v3  ;;  %v4298_v40 = vsel %vm1267_vm5, 1.0, %v6177_v3 }
 0x150   :  { %v7172_v14 = vpop.permute.xlu0 %1181  ;;  %v7192_v8 = vpop.permute.xlu1 %2287 }
 0x151   :  { %vm1266_vm6 = vcmp.eq.s32.totalorder %v7172_v14, %v6508_v20  ;;  %vm2370_vm7 = vcmp.eq.s32.totalorder %v7192_v8, %v6508_v20 }
 0x152   :  { %v4297_v14 = vsel %vm1266_vm6, 1.0, %v6177_v3  ;;  %v4440_v8 = vsel %vm2370_vm7, 1.0, %v6177_v3 }
 0x154   :  { %4909 = vmatmul.mubr.msk.bf16.gmra.mrb[64].mxu1 %vm375_vm4, %v6963_v52  ;;  %4991 = vmatmul.mubr.msk.bf16.gmra.mrb[60].mxu0 %vm375_vm4, %v6949_v47  ;;  %v7227_v56 = vpop.permute.xlu1 %1190 }
 0x155   :  { %4912 = vmatprep.mubr.msk.bf16.mxu1 %vm6178_vm0, %v6177_v3  ;;  %4994 = vmatprep.mubr.msk.bf16.mxu0 %vm6178_vm0, %v6177_v3 }
 0x158   :  { %v7259_v58 = vpop.permute.xlu1 %2293 }
 0x15c   :  { %4913 = vmatmul.mubr.msk.bf16.gmra.mrb[68].mxu1 %vm375_vm4, %v6977_v26  ;;  %4995 = vmatmul.mubr.msk.bf16.gmra.mrb[64].mxu0 %vm375_vm4, %v6963_v52  ;;  %v7200_v52 = vpop.permute.xlu0 %2284  ;;  %v7290_v63 = vpop.permute.xlu1 %1196 }
 0x15d   :  { %4916 = vmatprep.mubr.msk.bf16.mxu1 %vm6178_vm0, %v6177_v3  ;;  %4998 = vmatprep.mubr.msk.bf16.mxu0 %vm6178_vm0, %v6177_v3  ;;  %vm2369_vm8 = vcmp.eq.s32.totalorder %v7200_v52, %v6508_v20  ;;  %vm1271_vm12 = vcmp.eq.s32.totalorder %v7290_v63, %v6508_v20 }
 0x15e   :  { %v4439_v52 = vsel %vm2369_vm8, 1.0, %v6177_v3 }
 0x15f   :  { %v7129_v23 = vpop.f32.mrb[0].mxu1 }
 0x160   :  { %v4760_v24 = vpop.f32.mrb[1].mxu1 }
 0x161   :  { %v7133_v25 = vpop.f32.mrb[2].mxu1 }
 0x162   :  { %v4761_v27 = vpop.f32.mrb[3].mxu1 }
 0x163   :  { %v6013_v27 = vld [vmem:[%s8578_s1 + $0x28] sm:$0xff]  }
 0x164   :  { %4917 = vmatmul.mubr.msk.bf16.gmra.mrb[72].mxu1 %vm375_vm4, %v6995_v60  ;;  %4999 = vmatmul.mubr.msk.bf16.gmra.mrb[68].mxu0 %vm375_vm4, %v6977_v26  ;;  %v4288_v26 = vsel %vm1257_vm10, 1.0, %v6177_v3  ;;  %vm1262_vm10 = vcmp.eq.s32.totalorder %v7105_v15, %v6508_v20 }
 0x165   :  { %5002 = vmatprep.mubr.msk.bf16.mxu0 %vm6178_vm0, %v6177_v3  ;;  %5020 = vmatprep.mubr.msk.bf16.mxu1 %vm6178_vm0, %v6177_v3  ;;  %v7241_v32 = vpack.c.bf16 %v4288_v26, %v4287_v31  ;;  %v4293_v15 = vsel %vm1262_vm10, 1.0, %v6177_v3  ;;  %vm2372_vm10 = vcmp.eq.s32.totalorder %v7259_v58, %v6508_v20 }
 0x167   :  { %v7153_v34 = vpop.f32.mrb[4].mxu1 }
 0x168   :  { %v4764_v35 = vpop.f32.mrb[5].mxu1 }
 0x169   :  { %v7155_v36 = vpop.f32.mrb[6].mxu1 }
 0x16a   :  { %v4765_v39 = vpop.f32.mrb[7].mxu1 }
 0x16b   :  { %v7286_v39 = vpack.c.bf16 %v4290_v5, %v4289_v6  ;;  %v7361_v5 = vpack.c.bf16 %v4294_v13, %v4293_v15  ;;  %v7425_v15 = vpack.c.bf16 %v4438_v28, %v4437_v29  ;;  %v7459_v28 = vpack.c.bf16 %v4440_v8, %v4439_v52 }
 0x16c   :  { %5003 = vmatmul.mubr.msk.bf16.gmra.mrb[72].mxu0 %vm375_vm4, %v6995_v60  ;;  %5021 = vmatmul.mubr.msk.bf16.vlgmr.msra.gmra.mrb[76].mxu1 %vm1451_vm3, %v7160_v38  ;;  %vm2358_vm4 = vcmp.eq.s32.totalorder %v7023_v50, %v6508_v20  ;;  %v7234_v60 = vpop.permute.xlu0 %1187 }
 0x16d   :  { %5097 = vmatpush3.bf16.msra.mxu1 %v6008_v37  ;;  %5024 = vmatprep.mubr.msk.bf16.mxu1 %vm6178_vm0, %v6177_v3  ;;  %v4428_v53 = vsel %vm2358_vm4, 1.0, %v6177_v3  ;;  %vm2363_vm4 = vcmp.eq.s32.totalorder %v7101_v12, %v6508_v20  ;;  %vm1268_vm9 = vcmp.eq.s32.totalorder %v7234_v60, %v6508_v20  ;;  %8593 = vst [vmem:[#allocation15_spill] sm:$0xff] %v7459_v28 }
 0x16e   :  { %5290 = vmatprep.mubr.msk.bf16.mxu0 %vm6178_vm0, %v6177_v3  ;;  %5098 = vmatprep.subr.bf16.mxu1 %v6177_v3  ;;  %v7239_v62 = vpack.c.bf16 %v4428_v53, %v4427_v55  ;;  %v7323_v53 = vpack.c.bf16 %v4432_v33, %v4431_v9  ;;  %v7325_v55 = vpack.c.bf16 %v4292_v10, %v4291_v45  ;;  %v4433_v12 = vsel %vm2363_vm4, 1.0, %v6177_v3 }
 0x16f   :  { %v7190_v46 = vpop.f32.mrb[8].mxu1  ;;  %v7391_v33 = vpack.c.bf16 %v4436_v17, %v4435_v21  ;;  %vm1269_vm4 = vcmp.eq.s32.totalorder %v7227_v56, %v6508_v20  ;;  %v4299_v60 = vsel %vm1268_vm9, 1.0, %v6177_v3 }
 0x170   :  { %v4768_v47 = vpop.f32.mrb[9].mxu1  ;;  %v7265_v1 = vpop.permute.xlu0 %2290  ;;  %v4300_v56 = vsel %vm1269_vm4, 1.0, %v6177_v3 }
 0x171   :  { %v7194_v48 = vpop.f32.mrb[10].mxu1  ;;  %5099 = vmatpush3.bf16.msra.mxu1 %v6009_v42  ;;  %v7461_v29 = vpack.c.bf16 %v4300_v56, %v4299_v60  ;;  %vm2371_vm11 = vcmp.eq.s32.totalorder %v7265_v1, %v6508_v20  ;;  %v4442_v1 = vsel %vm2372_vm10, 1.0, %v6177_v3 }
 0x172   :  { %v4769_v19 = vpop.f32.mrb[11].mxu1  ;;  %5100 = vmatprep.subr.bf16.mxu1 %v6177_v3  ;;  %v4441_v63 = vsel %vm2371_vm11, 1.0, %v6177_v3 }
 0x173   :  { %v7319_v19 = vpop.permute.xlu1 %2299  ;;  %8594 = vst [vmem:[#allocation16_spill] sm:$0xff] %v7461_v29  ;;  %v7488_v60 = vpack.c.bf16 %v4442_v1, %v4441_v63 }
 0x174   :  { %5025 = vmatmul.mubr.msk.bf16.gmra.mrb[80].mxu1 %vm1451_vm3, %v7198_v51  ;;  %5291 = vmatmul.mubr.msk.bf16.vlgmr.msra.gmra.mrb[76].mxu0 %vm1451_vm3, %v7196_v49  ;;  %v7299_v43 = vpop.permute.xlu0 %1193 }
 0x175   :  { %5367 = vmatpush3.bf16.msra.mxu0 %v6008_v37  ;;  %5028 = vmatprep.mubr.msk.bf16.mxu1 %vm6178_vm0, %v6177_v3  ;;  %v7284_v37 = vpack.c.bf16 %v4430_v2, %v4429_v4  ;;  %v7359_v4 = vpack.c.bf16 %v4434_v11, %v4433_v12  ;;  %vm1270_vm13 = vcmp.eq.s32.totalorder %v7299_v43, %v6508_v20  ;;  %v4302_v43 = vsel %vm1271_vm12, 1.0, %v6177_v3 }
 0x176   :  { %5294 = vmatprep.mubr.msk.bf16.mxu0 %vm6178_vm0, %v6177_v3  ;;  %5368 = vmatprep.subr.bf16.mxu0 %v6177_v3 }
 0x177   :  { %v7229_v57 = vpop.f32.mrb[12].mxu1  ;;  %5101 = vmatpush3.bf16.msra.mxu1 %v6010_v22 }
 0x178   :  { %v4772_v41 = vpop.f32.mrb[13].mxu1  ;;  %5102 = vmatprep.subr.bf16.mxu1 %v6177_v3  ;;  %v7327_v26 = vpop.permute.xlu0 %2296 }
 0x179   :  { %v7237_v61 = vpop.f32.mrb[14].mxu1  ;;  %5369 = vmatpush3.bf16.msra.mxu0 %v6009_v42  ;;  %vm2373_vm15 = vcmp.eq.s32.totalorder %v7327_v26, %v6508_v20 }
 0x17a   :  { %v4773_v50 = vpop.f32.mrb[15].mxu1  ;;  %5370 = vmatprep.subr.bf16.mxu0 %v6177_v3 }
 0x17b   :  { %5103 = vmatpush3.bf16.msra.mxu1 %v6011_v59 }
 0x17c   :  { %5029 = vmatmul.mubr.msk.bf16.gmra.mrb[84].mxu1 %vm1451_vm3, %v7241_v32  ;;  %5295 = vmatmul.mubr.msk.bf16.gmra.mrb[80].mxu0 %vm1451_vm3, %v7239_v62  ;;  %v7355_v50 = vpop.permute.xlu0 %1199 }
 0x17d   :  { %5032 = vmatprep.mubr.msk.bf16.mxu1 %vm6178_vm0, %v6177_v3  ;;  %5298 = vmatprep.mubr.msk.bf16.mxu0 %vm6178_vm0, %v6177_v3  ;;  %vm1272_vm5 = vcmp.eq.s32.totalorder %v7355_v50, %v6508_v20 }
 0x17e   :  { %5371 = vmatpush3.bf16.msra.mxu0 %v6010_v22  ;;  %5104 = vmatprep.subr.bf16.mxu1 %v6177_v3 }
 0x17f   :  { %v7272_v24 = vpop.f32.mrb[16].mxu1  ;;  %5372 = vmatprep.subr.bf16.mxu0 %v6177_v3  ;;  %5105 = vmatpush3.bf16.msra.mxu1 %v6012_v0 }
 0x180   :  { %v4776_v30 = vpop.f32.mrb[17].mxu1  ;;  %5106 = vmatprep.subr.bf16.mxu1 %v6177_v3  ;;  %v7381_v16 = vpop.permute.xlu0 %2302 }
 0x181   :  { %v7282_v35 = vpop.f32.mrb[18].mxu1  ;;  %v4295_v30 = vsel %vm1264_vm14, 1.0, %v6177_v3  ;;  %vm2374_vm14 = vcmp.eq.s32.totalorder %v7319_v19, %v6508_v20  ;;  %v4443_v19 = vsel %vm2373_vm15, 1.0, %v6177_v3  ;;  %vm2375_vm7 = vcmp.eq.s32.totalorder %v7381_v16, %v6508_v20 }
 0x182   :  { %v4777_v42 = vpop.f32.mrb[19].mxu1  ;;  %5373 = vmatpush3.bf16.msra.mxu0 %v6011_v59  ;;  %v7350_v59 = vpop.permute.xlu1 %1202  ;;  %v7393_v9 = vpack.c.bf16 %v4296_v44, %v4295_v30 }
 0x183   :  { %5374 = vmatprep.subr.bf16.mxu0 %v6177_v3  ;;  %5107 = vmatpush3.bf16.msra.mxu1 %v6013_v27  ;;  %vm1273_vm2 = vcmp.eq.s32.totalorder %v7350_v59, %v6508_v20  ;;  %v4303_v59 = vsel %vm1272_vm5, 1.0, %v6177_v3 }
 0x184   :  { %5033 = vmatmul.mubr.msk.bf16.gmra.mrb[88].mxu1 %vm1451_vm3, %v7286_v39  ;;  %5299 = vmatmul.mubr.msk.bf16.gmra.mrb[84].mxu0 %vm1451_vm3, %v7284_v37  ;;  %v4304_v26 = vsel %vm1273_vm2, 1.0, %v6177_v3 }
 0x185   :  { %5036 = vmatprep.mubr.msk.bf16.mxu1 %vm6178_vm0, %v6177_v3  ;;  %5302 = vmatprep.mubr.msk.bf16.mxu0 %vm6178_vm0, %v6177_v3 }
 0x186   :  { %5375 = vmatpush3.bf16.msra.mxu0 %v6012_v0  ;;  %5108 = vmatprep.subr.bf16.mxu1 %v6177_v3 }
 0x187   :  { %v7315_v18 = vpop.f32.mrb[20].mxu1  ;;  %5376 = vmatprep.subr.bf16.mxu0 %v6177_v3  ;;  %5109 = vmatpush3.bf16.msra.mxu1 %v1737_v7 }
 0x188   :  { %v4780_v47 = vpop.f32.mrb[21].mxu1  ;;  %5186 = vmatprep.subr.bf16.mxu1 %v6177_v3 }
 0x189   :  { %v7321_v22 = vpop.f32.mrb[22].mxu1  ;;  %v7405_v47 = vpop.permute.xlu0 %1205 }
 0x18a   :  { %v4781_v31 = vpop.f32.mrb[23].mxu1  ;;  %5377 = vmatpush3.bf16.msra.mxu0 %v6013_v27  ;;  %v7375_v27 = vpop.permute.xlu1 %2305  ;;  %vm1274_vm4 = vcmp.eq.s32.totalorder %v7405_v47, %v6508_v20 }
 0x18b   :  { %5378 = vmatprep.subr.bf16.mxu0 %v6177_v3  ;;  %vm2376_vm6 = vcmp.eq.s32.totalorder %v7375_v27, %v6508_v20  ;;  %v4305_v16 = vsel %vm1274_vm4, 1.0, %v6177_v3 }
 0x18c   :  { %5037 = vmatmul.mubr.msk.bf16.gmra.mrb[92].mxu1 %vm1451_vm3, %v7325_v55  ;;  %5303 = vmatmul.mubr.msk.bf16.gmra.mrb[88].mxu0 %vm1451_vm3, %v7323_v53 }
 0x18d   :  { %5040 = vmatprep.mubr.msk.bf16.mxu1 %vm6178_vm0, %v6177_v3  ;;  %5306 = vmatprep.mubr.msk.bf16.mxu0 %vm6178_vm0, %v6177_v3 }
 0x18e   :  { %5379 = vmatpush3.bf16.msra.mxu0 %v1737_v7  ;;  %v7397_v45 = vpop.permute.xlu1 %1208 }
 0x18f   :  { %v7352_v41 = vpop.f32.mrb[24].mxu1  ;;  %5456 = vmatprep.subr.bf16.mxu0 %v6177_v3  ;;  %vm1275_vm8 = vcmp.eq.s32.totalorder %v7397_v45, %v6508_v20 }
 0x190   :  { %v4784_v0 = vpop.f32.mrb[25].mxu1  ;;  %v4306_v27 = vsel %vm1275_vm8, 1.0, %v6177_v3 }
 0x191   :  { %v7357_v2 = vpop.f32.mrb[26].mxu1  ;;  %v7427_v0 = vpack.c.bf16 %v4298_v40, %v4297_v14 }
 0x192   :  { %v4785_v6 = vpop.f32.mrb[27].mxu1  ;;  %v7421_v12 = vpop.permute.xlu1 %2311 }
 0x193   :  { %v7429_v6 = vpop.permute.xlu0 %2308  ;;  %vm2378_vm9 = vcmp.eq.s32.totalorder %v7421_v12, %v6508_v20 }
 0x194   :  { %5041 = vmatmul.mubr.msk.bf16.gmra.mrb[96].mxu1 %vm1451_vm3, %v7361_v5  ;;  %5307 = vmatmul.mubr.msk.bf16.gmra.mrb[92].mxu0 %vm1451_vm3, %v7359_v4  ;;  %vm2377_vm10 = vcmp.eq.s32.totalorder %v7429_v6, %v6508_v20  ;;  %v4448_v12 = vsel %vm2378_vm9, 1.0, %v6177_v3 }
 0x195   :  { %5044 = vmatprep.mubr.msk.bf16.mxu1 %vm6178_vm0, %v6177_v3  ;;  %5310 = vmatprep.mubr.msk.bf16.mxu0 %vm6178_vm0, %v6177_v3  ;;  %v4447_v6 = vsel %vm2377_vm10, 1.0, %v6177_v3 }
 0x196   :  { %v7451_v21 = vpop.permute.xlu1 %1214 }
 0x197   :  { %v7387_v54 = vpop.f32.mrb[28].mxu1  ;;  %v7455_v30 = vpop.permute.xlu0 %1211  ;;  %vm1277_vm11 = vcmp.eq.s32.totalorder %v7451_v21, %v6508_v20 }
 0x198   :  { %v4788_v42 = vpop.f32.mrb[29].mxu1  ;;  %vm1276_vm12 = vcmp.eq.s32.totalorder %v7455_v30, %v6508_v20  ;;  %v4308_v21 = vsel %vm1277_vm11, 1.0, %v6177_v3 }
 0x199   :  { %v7389_v7 = vpop.f32.mrb[30].mxu1  ;;  %v4307_v30 = vsel %vm1276_vm12, 1.0, %v6177_v3 }
 0x19a   :  { %v4789_v10 = vpop.f32.mrb[31].mxu1  ;;  %v7475_v14 = vpop.permute.xlu1 %2317 }
 0x19b   :  { %v7481_v58 = vpop.permute.xlu0 %2314 }
 0x19c   :  { %5045 = vmatmul.mubr.msk.bf16.gmra.mrb[100].mxu1 %vm1451_vm3, %v7393_v9  ;;  %5311 = vmatmul.mubr.msk.bf16.gmra.mrb[96].mxu0 %vm1451_vm3, %v7391_v33 }
 0x19d   :  { %5048 = vmatprep.mubr.msk.bf16.mxu1 %vm6178_vm0, %v6177_v3  ;;  %5314 = vmatprep.mubr.msk.bf16.mxu0 %vm6178_vm0, %v6177_v3 }
 0x19f   :  { %v7419_v31 = vpop.f32.mrb[32].mxu1 }
 0x1a0   :  { %v4792_v11 = vpop.f32.mrb[33].mxu1 }
 0x1a1   :  { %v7423_v13 = vpop.f32.mrb[34].mxu1  ;;  %v4301_v11 = vsel %vm1270_vm13, 1.0, %v6177_v3  ;;  %vm2380_vm13 = vcmp.eq.s32.totalorder %v7475_v14, %v6508_v20 }
 0x1a2   :  { %v4793_v17 = vpop.f32.mrb[35].mxu1 }
 0x1a4   :  { %5049 = vmatmul.mubr.msk.bf16.gmra.mrb[104].mxu1 %vm1451_vm3, %v7427_v0  ;;  %5315 = vmatmul.mubr.msk.bf16.gmra.mrb[100].mxu0 %vm1451_vm3, %v7425_v15 }
 0x1a5   :  { %5052 = vmatprep.mubr.msk.bf16.mxu1 %vm6178_vm0, %v6177_v3  ;;  %5318 = vmatprep.mubr.msk.bf16.mxu0 %vm6178_vm0, %v6177_v3 }
 0x1a7   :  { %v7453_v44 = vpop.f32.mrb[36].mxu1 }
 0x1a8   :  { %v4796_v42 = vpop.f32.mrb[37].mxu1 }
 0x1a9   :  { %v7457_v10 = vpop.f32.mrb[38].mxu1  ;;  %v7490_v42 = vpack.c.bf16 %v4302_v43, %v4301_v11 }
 0x1aa   :  { %v4797_v40 = vpop.f32.mrb[39].mxu1 }
 0x1ac   :  { %5053 = vmatmul.mubr.msk.bf16.gmra.mrb[108].mxu1 %vm1451_vm3, %v7461_v29  ;;  %5319 = vmatmul.mubr.msk.bf16.gmra.mrb[104].mxu0 %vm1451_vm3, %v7459_v28  ;;  %v7495_v29 = vpop.permute.xlu1 %1220 }
 0x1ad   :  { %5056 = vmatprep.mubr.msk.bf16.mxu1 %vm6178_vm0, %v6177_v3  ;;  %5322 = vmatprep.mubr.msk.bf16.mxu0 %vm6178_vm0, %v6177_v3  ;;  %vm1279_vm15 = vcmp.eq.s32.totalorder %v7495_v29, %v6508_v20 }
 0x1ae   :  { %v4310_v14 = vsel %vm1279_vm15, 1.0, %v6177_v3 }
 0x1af   :  { %v911_v17 = vpop.f32.mrb[0].mxu0 }
 0x1b0   :  { %v5556_v8 = vadd.f32 %v911_v17, %v7129_v23  ;;  %v4932_v52 = vpop.f32.mrb[1].mxu0  ;;  %v7503_v23 = vpop.permute.xlu0 %1217  ;;  %v7522_v17 = vpack.c.bf16 %v4304_v26, %v4303_v59 }
 0x1b1   :  { %v914_v56 = vpop.f32.mrb[2].mxu0  ;;  %v7518_v63 = vpop.permute.xlu1 %2323  ;;  %vm1278_vm2 = vcmp.eq.s32.totalorder %v7503_v23, %v6508_v20 }
 0x1b2   :  { %3138 = vst [vmem:[#allocation4] sm:$0xff] %v5556_v8  ;;  %v5557_v40 = vadd.f32 %v914_v56, %v7133_v25  ;;  %v4933_v28 = vpop.f32.mrb[3].mxu0  ;;  %v4444_v25 = vsel %vm2374_vm14, 1.0, %v6177_v3  ;;  %vm2379_vm14 = vcmp.eq.s32.totalorder %v7481_v58, %v6508_v20  ;;  %v4309_v58 = vsel %vm1278_vm2, 1.0, %v6177_v3 }
 0x1b3   :  { %v7520_v11 = vpack.c.bf16 %v4444_v25, %v4443_v19  ;;  %v4449_v29 = vsel %vm2379_vm14, 1.0, %v6177_v3  ;;  %vm2382_vm5 = vcmp.eq.s32.totalorder %v7518_v63, %v6508_v20 }
 0x1b4   :  { %3139 = vst [vmem:[#allocation4 + $0x8] sm:$0xff] %v5557_v40  ;;  %5057 = vmatmul.mubr.msk.bf16.gmra.mrb[112].mxu1 %vm1451_vm3, %v7490_v42  ;;  %5323 = vmatmul.mubr.msk.bf16.gmra.mrb[108].mxu0 %vm1451_vm3, %v7488_v60  ;;  %v7524_v8 = vpop.permute.xlu0 %2320 }
 0x1b5   :  { %5060 = vmatprep.mubr.msk.bf16.mxu1 %vm6178_vm0, %v6177_v3  ;;  %5326 = vmatprep.mubr.msk.bf16.mxu0 %vm6178_vm0, %v6177_v3  ;;  %v7547_v45 = vpop.permute.xlu1 %1226 }
 0x1b7   :  { %v919_v50 = vpop.f32.mrb[4].mxu0 }
 0x1b8   :  { %v5558_v28 = vadd.f32 %v919_v50, %v7153_v34  ;;  %v4936_v1 = vpop.f32.mrb[5].mxu0  ;;  %v4446_v34 = vsel %vm2376_vm6, 1.0, %v6177_v3  ;;  %v7549_v40 = vpop.permute.xlu0 %1223  ;;  %v7554_v50 = vpack.c.bf16 %v4306_v27, %v4305_v16  ;;  %v7584_v27 = vpack.c.bf16 %v4308_v21, %v4307_v30 }
 0x1b9   :  { %v922_v43 = vpop.f32.mrb[6].mxu0  ;;  %vm2381_vm6 = vcmp.eq.s32.totalorder %v7524_v8, %v6508_v20  ;;  %vm1280_vm8 = vcmp.eq.s32.totalorder %v7549_v40, %v6508_v20 }
 0x1ba   :  { %3140 = vst [vmem:[#allocation4 + $0x10] sm:$0xff] %v5558_v28  ;;  %v5559_v52 = vadd.f32 %v922_v43, %v7155_v36  ;;  %v4937_v56 = vpop.f32.mrb[7].mxu0  ;;  %v4445_v36 = vsel %vm2375_vm7, 1.0, %v6177_v3  ;;  %vm1281_vm7 = vcmp.eq.s32.totalorder %v7547_v45, %v6508_v20  ;;  %v4311_v8 = vsel %vm1280_vm8, 1.0, %v6177_v3 }
 0x1bb   :  { %v7552_v59 = vpack.c.bf16 %v4446_v34, %v4445_v36  ;;  %v7582_v36 = vpack.c.bf16 %v4448_v12, %v4447_v6  ;;  %v7614_v6 = vpack.c.bf16 %v4310_v14, %v4309_v58  ;;  %v4312_v63 = vsel %vm1281_vm7, 1.0, %v6177_v3 }
 0x1bc   :  { %3141 = vst [vmem:[#allocation4 + $0x18] sm:$0xff] %v5559_v52  ;;  %5061 = vmatmul.mubr.msk.bf16.gmra.mrb[116].mxu1 %vm1451_vm3, %v7522_v17  ;;  %5327 = vmatmul.mubr.msk.bf16.gmra.mrb[112].mxu0 %vm1451_vm3, %v7520_v11 }
 0x1bd   :  { %5064 = vmatprep.mubr.msk.bf16.mxu1 %vm6178_vm0, %v6177_v3  ;;  %5330 = vmatprep.mubr.msk.bf16.mxu0 %vm6178_vm0, %v6177_v3 }
 0x1bf   :  { %v927_v47 = vpop.f32.mrb[8].mxu0 }
 0x1c0   :  { %v5560_v25 = vadd.f32 %v927_v47, %v7190_v46  ;;  %v4940_v19 = vpop.f32.mrb[9].mxu0  ;;  %v7569_v46 = vpop.permute.xlu1 %2329 }
 0x1c1   :  { %v930_v26 = vpop.f32.mrb[10].mxu0  ;;  %vm2384_vm4 = vcmp.eq.s32.totalorder %v7569_v46, %v6508_v20 }
 0x1c2   :  { %3142 = vst [vmem:[#allocation4 + $0x20] sm:$0xff] %v5560_v25  ;;  %v5561_v28 = vadd.f32 %v930_v26, %v7194_v48  ;;  %v4941_v1 = vpop.f32.mrb[11].mxu0  ;;  %v7575_v48 = vpop.permute.xlu0 %2326  ;;  %v4454_v46 = vsel %vm2384_vm4, 1.0, %v6177_v3 }
 0x1c3   :  { %vm2383_vm9 = vcmp.eq.s32.totalorder %v7575_v48, %v6508_v20 }
 0x1c4   :  { %3143 = vst [vmem:[#allocation4 + $0x28] sm:$0xff] %v5561_v28  ;;  %5065 = vmatmul.mubr.msk.bf16.gmra.mrb[120].mxu1 %vm1451_vm3, %v7554_v50  ;;  %5331 = vmatmul.mubr.msk.bf16.gmra.mrb[116].mxu0 %vm1451_vm3, %v7552_v59  ;;  %v7589_v25 = vpop.permute.xlu1 %1232  ;;  %v4453_v48 = vsel %vm2383_vm9, 1.0, %v6177_v3 }
 0x1c5   :  { %5068 = vmatprep.mubr.msk.bf16.mxu1 %vm6178_vm0, %v6177_v3  ;;  %5334 = vmatprep.mubr.msk.bf16.mxu0 %vm6178_vm0, %v6177_v3  ;;  %vm1283_vm10 = vcmp.eq.s32.totalorder %v7589_v25, %v6508_v20 }
 0x1c6   :  { %v4314_v25 = vsel %vm1283_vm10, 1.0, %v6177_v3 }
 0x1c7   :  { %v935_v43 = vpop.f32.mrb[12].mxu0 }
 0x1c8   :  { %v5562_v52 = vadd.f32 %v935_v43, %v7229_v57  ;;  %v4944_v56 = vpop.f32.mrb[13].mxu0  ;;  %v1230_v57 = vpop.permute.xlu0 %1229 }
 0x1c9   :  { %v938_v34 = vpop.f32.mrb[14].mxu0  ;;  %v7610_v28 = vpop.permute.xlu1 %2335  ;;  %vm1282_vm11 = vcmp.eq.s32.totalorder %v1230_v57, %v6508_v20 }
 0x1ca   :  { %3144 = vst [vmem:[#allocation4 + $0x30] sm:$0xff] %v5562_v52  ;;  %v5563_v16 = vadd.f32 %v938_v34, %v7237_v61  ;;  %v4945_v47 = vpop.f32.mrb[15].mxu0  ;;  %v4450_v61 = vsel %vm2380_vm13, 1.0, %v6177_v3  ;;  %v4313_v57 = vsel %vm1282_vm11, 1.0, %v6177_v3  ;;  %vm2386_vm12 = vcmp.eq.s32.totalorder %v7610_v28, %v6508_v20 }
 0x1cb   :  { %v7612_v12 = vpack.c.bf16 %v4450_v61, %v4449_v29  ;;  %v7642_v61 = vpack.c.bf16 %v4312_v63, %v4311_v8 }
 0x1cc   :  { %3145 = vst [vmem:[#allocation4 + $0x38] sm:$0xff] %v5563_v16  ;;  %5069 = vmatmul.mubr.msk.bf16.gmra.mrb[124].mxu1 %vm1451_vm3, %v7584_v27  ;;  %5335 = vmatmul.mubr.msk.bf16.gmra.mrb[120].mxu0 %vm1451_vm3, %v7582_v36  ;;  %v7616_v21 = vpop.permute.xlu0 %2332 }
 0x1cd   :  { %5072 = vmatprep.mubr.msk.bf16.mxu1 %vm6178_vm0, %v6177_v3  ;;  %5338 = vmatprep.mubr.msk.bf16.mxu0 %vm6178_vm0, %v6177_v3  ;;  %v1239_v45 = vpop.permute.xlu1 %1238  ;;  %vm2385_vm13 = vcmp.eq.s32.totalorder %v7616_v21, %v6508_v20 }
 0x1ce   :  { %vm1285_vm14 = vcmp.eq.s32.totalorder %v1239_v45, %v6508_v20  ;;  %v4455_v28 = vsel %vm2385_vm13, 1.0, %v6177_v3 }
 0x1cf   :  { %v943_v23 = vpop.f32.mrb[16].mxu0  ;;  %v4316_v21 = vsel %vm1285_vm14, 1.0, %v6177_v3 }
 0x1d0   :  { %v5564_v19 = vadd.f32 %v943_v23, %v7272_v24  ;;  %v4948_v26 = vpop.f32.mrb[17].mxu0  ;;  %v4452_v24 = vsel %vm2382_vm5, 1.0, %v6177_v3  ;;  %v1236_v52 = vpop.permute.xlu0 %1235 }
 0x1d1   :  { %v946_v1 = vpop.f32.mrb[18].mxu0  ;;  %vm1284_vm15 = vcmp.eq.s32.totalorder %v1236_v52, %v6508_v20 }
 0x1d2   :  { %3146 = vst [vmem:[#allocation4 + $0x40] sm:$0xff] %v5564_v19  ;;  %v5565_v30 = vadd.f32 %v946_v1, %v7282_v35  ;;  %v4949_v43 = vpop.f32.mrb[19].mxu0  ;;  %v4451_v35 = vsel %vm2381_vm6, 1.0, %v6177_v3  ;;  %v7665_v1 = vpack.c.bf16 %v4454_v46, %v4453_v48  ;;  %v4315_v63 = vsel %vm1284_vm15, 1.0, %v6177_v3 }
 0x1d3   :  { %v7640_v47 = vpack.c.bf16 %v4452_v24, %v4451_v35 }
 0x1d4   :  { %3147 = vst [vmem:[#allocation4 + $0x48] sm:$0xff] %v5565_v30  ;;  %5073 = vmatmul.mubr.msk.bf16.gmra.mrb[128].mxu1 %vm1451_vm3, %v7614_v6  ;;  %5339 = vmatmul.mubr.msk.bf16.gmra.mrb[124].mxu0 %vm1451_vm3, %v7612_v12  ;;  %v7667_v30 = vpack.c.bf16 %v4314_v25, %v4313_v57 }
 0x1d5   :  { %5076 = vmatprep.mubr.msk.bf16.mxu1 %vm6178_vm0, %v6177_v3  ;;  %5342 = vmatprep.mubr.msk.bf16.mxu0 %vm6178_vm0, %v6177_v3 }
 0x1d7   :  { %v951_v40 = vpop.f32.mrb[20].mxu0 }
 0x1d8   :  { %v5566_v56 = vadd.f32 %v951_v40, %v7315_v18  ;;  %v4952_v34 = vpop.f32.mrb[21].mxu0  ;;  %v2342_v18 = vpop.permute.xlu1 %2341 }
 0x1d9   :  { %v954_v16 = vpop.f32.mrb[22].mxu0  ;;  %vm2388_vm2 = vcmp.eq.s32.totalorder %v2342_v18, %v6508_v20 }
 0x1da   :  { %3148 = vst [vmem:[#allocation4 + $0x50] sm:$0xff] %v5566_v56  ;;  %v5567_v29 = vadd.f32 %v954_v16, %v7321_v22  ;;  %v4953_v14 = vpop.f32.mrb[23].mxu0  ;;  %v2339_v22 = vpop.permute.xlu0 %2338  ;;  %v7691_v16 = vpack.c.bf16 %v4316_v21, %v4315_v63 }
 0x1db   :  { %vm2387_vm5 = vcmp.eq.s32.totalorder %v2339_v22, %v6508_v20 }
 0x1dc   :  { %3149 = vst [vmem:[#allocation4 + $0x58] sm:$0xff] %v5567_v29  ;;  %5077 = vmatmul.mubr.msk.bf16.gmra.mrb[132].mxu1 %vm1451_vm3, %v7642_v61  ;;  %5343 = vmatmul.mubr.msk.bf16.gmra.mrb[128].mxu0 %vm1451_vm3, %v7640_v47  ;;  %v1245_v35 = vpop.permute.xlu1 %1244 }
 0x1dd   :  { %5080 = vmatprep.mubr.msk.bf16.mxu1 %vm6178_vm0, %v6177_v3  ;;  %5346 = vmatprep.mubr.msk.bf16.mxu0 %vm6178_vm0, %v6177_v3  ;;  %vm1287_vm6 = vcmp.eq.s32.totalorder %v1245_v35, %v6508_v20 }
 0x1de   :  { %v4318_v18 = vsel %vm1287_vm6, 1.0, %v6177_v3 }
 0x1df   :  { %v959_v58 = vpop.f32.mrb[24].mxu0 }
 0x1e0   :  { %v5568_v23 = vadd.f32 %v959_v58, %v7352_v41  ;;  %v4956_v19 = vpop.f32.mrb[25].mxu0  ;;  %v1242_v41 = vpop.permute.xlu0 %1241 }
 0x1e1   :  { %v962_v26 = vpop.f32.mrb[26].mxu0  ;;  %v2348_v52 = vpop.permute.xlu1 %2347  ;;  %vm1286_vm7 = vcmp.eq.s32.totalorder %v1242_v41, %v6508_v20 }
 0x1e2   :  { %3150 = vst [vmem:[#allocation4 + $0x60] sm:$0xff] %v5568_v23  ;;  %v5569_v43 = vadd.f32 %v962_v26, %v7357_v2  ;;  %v4957_v24 = vpop.f32.mrb[27].mxu0  ;;  %v4456_v2 = vsel %vm2386_vm12, 1.0, %v6177_v3  ;;  %v4317_v22 = vsel %vm1286_vm7, 1.0, %v6177_v3  ;;  %vm2390_vm8 = vcmp.eq.s32.totalorder %v2348_v52, %v6508_v20 }
 0x1e3   :  { %v7689_v34 = vpack.c.bf16 %v4456_v2, %v4455_v28  ;;  %v4460_v41 = vsel %vm2390_vm8, 1.0, %v6177_v3 }
 0x1e4   :  { %3151 = vst [vmem:[#allocation4 + $0x68] sm:$0xff] %v5569_v43  ;;  %5081 = vmatmul.mubr.msk.bf16.gmra.mrb[136].mxu1 %vm1451_vm3, %v7667_v30  ;;  %5347 = vmatmul.mubr.msk.bf16.gmra.mrb[132].mxu0 %vm1451_vm3, %v7665_v1  ;;  %v2345_v29 = vpop.permute.xlu0 %2344  ;;  %v7713_v43 = vpack.c.bf16 %v4318_v18, %v4317_v22 }
 0x1e5   :  { %5084 = vmatprep.mubr.msk.bf16.mxu1 %vm6178_vm0, %v6177_v3  ;;  %5350 = vmatprep.mubr.msk.bf16.mxu0 %vm6178_vm0, %v6177_v3  ;;  %v1251_v48 = vpop.permute.xlu1 %1250  ;;  %vm2389_vm4 = vcmp.eq.s32.totalorder %v2345_v29, %v6508_v20 }
 0x1e6   :  { %vm1289_vm9 = vcmp.eq.s32.totalorder %v1251_v48, %v6508_v20  ;;  %v4459_v2 = vsel %vm2389_vm4, 1.0, %v6177_v3 }
 0x1e7   :  { %v967_v8 = vpop.f32.mrb[28].mxu0  ;;  %v4320_v28 = vsel %vm1289_vm9, 1.0, %v6177_v3 }
 0x1e8   :  { %v5570_v45 = vadd.f32 %v967_v8, %v7387_v54  ;;  %v4960_v40 = vpop.f32.mrb[29].mxu0  ;;  %v4458_v54 = vsel %vm2388_vm2, 1.0, %v6177_v3  ;;  %v1248_v57 = vpop.permute.xlu0 %1247 }
 0x1e9   :  { %v970_v56 = vpop.f32.mrb[30].mxu0  ;;  %vm1288_vm10 = vcmp.eq.s32.totalorder %v1248_v57, %v6508_v20 }
 0x1ea   :  { %3152 = vst [vmem:[#allocation4 + $0x70] sm:$0xff] %v5570_v45  ;;  %v5571_v14 = vadd.f32 %v970_v56, %v7389_v7  ;;  %v4961_v46 = vpop.f32.mrb[31].mxu0  ;;  %v4457_v7 = vsel %vm2387_vm5, 1.0, %v6177_v3  ;;  %v4319_v21 = vsel %vm1288_vm10, 1.0, %v6177_v3 }
 0x1eb   :  { %v7711_v26 = vpack.c.bf16 %v4458_v54, %v4457_v7  ;;  %v7735_v46 = vpack.c.bf16 %v4320_v28, %v4319_v21 }
 0x1ec   :  { %3153 = vst [vmem:[#allocation4 + $0x78] sm:$0xff] %v5571_v14  ;;  %5085 = vmatmul.mubr.msk.bf16.gmra.mrb[140].mxu1 %vm1451_vm3, %v7691_v16  ;;  %5351 = vmatmul.mubr.msk.bf16.gmra.mrb[136].mxu0 %vm1451_vm3, %v7689_v34  ;;  %v7733_v14 = vpack.c.bf16 %v4460_v41, %v4459_v2  ;;  %v6016_v41 = vld [vmem:[%s8578_s1 + $0x70] sm:$0xff]  }
 0x1ed   :  { %5088 = vmatprep.mubr.msk.bf16.mxu1 %vm6178_vm0, %v6177_v3  ;;  %5354 = vmatprep.mubr.msk.bf16.mxu0 %vm6178_vm0, %v6177_v3 }
 0x1ef   :  { %v975_v25 = vpop.f32.mrb[32].mxu0 }
 0x1f0   :  { %v5572_v58 = vadd.f32 %v975_v25, %v7419_v31  ;;  %v4964_v23 = vpop.f32.mrb[33].mxu0  ;;  %v2354_v31 = vpop.permute.xlu1 %2353 }
 0x1f1   :  { %v978_v19 = vpop.f32.mrb[34].mxu0  ;;  %vm2392_vm11 = vcmp.eq.s32.totalorder %v2354_v31, %v6508_v20 }
 0x1f2   :  { %3154 = vst [vmem:[#allocation4 + $0x80] sm:$0xff] %v5572_v58  ;;  %v5573_v24 = vadd.f32 %v978_v19, %v7423_v13  ;;  %v4965_v35 = vpop.f32.mrb[35].mxu0  ;;  %v2351_v13 = vpop.permute.xlu0 %2350  ;;  %v6015_v19 = vld [vmem:[%s8578_s1 + $0x68] sm:$0xff]  }
 0x1f3   :  { %vm2391_vm12 = vcmp.eq.s32.totalorder %v2351_v13, %v6508_v20 }
 0x1f4   :  { %3155 = vst [vmem:[#allocation4 + $0x88] sm:$0xff] %v5573_v24  ;;  %5089 = vmatmul.mubr.msk.bf16.gmra.mrb[144].mxu1 %vm1451_vm3, %v7713_v43  ;;  %5355 = vmatmul.mubr.msk.bf16.gmra.mrb[140].mxu0 %vm1451_vm3, %v7711_v26 }
 0x1f5   :  { %5092 = vmatprep.mubr.msk.bf16.mxu1 %vm6178_vm0, %v6177_v3  ;;  %5358 = vmatprep.mubr.msk.bf16.mxu0 %vm6178_vm0, %v6177_v3 }
 0x1f7   :  { %v766_v63 = vpop.f32.mrb[40].mxu1  ;;  %v983_v8 = vpop.f32.mrb[36].mxu0 }
 0x1f8   :  { %v5574_v45 = vadd.f32 %v983_v8, %v7453_v44  ;;  %v4886_v40 = vpop.f32.mrb[41].mxu1  ;;  %v4968_v52 = vpop.f32.mrb[37].mxu0  ;;  %v4462_v44 = vsel %vm2392_vm11, 1.0, %v6177_v3 }
 0x1f9   :  { %v769_v56 = vpop.f32.mrb[42].mxu1  ;;  %v986_v29 = vpop.f32.mrb[38].mxu0 }
 0x1fa   :  { %3156 = vst [vmem:[#allocation4 + $0x90] sm:$0xff] %v5574_v45  ;;  %v5575_v54 = vadd.f32 %v986_v29, %v7457_v10  ;;  %v4887_v7 = vpop.f32.mrb[43].mxu1  ;;  %v4969_v18 = vpop.f32.mrb[39].mxu0  ;;  %v4461_v10 = vsel %vm2391_vm12, 1.0, %v6177_v3 }
 0x1fb   :  { %v7753_v24 = vpack.c.bf16 %v4462_v44, %v4461_v10  ;;  %v6018_v44 = vld [vmem:[%s8578_s1 + $0x80] sm:$0xff]  }
 0x1fc   :  { %3157 = vst [vmem:[#allocation4 + $0x98] sm:$0xff] %v5575_v54  ;;  %5093 = vmatmul.mubr.msk.bf16.gmra.mrb[148].mxu1 %vm1451_vm3, %v7735_v46  ;;  %5359 = vmatmul.mubr.msk.bf16.gmra.mrb[144].mxu0 %vm1451_vm3, %v7733_v14  ;;  %v6017_v54 = vld [vmem:[%s8578_s1 + $0x78] sm:$0xff]  }
 0x1fd   :  { %5110 = vmatprep.mubr.msk.bf16.mxu1 %vm6178_vm0, %v6177_v3  ;;  %5362 = vmatprep.mubr.msk.bf16.mxu0 %vm6178_vm0, %v6177_v3 }
 0x1ff   :  { %v774_v22 = vpop.f32.mrb[44].mxu1  ;;  %v991_v48 = vpop.f32.mrb[40].mxu0 }
 0x200   :  { %v5576_v20 = vadd.f32 %v991_v48, %v766_v63  ;;  %v4890_v25 = vpop.f32.mrb[45].mxu1  ;;  %v4972_v57 = vpop.f32.mrb[41].mxu0 }
 0x201   :  { %v777_v58 = vpop.f32.mrb[46].mxu1  ;;  %v994_v23 = vpop.f32.mrb[42].mxu0 }
 0x202   :  { %3158 = vst [vmem:[#allocation4 + $0xa0] sm:$0xff] %v5576_v20  ;;  %v5577_v35 = vadd.f32 %v994_v23, %v769_v56  ;;  %v4891_v31 = vpop.f32.mrb[47].mxu1  ;;  %v4973_v13 = vpop.f32.mrb[43].mxu0 }
 0x203   :  { %v6020_v13 = vld [vmem:[%s8578_s1 + $0x90] sm:$0xff]  }
 0x204   :  { %3159 = vst [vmem:[#allocation4 + $0xa8] sm:$0xff] %v5577_v35  ;;  %5111 = vmatmul.mubr.msk.bf16.vlgmr.msra.gmra.mrb[76].mxu1 %vm1451_vm3, %v7160_v38  ;;  %5363 = vmatmul.mubr.msk.bf16.gmra.mrb[148].mxu0 %vm1451_vm3, %v7753_v24 }
 0x205   :  { %5187 = vmatpush3.bf16.msra.mxu1 %v6015_v19  ;;  %5114 = vmatprep.mubr.msk.bf16.mxu1 %vm6178_vm0, %v6177_v3 }
 0x206   :  { %5380 = vmatprep.mubr.msk.bf16.mxu0 %vm6178_vm0, %v6177_v3  ;;  %5188 = vmatprep.subr.bf16.mxu1 %v6177_v3 }
 0x207   :  { %v782_v2 = vpop.f32.mrb[48].mxu1  ;;  %v999_v28 = vpop.f32.mrb[44].mxu0 }
 0x208   :  { %v5578_v21 = vadd.f32 %v999_v28, %v774_v22  ;;  %v4894_v63 = vpop.f32.mrb[49].mxu1  ;;  %v4976_v8 = vpop.f32.mrb[45].mxu0 }
 0x209   :  { %v785_v45 = vpop.f32.mrb[50].mxu1  ;;  %v1002_v40 = vpop.f32.mrb[46].mxu0  ;;  %5189 = vmatpush3.bf16.msra.mxu1 %v6016_v41 }
 0x20a   :  { %3160 = vst [vmem:[#allocation4 + $0xb0] sm:$0xff] %v5578_v21  ;;  %v5579_v52 = vadd.f32 %v1002_v40, %v777_v58  ;;  %v4895_v56 = vpop.f32.mrb[51].mxu1  ;;  %v4977_v29 = vpop.f32.mrb[47].mxu0  ;;  %5190 = vmatprep.subr.bf16.mxu1 %v6177_v3  ;;  %v6021_v21 = vld [vmem:[%s8578_s1 + $0x98] ss:$0 sps:$4 sm:$0xff]  }
 0x20b   :  { %v1978_v56 = vsel %vm433_vm1, %v6021_v21, 0  ;;  %vm4072_vm1 = vcmask 1040384  }
 0x20c   :  { %3161 = vst [vmem:[#allocation4 + $0xb8] sm:$0xff] %v5579_v52  ;;  %5115 = vmatmul.mubr.msk.bf16.gmra.mrb[80].mxu1 %vm1451_vm3, %v7198_v51  ;;  %5381 = vmatmul.mubr.msk.bf16.vlgmr.msra.gmra.mrb[76].mxu0 %vm1451_vm3, %v7196_v49 }
 0x20d   :  { %5457 = vmatpush3.bf16.msra.mxu0 %v6015_v19  ;;  %5118 = vmatprep.mubr.msk.bf16.mxu1 %vm6178_vm0, %v6177_v3  ;;  %v6019_v19 = vld [vmem:[%s8578_s1 + $0x88] sm:$0xff]   ;;  %s6179_s1 = smov [#allocation6]  }
 0x20e   :  { %5384 = vmatprep.mubr.msk.bf16.mxu0 %vm6178_vm0, %v6177_v3  ;;  %5458 = vmatprep.subr.bf16.mxu0 %v6177_v3  ;;  %s4098_s12 = sshll.u32 %s6179_s1, 4  ;;  %s4099_s12 = int_to_ptr.vmem [resolvable:$true] %s4098_s12 }
 0x20f   :  { %v790_v7 = vpop.f32.mrb[52].mxu1  ;;  %v1007_v18 = vpop.f32.mrb[48].mxu0  ;;  %5191 = vmatpush3.bf16.msra.mxu1 %v6017_v54  ;;  %s6060_s13 = scalar_lea.vmem %s4099_s12, 4864  ;;  %p6065_p1 = scmp.lt.s32.totalorder %s4099_s12, %s4099_s12 }
 0x210   :  { %v5580_v10 = vadd.f32 %v1007_v18, %v782_v2  ;;  %v4898_v22 = vpop.f32.mrb[53].mxu1  ;;  %v4980_v48 = vpop.f32.mrb[49].mxu0  ;;  %5192 = vmatprep.subr.bf16.mxu1 %v6177_v3  ;;  %p6061_p0 = scmp.ne.s32.totalorder %s4099_s12, %s6060_s13  ;;  %p6066_p2 = scmp.lt.s32.totalorder %s6060_s13, %s6060_s13 }
 0x211   :  { %v793_v20 = vpop.f32.mrb[54].mxu1  ;;  %v1010_v25 = vpop.f32.mrb[50].mxu0  ;;  %5459 = vmatpush3.bf16.msra.mxu0 %v6016_v41 }
 0x212   :  { %3162 = vst [vmem:[#allocation4 + $0xc0] sm:$0xff] %v5580_v10  ;;  %v5581_v57 = vadd.f32 %v1010_v25, %v785_v45  ;;  %v4899_v58 = vpop.f32.mrb[55].mxu1  ;;  %v4981_v23 = vpop.f32.mrb[51].mxu0  ;;  %5460 = vmatprep.subr.bf16.mxu0 %v6177_v3  ;;  %p6067_p3 = por %p6066_p2, %p6065_p1 }
 0x213   :  { %5193 = vmatpush3.bf16.msra.mxu1 %v6018_v44 }
 0x214   :  { %3163 = vst [vmem:[#allocation4 + $0xc8] sm:$0xff] %v5581_v57  ;;  %5119 = vmatmul.mubr.msk.bf16.gmra.mrb[84].mxu1 %vm1451_vm3, %v7241_v32  ;;  %5385 = vmatmul.mubr.msk.bf16.gmra.mrb[80].mxu0 %vm1451_vm3, %v7239_v62  ;;  %p6068_p4 = pnand %p6067_p3, %p6061_p0 }
 0x215   :  { %5122 = vmatprep.mubr.msk.bf16.mxu1 %vm6178_vm0, %v6177_v3  ;;  %5388 = vmatprep.mubr.msk.bf16.mxu0 %vm6178_vm0, %v6177_v3 }
 0x216   :  { %5461 = vmatpush3.bf16.msra.mxu0 %v6017_v54  ;;  %5194 = vmatprep.subr.bf16.mxu1 %v6177_v3 }
 0x217   :  { %v798_v35 = vpop.f32.mrb[56].mxu1  ;;  %v1015_v31 = vpop.f32.mrb[52].mxu0  ;;  %5462 = vmatprep.subr.bf16.mxu0 %v6177_v3  ;;  %5195 = vmatpush3.bf16.msra.mxu1 %v6019_v19 }
 0x218   :  { %v5582_v41 = vadd.f32 %v1015_v31, %v790_v7  ;;  %v4902_v2 = vpop.f32.mrb[57].mxu1  ;;  %v4984_v28 = vpop.f32.mrb[53].mxu0  ;;  %5196 = vmatprep.subr.bf16.mxu1 %v6177_v3 }
 0x219   :  { %v801_v63 = vpop.f32.mrb[58].mxu1  ;;  %v1018_v8 = vpop.f32.mrb[54].mxu0 }
 0x21a   :  { %3164 = vst [vmem:[#allocation4 + $0xd0] sm:$0xff] %v5582_v41  ;;  %v5583_v45 = vadd.f32 %v1018_v8, %v793_v20  ;;  %v4903_v40 = vpop.f32.mrb[59].mxu1  ;;  %v4985_v52 = vpop.f32.mrb[55].mxu0  ;;  %5463 = vmatpush3.bf16.msra.mxu0 %v6018_v44 }
 0x21b   :  { %5464 = vmatprep.subr.bf16.mxu0 %v6177_v3  ;;  %5197 = vmatpush3.bf16.msra.mxu1 %v6020_v13 }
 0x21c   :  { %3165 = vst [vmem:[#allocation4 + $0xd8] sm:$0xff] %v5583_v45  ;;  %5123 = vmatmul.mubr.msk.bf16.gmra.mrb[88].mxu1 %vm1451_vm3, %v7286_v39  ;;  %5389 = vmatmul.mubr.msk.bf16.gmra.mrb[84].mxu0 %vm1451_vm3, %v7284_v37 }
 0x21d   :  { %5126 = vmatprep.mubr.msk.bf16.mxu1 %vm6178_vm0, %v6177_v3  ;;  %5392 = vmatprep.mubr.msk.bf16.mxu0 %vm6178_vm0, %v6177_v3 }
 0x21e   :  { %5465 = vmatpush3.bf16.msra.mxu0 %v6019_v19  ;;  %5198 = vmatprep.subr.bf16.mxu1 %v6177_v3 }
 0x21f   :  { %v806_v29 = vpop.f32.mrb[60].mxu1  ;;  %v1023_v54 = vpop.f32.mrb[56].mxu0  ;;  %5466 = vmatprep.subr.bf16.mxu0 %v6177_v3  ;;  %5199 = vmatpush3.bf16.msra.mxu1 %v1978_v56 }
 0x220   :  { %v5584_v7 = vadd.f32 %v1023_v54, %v798_v35  ;;  %v4906_v18 = vpop.f32.mrb[61].mxu1  ;;  %v4988_v44 = vpop.f32.mrb[57].mxu0 }
 0x221   :  { %v809_v10 = vpop.f32.mrb[62].mxu1  ;;  %v1026_v22 = vpop.f32.mrb[58].mxu0 }
 0x222   :  { %3166 = vst [vmem:[#allocation4 + $0xe0] sm:$0xff] %v5584_v7  ;;  %v5585_v48 = vadd.f32 %v1026_v22, %v801_v63  ;;  %v4907_v20 = vpop.f32.mrb[63].mxu1  ;;  %v4989_v25 = vpop.f32.mrb[59].mxu0  ;;  %5467 = vmatpush3.bf16.msra.mxu0 %v6020_v13 }
 0x223   :  { %5468 = vmatprep.subr.bf16.mxu0 %v6177_v3 }
 0x224   :  { %3167 = vst [vmem:[#allocation4 + $0xe8] sm:$0xff] %v5585_v48  ;;  %5127 = vmatmul.mubr.msk.bf16.gmra.mrb[92].mxu1 %vm1451_vm3, %v7325_v55  ;;  %5393 = vmatmul.mubr.msk.bf16.gmra.mrb[88].mxu0 %vm1451_vm3, %v7323_v53 }
 0x225   :  { %5130 = vmatprep.mubr.msk.bf16.mxu1 %vm6178_vm0, %v6177_v3  ;;  %5396 = vmatprep.mubr.msk.bf16.mxu0 %vm6178_vm0, %v6177_v3 }
 0x226   :  { %5469 = vmatpush3.bf16.msra.mxu0 %v1978_v56 }
 0x227   :  { %v814_v57 = vpop.f32.mrb[64].mxu1  ;;  %v1031_v58 = vpop.f32.mrb[60].mxu0 }
 0x228   :  { %v5586_v23 = vadd.f32 %v1031_v58, %v806_v29  ;;  %v4910_v19 = vpop.f32.mrb[65].mxu1  ;;  %v4992_v35 = vpop.f32.mrb[61].mxu0 }
 0x229   :  { %v817_v31 = vpop.f32.mrb[66].mxu1  ;;  %v1034_v13 = vpop.f32.mrb[62].mxu0 }
 0x22a   :  { %3168 = vst [vmem:[#allocation4 + $0xf0] sm:$0xff] %v5586_v23  ;;  %v5587_v41 = vadd.f32 %v1034_v13, %v809_v10  ;;  %v4911_v2 = vpop.f32.mrb[67].mxu1  ;;  %v4993_v28 = vpop.f32.mrb[63].mxu0 }
 0x22b   :  { %v8595_v28 = vld [vmem:[#allocation16_spill] sm:$0xff] }
 0x22c   :  { %3169 = vst [vmem:[#allocation4 + $0xf8] sm:$0xff] %v5587_v41  ;;  %5131 = vmatmul.mubr.msk.bf16.gmra.mrb[96].mxu1 %vm1451_vm3, %v7361_v5  ;;  %5397 = vmatmul.mubr.msk.bf16.gmra.mrb[92].mxu0 %vm1451_vm3, %v7359_v4 }
 0x22d   :  { %5134 = vmatprep.mubr.msk.bf16.mxu1 %vm6178_vm0, %v6177_v3  ;;  %5400 = vmatprep.mubr.msk.bf16.mxu0 %vm6178_vm0, %v6177_v3 }
 0x22f   :  { %v822_v21 = vpop.f32.mrb[68].mxu1  ;;  %v1039_v63 = vpop.f32.mrb[64].mxu0 }
 0x230   :  { %v5588_v8 = vadd.f32 %v1039_v63, %v814_v57  ;;  %v4914_v45 = vpop.f32.mrb[69].mxu1  ;;  %v4996_v40 = vpop.f32.mrb[65].mxu0 }
 0x231   :  { %v825_v52 = vpop.f32.mrb[70].mxu1  ;;  %v1042_v56 = vpop.f32.mrb[66].mxu0  ;;  %v6026_v40 = vld [vmem:[#allocation4 + $0x20] sm:$0xff] }
 0x232   :  { %3170 = vst [vmem:[#allocation4 + $0x100] sm:$0xff] %v5588_v8  ;;  %v5589_v29 = vadd.f32 %v1042_v56, %v817_v31  ;;  %v4915_v54 = vpop.f32.mrb[71].mxu1  ;;  %v4997_v7 = vpop.f32.mrb[67].mxu0 }
 0x234   :  { %3171 = vst [vmem:[#allocation4 + $0x108] sm:$0xff] %v5589_v29  ;;  %5135 = vmatmul.mubr.msk.bf16.gmra.mrb[100].mxu1 %vm1451_vm3, %v7393_v9  ;;  %5401 = vmatmul.mubr.msk.bf16.gmra.mrb[96].mxu0 %vm1451_vm3, %v7391_v33 }
 0x235   :  { %5138 = vmatprep.mubr.msk.bf16.mxu1 %vm6178_vm0, %v6177_v3  ;;  %5404 = vmatprep.mubr.msk.bf16.mxu0 %vm6178_vm0, %v6177_v3 }
 0x237   :  { %v830_v18 = vpop.f32.mrb[72].mxu1  ;;  %v1047_v44 = vpop.f32.mrb[68].mxu0 }
 0x238   :  { %v5590_v10 = vadd.f32 %v1047_v44, %v822_v21  ;;  %v4918_v22 = vpop.f32.mrb[73].mxu1  ;;  %v5000_v48 = vpop.f32.mrb[69].mxu0  ;;  %v8596_v21 = vld [vmem:[#allocation15_spill] sm:$0xff] }
 0x239   :  { %v833_v20 = vpop.f32.mrb[74].mxu1  ;;  %v1050_v25 = vpop.f32.mrb[70].mxu0 }
 0x23a   :  { %3172 = vst [vmem:[#allocation4 + $0x110] sm:$0xff] %v5590_v10  ;;  %v5591_v57 = vadd.f32 %v1050_v25, %v825_v52  ;;  %v4919_v58 = vpop.f32.mrb[75].mxu1  ;;  %v5001_v23 = vpop.f32.mrb[71].mxu0 }
 0x23c   :  { %3173 = vst [vmem:[#allocation4 + $0x118] sm:$0xff] %v5591_v57  ;;  %5139 = vmatmul.mubr.msk.bf16.gmra.mrb[104].mxu1 %vm1451_vm3, %v7427_v0  ;;  %5405 = vmatmul.mubr.msk.bf16.gmra.mrb[100].mxu0 %vm1451_vm3, %v7425_v15 }
 0x23d   :  { %5142 = vmatprep.mubr.msk.bf16.mxu1 %vm6178_vm0, %v6177_v3  ;;  %5408 = vmatprep.mubr.msk.bf16.mxu0 %vm6178_vm0, %v6177_v3 }
 0x23f   :  { %v1055_v19 = vpop.f32.mrb[72].mxu0 }
 0x240   :  { %v5592_v35 = vadd.f32 %v1055_v19, %v830_v18  ;;  %v5004_v31 = vpop.f32.mrb[73].mxu0 }
 0x241   :  { %v1058_v13 = vpop.f32.mrb[74].mxu0 }
 0x242   :  { %3174 = vst [vmem:[#allocation4 + $0x120] sm:$0xff] %v5592_v35  ;;  %v5593_v41 = vadd.f32 %v1058_v13, %v833_v20  ;;  %v5005_v2 = vpop.f32.mrb[75].mxu0  ;;  %v6027_v35 = vld [vmem:[#allocation4 + $0x28] sm:$0xff] }
 0x244   :  { %3175 = vst [vmem:[#allocation4 + $0x128] sm:$0xff] %v5593_v41  ;;  %5143 = vmatmul.mubr.msk.bf16.gmra.mrb[108].mxu1 %vm1451_vm3, %v8595_v28  ;;  %5409 = vmatmul.mubr.msk.bf16.gmra.mrb[104].mxu0 %vm1451_vm3, %v8596_v21  ;;  %v3256_v41 = vmul.f32 %v6026_v40, %v6026_v40 }
 0x245   :  { %5146 = vmatprep.mubr.msk.bf16.mxu1 %vm6178_vm0, %v6177_v3  ;;  %5412 = vmatprep.mubr.msk.bf16.mxu0 %vm6178_vm0, %v6177_v3 }
 0x24c   :  { %5147 = vmatmul.mubr.msk.bf16.gmra.mrb[112].mxu1 %vm1451_vm3, %v7490_v42  ;;  %5413 = vmatmul.mubr.msk.bf16.gmra.mrb[108].mxu0 %vm1451_vm3, %v7488_v60 }
 0x24d   :  { %5150 = vmatprep.mubr.msk.bf16.mxu1 %vm6178_vm0, %v6177_v3  ;;  %5416 = vmatprep.mubr.msk.bf16.mxu0 %vm6178_vm0, %v6177_v3 }
 0x254   :  { %5151 = vmatmul.mubr.msk.bf16.gmra.mrb[116].mxu1 %vm1451_vm3, %v7522_v17  ;;  %5417 = vmatmul.mubr.msk.bf16.gmra.mrb[112].mxu0 %vm1451_vm3, %v7520_v11 }
 0x255   :  { %5154 = vmatprep.mubr.msk.bf16.mxu1 %vm6178_vm0, %v6177_v3  ;;  %5420 = vmatprep.mubr.msk.bf16.mxu0 %vm6178_vm0, %v6177_v3 }
 0x25c   :  { %5155 = vmatmul.mubr.msk.bf16.gmra.mrb[120].mxu1 %vm1451_vm3, %v7554_v50  ;;  %5421 = vmatmul.mubr.msk.bf16.gmra.mrb[116].mxu0 %vm1451_vm3, %v7552_v59 }
 0x25d   :  { %5158 = vmatprep.mubr.msk.bf16.mxu1 %vm6178_vm0, %v6177_v3  ;;  %5424 = vmatprep.mubr.msk.bf16.mxu0 %vm6178_vm0, %v6177_v3 }
 0x264   :  { %5159 = vmatmul.mubr.msk.bf16.gmra.mrb[124].mxu1 %vm1451_vm3, %v7584_v27  ;;  %5425 = vmatmul.mubr.msk.bf16.gmra.mrb[120].mxu0 %vm1451_vm3, %v7582_v36 }
 0x265   :  { %5162 = vmatprep.mubr.msk.bf16.mxu1 %vm6178_vm0, %v6177_v3  ;;  %5428 = vmatprep.mubr.msk.bf16.mxu0 %vm6178_vm0, %v6177_v3 }
 0x26c   :  { %5163 = vmatmul.mubr.msk.bf16.gmra.mrb[128].mxu1 %vm1451_vm3, %v7614_v6  ;;  %5429 = vmatmul.mubr.msk.bf16.gmra.mrb[124].mxu0 %vm1451_vm3, %v7612_v12 }
 0x26d   :  { %5166 = vmatprep.mubr.msk.bf16.mxu1 %vm6178_vm0, %v6177_v3  ;;  %5432 = vmatprep.mubr.msk.bf16.mxu0 %vm6178_vm0, %v6177_v3 }
 0x274   :  { %5167 = vmatmul.mubr.msk.bf16.gmra.mrb[132].mxu1 %vm1451_vm3, %v7642_v61  ;;  %5433 = vmatmul.mubr.msk.bf16.gmra.mrb[128].mxu0 %vm1451_vm3, %v7640_v47 }
 0x275   :  { %5170 = vmatprep.mubr.msk.bf16.mxu1 %vm6178_vm0, %v6177_v3  ;;  %5436 = vmatprep.mubr.msk.bf16.mxu0 %vm6178_vm0, %v6177_v3 }
 0x27c   :  { %5171 = vmatmul.mubr.msk.bf16.gmra.mrb[136].mxu1 %vm1451_vm3, %v7667_v30  ;;  %5437 = vmatmul.mubr.msk.bf16.gmra.mrb[132].mxu0 %vm1451_vm3, %v7665_v1 }
 0x27d   :  { %5174 = vmatprep.mubr.msk.bf16.mxu1 %vm6178_vm0, %v6177_v3  ;;  %5440 = vmatprep.mubr.msk.bf16.mxu0 %vm6178_vm0, %v6177_v3 }
 0x284   :  { %5175 = vmatmul.mubr.msk.bf16.gmra.mrb[140].mxu1 %vm1451_vm3, %v7691_v16  ;;  %5441 = vmatmul.mubr.msk.bf16.gmra.mrb[136].mxu0 %vm1451_vm3, %v7689_v34 }
 0x285   :  { %5178 = vmatprep.mubr.msk.bf16.mxu1 %vm6178_vm0, %v6177_v3  ;;  %5444 = vmatprep.mubr.msk.bf16.mxu0 %vm6178_vm0, %v6177_v3 }
 0x28c   :  { %5179 = vmatmul.mubr.msk.bf16.gmra.mrb[144].mxu1 %vm1451_vm3, %v7713_v43  ;;  %5445 = vmatmul.mubr.msk.bf16.gmra.mrb[140].mxu0 %vm1451_vm3, %v7711_v26 }
 0x28d   :  { %5182 = vmatprep.mubr.msk.bf16.mxu1 %vm6178_vm0, %v6177_v3  ;;  %5448 = vmatprep.mubr.msk.bf16.mxu0 %vm6178_vm0, %v6177_v3 }
 0x294   :  { %5183 = vmatmul.mubr.msk.bf16.gmra.mrb[148].mxu1 %vm1451_vm3, %v7735_v46  ;;  %5449 = vmatmul.mubr.msk.bf16.gmra.mrb[144].mxu0 %vm1451_vm3, %v7733_v14 }
 0x295   :  { %5200 = vmatprep.mubr.msk.bf16.mxu1 %vm6178_vm0, %v6177_v3  ;;  %5452 = vmatprep.mubr.msk.bf16.mxu0 %vm6178_vm0, %v6177_v3 }
 0x29c   :  { %5201 = vmatmul.mubr.msk.bf16.vlgmr.msra.gmra.mrb[76].mxu1 %vm1451_vm3, %v7160_v38  ;;  %5453 = vmatmul.mubr.msk.bf16.gmra.mrb[148].mxu0 %vm1451_vm3, %v7753_v24 }
 0x29d   :  { %5204 = vmatprep.mubr.msk.bf16.mxu1 %vm6178_vm0, %v6177_v3  ;;  %5470 = vmatprep.mubr.msk.bf16.mxu0 %vm6178_vm0, %v6177_v3 }
 0x2a4   :  { %5205 = vmatmul.mubr.msk.bf16.gmra.mrb[80].mxu1 %vm1451_vm3, %v7198_v51  ;;  %5471 = vmatmul.mubr.msk.bf16.vlgmr.msra.gmra.mrb[76].mxu0 %vm1451_vm3, %v7196_v49  ;;  %v6022_v49 = vld [vmem:[#allocation4] sm:$0xff] }
 0x2a5   :  { %5208 = vmatprep.mubr.msk.bf16.mxu1 %vm6178_vm0, %v6177_v3  ;;  %5474 = vmatprep.mubr.msk.bf16.mxu0 %vm6178_vm0, %v6177_v3 }
 0x2ac   :  { %5209 = vmatmul.mubr.msk.bf16.gmra.mrb[84].mxu1 %vm1451_vm3, %v7241_v32  ;;  %5475 = vmatmul.mubr.msk.bf16.gmra.mrb[80].mxu0 %vm1451_vm3, %v7239_v62 }
 0x2ad   :  { %5212 = vmatprep.mubr.msk.bf16.mxu1 %vm6178_vm0, %v6177_v3  ;;  %5478 = vmatprep.mubr.msk.bf16.mxu0 %vm6178_vm0, %v6177_v3 }
 0x2b4   :  { %5213 = vmatmul.mubr.msk.bf16.gmra.mrb[88].mxu1 %vm1451_vm3, %v7286_v39  ;;  %5479 = vmatmul.mubr.msk.bf16.gmra.mrb[84].mxu0 %vm1451_vm3, %v7284_v37  ;;  %v6023_v37 = vld [vmem:[#allocation4 + $0x8] sm:$0xff] }
 0x2b5   :  { %5216 = vmatprep.mubr.msk.bf16.mxu1 %vm6178_vm0, %v6177_v3  ;;  %5482 = vmatprep.mubr.msk.bf16.mxu0 %vm6178_vm0, %v6177_v3 }
 0x2bc   :  { %5217 = vmatmul.mubr.msk.bf16.gmra.mrb[92].mxu1 %vm1451_vm3, %v7325_v55  ;;  %5483 = vmatmul.mubr.msk.bf16.gmra.mrb[88].mxu0 %vm1451_vm3, %v7323_v53 }
 0x2bd   :  { %5220 = vmatprep.mubr.msk.bf16.mxu1 %vm6178_vm0, %v6177_v3  ;;  %5486 = vmatprep.mubr.msk.bf16.mxu0 %vm6178_vm0, %v6177_v3 }
 0x2c4   :  { %5221 = vmatmul.mubr.msk.bf16.gmra.mrb[96].mxu1 %vm1451_vm3, %v7361_v5  ;;  %5487 = vmatmul.mubr.msk.bf16.gmra.mrb[92].mxu0 %vm1451_vm3, %v7359_v4  ;;  %v3252_v4 = vmul.f32 %v6022_v49, %v6022_v49 }
 0x2c5   :  { %5224 = vmatprep.mubr.msk.bf16.mxu1 %vm6178_vm0, %v6177_v3  ;;  %5490 = vmatprep.mubr.msk.bf16.mxu0 %vm6178_vm0, %v6177_v3 }
 0x2cc   :  { %5225 = vmatmul.mubr.msk.bf16.gmra.mrb[100].mxu1 %vm1451_vm3, %v7393_v9  ;;  %5491 = vmatmul.mubr.msk.bf16.gmra.mrb[96].mxu0 %vm1451_vm3, %v7391_v33 }
 0x2cd   :  { %5228 = vmatprep.mubr.msk.bf16.mxu1 %vm6178_vm0, %v6177_v3  ;;  %5494 = vmatprep.mubr.msk.bf16.mxu0 %vm6178_vm0, %v6177_v3 }
 0x2d4   :  { %5229 = vmatmul.mubr.msk.bf16.gmra.mrb[104].mxu1 %vm1451_vm3, %v7427_v0  ;;  %5495 = vmatmul.mubr.msk.bf16.gmra.mrb[100].mxu0 %vm1451_vm3, %v7425_v15  ;;  %v6024_v0 = vld [vmem:[#allocation4 + $0x10] sm:$0xff] }
 0x2d5   :  { %5232 = vmatprep.mubr.msk.bf16.mxu1 %vm6178_vm0, %v6177_v3  ;;  %5498 = vmatprep.mubr.msk.bf16.mxu0 %vm6178_vm0, %v6177_v3 }
 0x2dc   :  { %5233 = vmatmul.mubr.msk.bf16.gmra.mrb[108].mxu1 %vm1451_vm3, %v8595_v28  ;;  %5499 = vmatmul.mubr.msk.bf16.gmra.mrb[104].mxu0 %vm1451_vm3, %v8596_v21 }
 0x2dd   :  { %5236 = vmatprep.mubr.msk.bf16.mxu1 %vm6178_vm0, %v6177_v3  ;;  %5502 = vmatprep.mubr.msk.bf16.mxu0 %vm6178_vm0, %v6177_v3 }
 0x2e4   :  { %5237 = vmatmul.mubr.msk.bf16.gmra.mrb[112].mxu1 %vm1451_vm3, %v7490_v42  ;;  %5503 = vmatmul.mubr.msk.bf16.gmra.mrb[108].mxu0 %vm1451_vm3, %v7488_v60 }
 0x2e5   :  { %5240 = vmatprep.mubr.msk.bf16.mxu1 %vm6178_vm0, %v6177_v3  ;;  %5506 = vmatprep.mubr.msk.bf16.mxu0 %vm6178_vm0, %v6177_v3 }
 0x2ec   :  { %5241 = vmatmul.mubr.msk.bf16.gmra.mrb[116].mxu1 %vm1451_vm3, %v7522_v17  ;;  %5507 = vmatmul.mubr.msk.bf16.gmra.mrb[112].mxu0 %vm1451_vm3, %v7520_v11 }
 0x2ed   :  { %5244 = vmatprep.mubr.msk.bf16.mxu1 %vm6178_vm0, %v6177_v3  ;;  %5510 = vmatprep.mubr.msk.bf16.mxu0 %vm6178_vm0, %v6177_v3 }
 0x2f4   :  { %5245 = vmatmul.mubr.msk.bf16.gmra.mrb[120].mxu1 %vm1451_vm3, %v7554_v50  ;;  %5511 = vmatmul.mubr.msk.bf16.gmra.mrb[116].mxu0 %vm1451_vm3, %v7552_v59  ;;  %v3253_v50 = vmul.f32 %v6023_v37, %v6023_v37 }
 0x2f5   :  { %5248 = vmatprep.mubr.msk.bf16.mxu1 %vm6178_vm0, %v6177_v3  ;;  %5514 = vmatprep.mubr.msk.bf16.mxu0 %vm6178_vm0, %v6177_v3 }
 0x2fc   :  { %5249 = vmatmul.mubr.msk.bf16.gmra.mrb[124].mxu1 %vm1451_vm3, %v7584_v27  ;;  %5515 = vmatmul.mubr.msk.bf16.gmra.mrb[120].mxu0 %vm1451_vm3, %v7582_v36 }
 0x2fd   :  { %5252 = vmatprep.mubr.msk.bf16.mxu1 %vm6178_vm0, %v6177_v3  ;;  %5518 = vmatprep.mubr.msk.bf16.mxu0 %vm6178_vm0, %v6177_v3 }
 0x304   :  { %5253 = vmatmul.mubr.msk.bf16.gmra.mrb[128].mxu1 %vm1451_vm3, %v7614_v6  ;;  %5519 = vmatmul.mubr.msk.bf16.gmra.mrb[124].mxu0 %vm1451_vm3, %v7612_v12 }
 0x305   :  { %5256 = vmatprep.mubr.msk.bf16.mxu1 %vm6178_vm0, %v6177_v3  ;;  %5522 = vmatprep.mubr.msk.bf16.mxu0 %vm6178_vm0, %v6177_v3 }
 0x30c   :  { %5257 = vmatmul.mubr.msk.bf16.gmra.mrb[132].mxu1 %vm1451_vm3, %v7642_v61  ;;  %5523 = vmatmul.mubr.msk.bf16.gmra.mrb[128].mxu0 %vm1451_vm3, %v7640_v47 }
 0x30d   :  { %5260 = vmatprep.mubr.msk.bf16.mxu1 %vm6178_vm0, %v6177_v3  ;;  %5526 = vmatprep.mubr.msk.bf16.mxu0 %vm6178_vm0, %v6177_v3 }
 0x314   :  { %5261 = vmatmul.mubr.msk.bf16.gmra.mrb[136].mxu1 %vm1451_vm3, %v7667_v30  ;;  %5527 = vmatmul.mubr.msk.bf16.gmra.mrb[132].mxu0 %vm1451_vm3, %v7665_v1 }
 0x315   :  { %5264 = vmatprep.mubr.msk.bf16.mxu1 %vm6178_vm0, %v6177_v3  ;;  %5530 = vmatprep.mubr.msk.bf16.mxu0 %vm6178_vm0, %v6177_v3 }
 0x31c   :  { %5265 = vmatmul.mubr.msk.bf16.gmra.mrb[140].mxu1 %vm1451_vm3, %v7691_v16  ;;  %5531 = vmatmul.mubr.msk.bf16.gmra.mrb[136].mxu0 %vm1451_vm3, %v7689_v34  ;;  %v6025_v16 = vld [vmem:[#allocation4 + $0x18] sm:$0xff] }
 0x31d   :  { %5268 = vmatprep.mubr.msk.bf16.mxu1 %vm6178_vm0, %v6177_v3  ;;  %5534 = vmatprep.mubr.msk.bf16.mxu0 %vm6178_vm0, %v6177_v3  ;;  %v3255_v18 = vmul.f32 %v6025_v16, %v6025_v16 }
 0x324   :  { %5269 = vmatmul.mubr.msk.bf16.gmra.mrb[144].mxu1 %vm1451_vm3, %v7713_v43  ;;  %5535 = vmatmul.mubr.msk.bf16.gmra.mrb[140].mxu0 %vm1451_vm3, %v7711_v26 }
 0x325   :  { %5272 = vmatprep.mubr.msk.bf16.mxu1 %vm6178_vm0, %v6177_v3  ;;  %5538 = vmatprep.mubr.msk.bf16.mxu0 %vm6178_vm0, %v6177_v3 }
 0x32c   :  { %5273 = vmatmul.mubr.msk.bf16.gmra.mrb[148].mxu1 %vm1451_vm3, %v7735_v46  ;;  %5539 = vmatmul.mubr.msk.bf16.gmra.mrb[144].mxu0 %vm1451_vm3, %v7733_v14  ;;  %v3254_v14 = vmul.f32 %v6024_v0, %v6024_v0 }
 0x32d   :  { %5542 = vmatprep.mubr.msk.bf16.mxu0 %vm6178_vm0, %v6177_v3  ;;  %vm3983_vm0 = vcmask 7168  }
 0x334   :  { %5543 = vmatmul.mubr.msk.bf16.gmra.mrb[148].mxu0 %vm1451_vm3, %v7753_v24  ;;  %vm40_vm3 = vcmask 0  }
 0x335   :  { %41 = vst.msk [vmem:[#allocation3] sm:$0x1] %vm40_vm3, %v6177_v3 }
 0x36f   :  { %v2014_v38 = vpop.f32.mrb[76].mxu1 }
 0x370   :  { %3176 = vst [vmem:[#allocation6] sm:$0xff] %v2014_v38  ;;  %v3488_v51 = vmul.f32 %v6022_v49, %v2014_v38  ;;  %v5202_v62 = vpop.f32.mrb[77].mxu1  ;;  %v3290_v55 = vmul.f32 %v2014_v38, %v2014_v38 }
 0x371   :  { %v2017_v32 = vpop.f32.mrb[78].mxu1 }
 0x372   :  { %3177 = vst [vmem:[#allocation6 + $0x8] sm:$0xff] %v2017_v32  ;;  %v3489_v39 = vmul.f32 %v6023_v37, %v2017_v32  ;;  %3526 = vadd.xlane.f32.xlu0 %v3488_v51  ;;  %v5203_v53 = vpop.f32.mrb[79].mxu1  ;;  %v3291_v5 = vmul.f32 %v2017_v32, %v2017_v32  ;;  %v3328_v15 = vadd.f32 %v3290_v55, %v3252_v4  ;;  %v6028_v51 = vld [vmem:[#allocation4 + $0x30] sm:$0xff] }
 0x373   :  { %v3257_v55 = vmul.f32 %v6027_v35, %v6027_v35 }
 0x374   :  { %3528 = vadd.xlane.f32.xlu1 %v3489_v39  ;;  %v3329_v61 = vadd.f32 %v3291_v5, %v3253_v50 }
 0x377   :  { %v2022_v33 = vpop.f32.mrb[80].mxu1  ;;  %v2949_v9 = vpop.f32.mrb[76].mxu0 }
 0x378   :  { %3178 = vst [vmem:[#allocation6 + $0x10] sm:$0xff] %v2022_v33  ;;  %v3490_v60 = vmul.f32 %v6024_v0, %v2022_v33  ;;  %3214 = vst [vmem:[#allocation8] sm:$0xff] %v2949_v9  ;;  %v3366_v42 = vmul.f32 %v2949_v9, %v2949_v9  ;;  %v3602_v11 = vmul.f32 %v6022_v49, %v2949_v9  ;;  %v5206_v17 = vpop.f32.mrb[81].mxu1  ;;  %v5472_v59 = vpop.f32.mrb[77].mxu0 }
 0x379   :  { %v2025_v36 = vpop.f32.mrb[82].mxu1  ;;  %v2952_v27 = vpop.f32.mrb[78].mxu0  ;;  %v3292_v30 = vmul.f32 %v2022_v33, %v2022_v33  ;;  %v6029_v59 = vld [vmem:[#allocation4 + $0x38] sm:$0xff] }
 0x37a   :  { %v3404_v12 = vadd.f32 %v3366_v42, %v3328_v15  ;;  %3179 = vst [vmem:[#allocation6 + $0x18] sm:$0xff] %v2025_v36  ;;  %3215 = vst [vmem:[#allocation8 + $0x8] sm:$0xff] %v2952_v27  ;;  %v5473_v6 = vpop.f32.mrb[79].mxu0  ;;  %3640 = vadd.xlane.f32.xlu0 %v3602_v11  ;;  %v5207_v47 = vpop.f32.mrb[83].mxu1  ;;  %v3367_v1 = vmul.f32 %v2952_v27, %v2952_v27  ;;  %3530 = vadd.xlane.f32.xlu1 %v3490_v60 }
 0x37b   :  { %v3603_v34 = vmul.f32 %v6023_v37, %v2952_v27  ;;  %v3491_v26 = vmul.f32 %v6025_v16, %v2025_v36  ;;  %v3293_v46 = vmul.f32 %v2025_v36, %v2025_v36  ;;  %v3330_v45 = vadd.f32 %v3292_v30, %v3254_v14  ;;  %v6030_v30 = vld [vmem:[#allocation4 + $0x40] sm:$0xff] }
 0x37c   :  { %v3405_v43 = vadd.f32 %v3367_v1, %v3329_v61  ;;  %v3258_v27 = vmul.f32 %v6028_v51, %v6028_v51 }
 0x37d   :  { %v3331_v25 = vadd.f32 %v3293_v46, %v3255_v18  ;;  %v3259_v46 = vmul.f32 %v6029_v59, %v6029_v59  ;;  %v6031_v18 = vld [vmem:[#allocation4 + $0x48] sm:$0xff] }
 0x37e   :  { %3642 = vadd.xlane.f32.xlu0 %v3603_v34  ;;  %v3443_v24 = vadd.f32 %v3405_v43, %v3404_v12  ;;  %3532 = vadd.xlane.f32.xlu1 %v3491_v26 }
 0x37f   :  { %v2030_v63 = vpop.f32.mrb[84].mxu1  ;;  %v2957_v8 = vpop.f32.mrb[80].mxu0 }
 0x380   :  { %3180 = vst [vmem:[#allocation6 + $0x20] sm:$0xff] %v2030_v63  ;;  %v3492_v52 = vmul.f32 %v6026_v40, %v2030_v63  ;;  %3216 = vst [vmem:[#allocation8 + $0x10] sm:$0xff] %v2957_v8  ;;  %v3368_v56 = vmul.f32 %v2957_v8, %v2957_v8  ;;  %v3604_v29 = vmul.f32 %v6024_v0, %v2957_v8  ;;  %v5210_v54 = vpop.f32.mrb[85].mxu1  ;;  %v5476_v7 = vpop.f32.mrb[81].mxu0 }
 0x381   :  { %v2033_v44 = vpop.f32.mrb[86].mxu1  ;;  %v2960_v10 = vpop.f32.mrb[82].mxu0  ;;  %v3294_v58 = vmul.f32 %v2030_v63, %v2030_v63 }
 0x382   :  { %v3406_v22 = vadd.f32 %v3368_v56, %v3330_v45  ;;  %3181 = vst [vmem:[#allocation6 + $0x28] sm:$0xff] %v2033_v44  ;;  %3217 = vst [vmem:[#allocation8 + $0x18] sm:$0xff] %v2960_v10  ;;  %v5477_v48 = vpop.f32.mrb[83].mxu0  ;;  %3644 = vadd.xlane.f32.xlu0 %v3604_v29  ;;  %v5211_v20 = vpop.f32.mrb[87].mxu1  ;;  %v3369_v57 = vmul.f32 %v2960_v10, %v2960_v10  ;;  %3534 = vadd.xlane.f32.xlu1 %v3492_v52 }
 0x383   :  { %v3605_v19 = vmul.f32 %v6025_v16, %v2960_v10  ;;  %v3493_v31 = vmul.f32 %v6027_v35, %v2033_v44  ;;  %v3295_v2 = vmul.f32 %v2033_v44, %v2033_v44  ;;  %v3332_v49 = vadd.f32 %v3294_v58, %v3256_v41 }
 0x384   :  { %v3444_v23 = vadd.f32 %v3443_v24, %v3406_v22  ;;  %v3407_v13 = vadd.f32 %v3369_v57, %v3331_v25  ;;  %v3260_v22 = vmul.f32 %v6030_v30, %v6030_v30 }
 0x385   :  { %v3333_v0 = vadd.f32 %v3295_v2, %v3257_v55  ;;  %v3261_v2 = vmul.f32 %v6031_v18, %v6031_v18  ;;  %v6033_v55 = vld [vmem:[#allocation4 + $0x58] sm:$0xff] }
 0x386   :  { %3646 = vadd.xlane.f32.xlu0 %v3605_v19  ;;  %v3445_v28 = vadd.f32 %v3444_v23, %v3407_v13  ;;  %3536 = vadd.xlane.f32.xlu1 %v3493_v31  ;;  %v6032_v23 = vld [vmem:[#allocation4 + $0x50] sm:$0xff] }
 0x387   :  { %v2038_v21 = vpop.f32.mrb[88].mxu1  ;;  %v2965_v38 = vpop.f32.mrb[84].mxu0 }
 0x388   :  { %3182 = vst [vmem:[#allocation6 + $0x30] sm:$0xff] %v2038_v21  ;;  %v3494_v62 = vmul.f32 %v6028_v51, %v2038_v21  ;;  %3218 = vst [vmem:[#allocation8 + $0x20] sm:$0xff] %v2965_v38  ;;  %v3370_v32 = vmul.f32 %v2965_v38, %v2965_v38  ;;  %v3606_v37 = vmul.f32 %v6026_v40, %v2965_v38  ;;  %v5214_v39 = vpop.f32.mrb[89].mxu1  ;;  %v5480_v53 = vpop.f32.mrb[85].mxu0 }
 0x389   :  { %v2041_v4 = vpop.f32.mrb[90].mxu1  ;;  %v2968_v5 = vpop.f32.mrb[86].mxu0  ;;  %v3296_v42 = vmul.f32 %v2038_v21, %v2038_v21 }
 0x38a   :  { %v3408_v33 = vadd.f32 %v3370_v32, %v3332_v49  ;;  %3183 = vst [vmem:[#allocation6 + $0x38] sm:$0xff] %v2041_v4  ;;  %3219 = vst [vmem:[#allocation8 + $0x28] sm:$0xff] %v2968_v5  ;;  %v5481_v9 = vpop.f32.mrb[87].mxu0  ;;  %3648 = vadd.xlane.f32.xlu0 %v3606_v37  ;;  %v5215_v15 = vpop.f32.mrb[91].mxu1  ;;  %v3371_v60 = vmul.f32 %v2968_v5, %v2968_v5  ;;  %3538 = vadd.xlane.f32.xlu1 %v3494_v62 }
 0x38b   :  { %v3607_v17 = vmul.f32 %v6027_v35, %v2968_v5  ;;  %v3495_v50 = vmul.f32 %v6029_v59, %v2041_v4  ;;  %v3297_v12 = vmul.f32 %v2041_v4, %v2041_v4  ;;  %v3334_v1 = vadd.f32 %v3296_v42, %v3258_v27 }
 0x38c   :  { %v3446_v11 = vadd.f32 %v3445_v28, %v3408_v33  ;;  %v3409_v36 = vadd.f32 %v3371_v60, %v3333_v0  ;;  %v3262_v33 = vmul.f32 %v6032_v23, %v6032_v23 }
 0x38d   :  { %v3335_v52 = vadd.f32 %v3297_v12, %v3259_v46  ;;  %v3263_v12 = vmul.f32 %v6033_v55, %v6033_v55  ;;  %v6035_v46 = vld [vmem:[#allocation4 + $0x68] sm:$0xff] }
 0x38e   :  { %3650 = vadd.xlane.f32.xlu0 %v3607_v17  ;;  %v3447_v6 = vadd.f32 %v3446_v11, %v3409_v36  ;;  %3540 = vadd.xlane.f32.xlu1 %v3495_v50  ;;  %v6034_v11 = vld [vmem:[#allocation4 + $0x60] sm:$0xff] }
 0x38f   :  { %v2046_v47 = vpop.f32.mrb[92].mxu1  ;;  %v2973_v61 = vpop.f32.mrb[88].mxu0 }
 0x390   :  { %3184 = vst [vmem:[#allocation6 + $0x40] sm:$0xff] %v2046_v47  ;;  %v3496_v34 = vmul.f32 %v6030_v30, %v2046_v47  ;;  %3220 = vst [vmem:[#allocation8 + $0x30] sm:$0xff] %v2973_v61  ;;  %v3372_v16 = vmul.f32 %v2973_v61, %v2973_v61  ;;  %v3608_v26 = vmul.f32 %v6028_v51, %v2973_v61  ;;  %v5218_v43 = vpop.f32.mrb[93].mxu1  ;;  %v5484_v14 = vpop.f32.mrb[89].mxu0 }
 0x391   :  { %v2049_v24 = vpop.f32.mrb[94].mxu1  ;;  %v2976_v63 = vpop.f32.mrb[90].mxu0  ;;  %v3298_v29 = vmul.f32 %v2046_v47, %v2046_v47 }
 0x392   :  { %v3410_v8 = vadd.f32 %v3372_v16, %v3334_v1  ;;  %3185 = vst [vmem:[#allocation6 + $0x48] sm:$0xff] %v2049_v24  ;;  %3221 = vst [vmem:[#allocation8 + $0x38] sm:$0xff] %v2976_v63  ;;  %v5485_v45 = vpop.f32.mrb[91].mxu0  ;;  %3652 = vadd.xlane.f32.xlu0 %v3608_v26  ;;  %v5219_v40 = vpop.f32.mrb[95].mxu1  ;;  %v3373_v56 = vmul.f32 %v2976_v63, %v2976_v63  ;;  %3542 = vadd.xlane.f32.xlu1 %v3496_v34 }
 0x393   :  { %v3609_v7 = vmul.f32 %v6029_v59, %v2976_v63  ;;  %v3497_v44 = vmul.f32 %v6031_v18, %v2049_v24  ;;  %v3299_v48 = vmul.f32 %v2049_v24, %v2049_v24  ;;  %v3336_v58 = vadd.f32 %v3298_v29, %v3260_v22 }
 0x394   :  { %v3448_v54 = vadd.f32 %v3447_v6, %v3410_v8  ;;  %v3411_v10 = vadd.f32 %v3373_v56, %v3335_v52  ;;  %v3264_v8 = vmul.f32 %v6034_v11, %v6034_v11 }
 0x395   :  { %v3337_v62 = vadd.f32 %v3299_v48, %v3261_v2  ;;  %v3265_v48 = vmul.f32 %v6035_v46, %v6035_v46  ;;  %v6037_v2 = vld [vmem:[#allocation4 + $0x78] sm:$0xff] }
 0x396   :  { %3654 = vadd.xlane.f32.xlu0 %v3609_v7  ;;  %v3449_v20 = vadd.f32 %v3448_v54, %v3411_v10  ;;  %3544 = vadd.xlane.f32.xlu1 %v3497_v44  ;;  %v6036_v54 = vld [vmem:[#allocation4 + $0x70] sm:$0xff] }
 0x397   :  { %v2054_v25 = vpop.f32.mrb[96].mxu1  ;;  %v2981_v57 = vpop.f32.mrb[92].mxu0 }
 0x398   :  { %3186 = vst [vmem:[#allocation6 + $0x50] sm:$0xff] %v2054_v25  ;;  %v3498_v19 = vmul.f32 %v6032_v23, %v2054_v25  ;;  %3222 = vst [vmem:[#allocation8 + $0x40] sm:$0xff] %v2981_v57  ;;  %v3374_v35 = vmul.f32 %v2981_v57, %v2981_v57  ;;  %v3610_v31 = vmul.f32 %v6030_v30, %v2981_v57  ;;  %v5222_v13 = vpop.f32.mrb[97].mxu1  ;;  %v5488_v41 = vpop.f32.mrb[93].mxu0 }
 0x399   :  { %v2057_v28 = vpop.f32.mrb[98].mxu1  ;;  %v2984_v21 = vpop.f32.mrb[94].mxu0  ;;  %v3300_v37 = vmul.f32 %v2054_v25, %v2054_v25 }
 0x39a   :  { %v3412_v38 = vadd.f32 %v3374_v35, %v3336_v58  ;;  %3187 = vst [vmem:[#allocation6 + $0x58] sm:$0xff] %v2057_v28  ;;  %3223 = vst [vmem:[#allocation8 + $0x48] sm:$0xff] %v2984_v21  ;;  %v5489_v49 = vpop.f32.mrb[95].mxu0  ;;  %3656 = vadd.xlane.f32.xlu0 %v3610_v31  ;;  %v5223_v51 = vpop.f32.mrb[99].mxu1  ;;  %v3375_v32 = vmul.f32 %v2984_v21, %v2984_v21  ;;  %3546 = vadd.xlane.f32.xlu1 %v3498_v19 }
 0x39b   :  { %v3611_v53 = vmul.f32 %v6031_v18, %v2984_v21  ;;  %v3499_v4 = vmul.f32 %v6033_v55, %v2057_v28  ;;  %v3301_v9 = vmul.f32 %v2057_v28, %v2057_v28  ;;  %v3338_v42 = vadd.f32 %v3300_v37, %v3262_v33 }
 0x39c   :  { %v3450_v39 = vadd.f32 %v3449_v20, %v3412_v38  ;;  %v3413_v5 = vadd.f32 %v3375_v32, %v3337_v62  ;;  %v3266_v38 = vmul.f32 %v6036_v54, %v6036_v54 }
 0x39d   :  { %v3339_v34 = vadd.f32 %v3301_v9, %v3263_v12  ;;  %v3267_v9 = vmul.f32 %v6037_v2, %v6037_v2  ;;  %v6039_v12 = vld [vmem:[#allocation4 + $0x88] sm:$0xff] }
 0x39e   :  { %3658 = vadd.xlane.f32.xlu0 %v3611_v53  ;;  %v3451_v15 = vadd.f32 %v3450_v39, %v3413_v5  ;;  %3548 = vadd.xlane.f32.xlu1 %v3499_v4  ;;  %v6038_v39 = vld [vmem:[#allocation4 + $0x80] sm:$0xff] }
 0x39f   :  { %v2062_v0 = vpop.f32.mrb[100].mxu1  ;;  %v2989_v60 = vpop.f32.mrb[96].mxu0 }
 0x3a0   :  { %3188 = vst [vmem:[#allocation6 + $0x60] sm:$0xff] %v2062_v0  ;;  %v3500_v17 = vmul.f32 %v6034_v11, %v2062_v0  ;;  %3224 = vst [vmem:[#allocation8 + $0x50] sm:$0xff] %v2989_v60  ;;  %v3376_v59 = vmul.f32 %v2989_v60, %v2989_v60  ;;  %v3612_v50 = vmul.f32 %v6032_v23, %v2989_v60  ;;  %v5226_v36 = vpop.f32.mrb[101].mxu1  ;;  %v5492_v27 = vpop.f32.mrb[97].mxu0 }
 0x3a1   :  { %v2065_v6 = vpop.f32.mrb[102].mxu1  ;;  %v2992_v47 = vpop.f32.mrb[98].mxu0  ;;  %v3302_v26 = vmul.f32 %v2062_v0, %v2062_v0 }
 0x3a2   :  { %v3414_v61 = vadd.f32 %v3376_v59, %v3338_v42  ;;  %3189 = vst [vmem:[#allocation6 + $0x68] sm:$0xff] %v2065_v6  ;;  %3225 = vst [vmem:[#allocation8 + $0x58] sm:$0xff] %v2992_v47  ;;  %v5493_v1 = vpop.f32.mrb[99].mxu0  ;;  %3660 = vadd.xlane.f32.xlu0 %v3612_v50  ;;  %v5227_v30 = vpop.f32.mrb[103].mxu1  ;;  %v3377_v16 = vmul.f32 %v2992_v47, %v2992_v47  ;;  %3550 = vadd.xlane.f32.xlu1 %v3500_v17 }
 0x3a3   :  { %v3613_v14 = vmul.f32 %v6033_v55, %v2992_v47  ;;  %v3501_v24 = vmul.f32 %v6035_v46, %v2065_v6  ;;  %v3303_v45 = vmul.f32 %v2065_v6, %v2065_v6  ;;  %v3340_v29 = vadd.f32 %v3302_v26, %v3264_v8 }
 0x3a4   :  { %v3452_v43 = vadd.f32 %v3451_v15, %v3414_v61  ;;  %v3415_v63 = vadd.f32 %v3377_v16, %v3339_v34  ;;  %v3268_v61 = vmul.f32 %v6038_v39, %v6038_v39 }
 0x3a5   :  { %v3341_v19 = vadd.f32 %v3303_v45, %v3265_v48  ;;  %v3269_v45 = vmul.f32 %v6039_v12, %v6039_v12  ;;  %v6041_v48 = vld [vmem:[#allocation4 + $0x98] sm:$0xff] }
 0x3a6   :  { %3662 = vadd.xlane.f32.xlu0 %v3613_v14  ;;  %v3453_v40 = vadd.f32 %v3452_v43, %v3415_v63  ;;  %3552 = vadd.xlane.f32.xlu1 %v3501_v24  ;;  %v6040_v43 = vld [vmem:[#allocation4 + $0x90] sm:$0xff] }
 0x3a7   :  { %v2070_v52 = vpop.f32.mrb[104].mxu1  ;;  %v2997_v56 = vpop.f32.mrb[100].mxu0 }
 0x3a8   :  { %3190 = vst [vmem:[#allocation6 + $0x70] sm:$0xff] %v2070_v52  ;;  %v3502_v7 = vmul.f32 %v6036_v54, %v2070_v52  ;;  %3226 = vst [vmem:[#allocation8 + $0x60] sm:$0xff] %v2997_v56  ;;  %v3378_v18 = vmul.f32 %v2997_v56, %v2997_v56  ;;  %v3614_v44 = vmul.f32 %v6034_v11, %v2997_v56  ;;  %v5230_v10 = vpop.f32.mrb[105].mxu1  ;;  %v5496_v22 = vpop.f32.mrb[101].mxu0 }
 0x3a9   :  { %v2073_v20 = vpop.f32.mrb[106].mxu1  ;;  %v3000_v25 = vpop.f32.mrb[102].mxu0  ;;  %v3304_v31 = vmul.f32 %v2070_v52, %v2070_v52 }
 0x3aa   :  { %v3416_v57 = vadd.f32 %v3378_v18, %v3340_v29  ;;  %3191 = vst [vmem:[#allocation6 + $0x78] sm:$0xff] %v2073_v20  ;;  %3227 = vst [vmem:[#allocation8 + $0x68] sm:$0xff] %v3000_v25  ;;  %v5497_v58 = vpop.f32.mrb[103].mxu0  ;;  %3664 = vadd.xlane.f32.xlu0 %v3614_v44  ;;  %v5231_v23 = vpop.f32.mrb[107].mxu1  ;;  %v3379_v35 = vmul.f32 %v3000_v25, %v3000_v25  ;;  %3554 = vadd.xlane.f32.xlu1 %v3502_v7 }
 0x3ab   :  { %v3615_v41 = vmul.f32 %v6035_v46, %v3000_v25  ;;  %v3503_v28 = vmul.f32 %v6037_v2, %v2073_v20  ;;  %v3305_v49 = vmul.f32 %v2073_v20, %v2073_v20  ;;  %v3342_v37 = vadd.f32 %v3304_v31, %v3266_v38 }
 0x3ac   :  { %v3454_v13 = vadd.f32 %v3453_v40, %v3416_v57  ;;  %v3417_v21 = vadd.f32 %v3379_v35, %v3341_v19  ;;  %v3270_v57 = vmul.f32 %v6040_v43, %v6040_v43 }
 0x3ad   :  { %v3343_v17 = vadd.f32 %v3305_v49, %v3267_v9  ;;  %v3271_v49 = vmul.f32 %v6041_v48, %v6041_v48  ;;  %v6043_v9 = vld [vmem:[#allocation4 + $0xa8] sm:$0xff] }
 0x3ae   :  { %3666 = vadd.xlane.f32.xlu0 %v3615_v41  ;;  %v3455_v51 = vadd.f32 %v3454_v13, %v3417_v21  ;;  %3556 = vadd.xlane.f32.xlu1 %v3503_v28  ;;  %v6042_v13 = vld [vmem:[#allocation4 + $0xa0] sm:$0xff] }
 0x3af   :  { %v2078_v62 = vpop.f32.mrb[108].mxu1  ;;  %v3005_v32 = vpop.f32.mrb[104].mxu0 }
 0x3b0   :  { %3192 = vst [vmem:[#allocation6 + $0x80] sm:$0xff] %v2078_v62  ;;  %v3504_v53 = vmul.f32 %v6038_v39, %v2078_v62  ;;  %3228 = vst [vmem:[#allocation8 + $0x70] sm:$0xff] %v3005_v32  ;;  %v3380_v55 = vmul.f32 %v3005_v32, %v3005_v32  ;;  %v3616_v4 = vmul.f32 %v6036_v54, %v3005_v32  ;;  %v5234_v5 = vpop.f32.mrb[109].mxu1  ;;  %v5500_v33 = vpop.f32.mrb[105].mxu0 }
 0x3b1   :  { %v2081_v15 = vpop.f32.mrb[110].mxu1  ;;  %v3008_v0 = vpop.f32.mrb[106].mxu0  ;;  %v3306_v50 = vmul.f32 %v2078_v62, %v2078_v62 }
 0x3b2   :  { %v3418_v60 = vadd.f32 %v3380_v55, %v3342_v37  ;;  %3193 = vst [vmem:[#allocation6 + $0x88] sm:$0xff] %v2081_v15  ;;  %3229 = vst [vmem:[#allocation8 + $0x78] sm:$0xff] %v3008_v0  ;;  %v5501_v42 = vpop.f32.mrb[107].mxu0  ;;  %3668 = vadd.xlane.f32.xlu0 %v3616_v4  ;;  %v5235_v11 = vpop.f32.mrb[111].mxu1  ;;  %v3381_v59 = vmul.f32 %v3008_v0, %v3008_v0  ;;  %3558 = vadd.xlane.f32.xlu1 %v3504_v53 }
 0x3b3   :  { %v3617_v27 = vmul.f32 %v6037_v2, %v3008_v0  ;;  %v3505_v6 = vmul.f32 %v6039_v12, %v2081_v15  ;;  %v3307_v1 = vmul.f32 %v2081_v15, %v2081_v15  ;;  %v3344_v26 = vadd.f32 %v3306_v50, %v3268_v61 }
 0x3b4   :  { %v3456_v36 = vadd.f32 %v3455_v51, %v3418_v60  ;;  %v3419_v47 = vadd.f32 %v3381_v59, %v3343_v17  ;;  %v3272_v60 = vmul.f32 %v6042_v13, %v6042_v13 }
 0x3b5   :  { %v3345_v7 = vadd.f32 %v3307_v1, %v3269_v45  ;;  %v3273_v1 = vmul.f32 %v6043_v9, %v6043_v9  ;;  %v6045_v45 = vld [vmem:[#allocation4 + $0xb8] sm:$0xff] }
 0x3b6   :  { %3670 = vadd.xlane.f32.xlu0 %v3617_v27  ;;  %v3457_v30 = vadd.f32 %v3456_v36, %v3419_v47  ;;  %3560 = vadd.xlane.f32.xlu1 %v3505_v6  ;;  %v6044_v36 = vld [vmem:[#allocation4 + $0xb0] sm:$0xff] }
 0x3b7   :  { %v2086_v34 = vpop.f32.mrb[112].mxu1  ;;  %v3013_v16 = vpop.f32.mrb[108].mxu0 }
 0x3b8   :  { %3194 = vst [vmem:[#allocation6 + $0x90] sm:$0xff] %v2086_v34  ;;  %v3506_v14 = vmul.f32 %v6040_v43, %v2086_v34  ;;  %3230 = vst [vmem:[#allocation8 + $0x80] sm:$0xff] %v3013_v16  ;;  %v3382_v46 = vmul.f32 %v3013_v16, %v3013_v16  ;;  %v3618_v24 = vmul.f32 %v6038_v39, %v3013_v16  ;;  %v5238_v63 = vpop.f32.mrb[113].mxu1  ;;  %v5504_v8 = vpop.f32.mrb[109].mxu0 }
 0x3b9   :  { %v2089_v40 = vpop.f32.mrb[114].mxu1  ;;  %v3016_v52 = vpop.f32.mrb[110].mxu0  ;;  %v3308_v44 = vmul.f32 %v2086_v34, %v2086_v34 }
 0x3ba   :  { %v3420_v56 = vadd.f32 %v3382_v46, %v3344_v26  ;;  %3195 = vst [vmem:[#allocation6 + $0x98] sm:$0xff] %v2089_v40  ;;  %3231 = vst [vmem:[#allocation8 + $0x88] sm:$0xff] %v3016_v52  ;;  %v5505_v29 = vpop.f32.mrb[111].mxu0  ;;  %3672 = vadd.xlane.f32.xlu0 %v3618_v24  ;;  %v5239_v54 = vpop.f32.mrb[115].mxu1  ;;  %v3383_v18 = vmul.f32 %v3016_v52, %v3016_v52  ;;  %3562 = vadd.xlane.f32.xlu1 %v3506_v14 }
 0x3bb   :  { %v3619_v22 = vmul.f32 %v6039_v12, %v3016_v52  ;;  %v3507_v20 = vmul.f32 %v6041_v48, %v2089_v40  ;;  %v3309_v58 = vmul.f32 %v2089_v40, %v2089_v40  ;;  %v3346_v31 = vadd.f32 %v3308_v44, %v3270_v57 }
 0x3bc   :  { %v3458_v10 = vadd.f32 %v3457_v30, %v3420_v56  ;;  %v3421_v25 = vadd.f32 %v3383_v18, %v3345_v7  ;;  %v3274_v56 = vmul.f32 %v6044_v36, %v6044_v36 }
 0x3bd   :  { %v3347_v53 = vadd.f32 %v3309_v58, %v3271_v49  ;;  %v3275_v58 = vmul.f32 %v6045_v45, %v6045_v45  ;;  %v6047_v49 = vld [vmem:[#allocation4 + $0xc8] sm:$0xff] }
 0x3be   :  { %3674 = vadd.xlane.f32.xlu0 %v3619_v22  ;;  %v3459_v23 = vadd.f32 %v3458_v10, %v3421_v25  ;;  %3564 = vadd.xlane.f32.xlu1 %v3507_v20  ;;  %v6046_v10 = vld [vmem:[#allocation4 + $0xc0] sm:$0xff] }
 0x3bf   :  { %v2094_v19 = vpop.f32.mrb[116].mxu1  ;;  %v3021_v35 = vpop.f32.mrb[112].mxu0 }
 0x3c0   :  { %3196 = vst [vmem:[#allocation6 + $0xa0] sm:$0xff] %v2094_v19  ;;  %v3508_v41 = vmul.f32 %v6042_v13, %v2094_v19  ;;  %3232 = vst [vmem:[#allocation8 + $0x90] sm:$0xff] %v3021_v35  ;;  %v3384_v2 = vmul.f32 %v3021_v35, %v3021_v35  ;;  %v3620_v28 = vmul.f32 %v6040_v43, %v3021_v35  ;;  %v5242_v21 = vpop.f32.mrb[117].mxu1  ;;  %v5508_v38 = vpop.f32.mrb[113].mxu0 }
 0x3c1   :  { %v2097_v51 = vpop.f32.mrb[118].mxu1  ;;  %v3024_v62 = vpop.f32.mrb[114].mxu0  ;;  %v3310_v4 = vmul.f32 %v2094_v19, %v2094_v19 }
 0x3c2   :  { %v3422_v32 = vadd.f32 %v3384_v2, %v3346_v31  ;;  %3197 = vst [vmem:[#allocation6 + $0xa8] sm:$0xff] %v2097_v51  ;;  %3233 = vst [vmem:[#allocation8 + $0x98] sm:$0xff] %v3024_v62  ;;  %v5509_v37 = vpop.f32.mrb[115].mxu0  ;;  %3676 = vadd.xlane.f32.xlu0 %v3620_v28  ;;  %v5243_v39 = vpop.f32.mrb[119].mxu1  ;;  %v3385_v55 = vmul.f32 %v3024_v62, %v3024_v62  ;;  %3566 = vadd.xlane.f32.xlu1 %v3508_v41 }
 0x3c3   :  { %v3621_v33 = vmul.f32 %v6041_v48, %v3024_v62  ;;  %v3509_v15 = vmul.f32 %v6043_v9, %v2097_v51  ;;  %v3311_v42 = vmul.f32 %v2097_v51, %v2097_v51  ;;  %v3348_v50 = vadd.f32 %v3310_v4, %v3272_v60 }
 0x3c4   :  { %v3460_v5 = vadd.f32 %v3459_v23, %v3422_v32  ;;  %v3423_v0 = vadd.f32 %v3385_v55, %v3347_v53  ;;  %v3276_v32 = vmul.f32 %v6046_v10, %v6046_v10 }
 0x3c5   :  { %v3349_v14 = vadd.f32 %v3311_v42, %v3273_v1  ;;  %v3277_v42 = vmul.f32 %v6047_v49, %v6047_v49  ;;  %v6049_v1 = vld [vmem:[#allocation4 + $0xd8] sm:$0xff] }
 0x3c6   :  { %3678 = vadd.xlane.f32.xlu0 %v3621_v33  ;;  %v3461_v11 = vadd.f32 %v3460_v5, %v3423_v0  ;;  %3568 = vadd.xlane.f32.xlu1 %v3509_v15  ;;  %v6048_v5 = vld [vmem:[#allocation4 + $0xd0] sm:$0xff] }
 0x3c7   :  { %v2102_v17 = vpop.f32.mrb[120].mxu1  ;;  %v3029_v59 = vpop.f32.mrb[116].mxu0 }
 0x3c8   :  { %3198 = vst [vmem:[#allocation6 + $0xb0] sm:$0xff] %v2102_v17  ;;  %v3510_v27 = vmul.f32 %v6044_v36, %v2102_v17  ;;  %3234 = vst [vmem:[#allocation8 + $0xa0] sm:$0xff] %v3029_v59  ;;  %v3386_v12 = vmul.f32 %v3029_v59, %v3029_v59  ;;  %v3622_v6 = vmul.f32 %v6042_v13, %v3029_v59  ;;  %v5246_v47 = vpop.f32.mrb[121].mxu1  ;;  %v5512_v61 = vpop.f32.mrb[117].mxu0 }
 0x3c9   :  { %v2105_v30 = vpop.f32.mrb[122].mxu1  ;;  %v3032_v34 = vpop.f32.mrb[118].mxu0  ;;  %v3312_v24 = vmul.f32 %v2102_v17, %v2102_v17 }
 0x3ca   :  { %v3424_v16 = vadd.f32 %v3386_v12, %v3348_v50  ;;  %3199 = vst [vmem:[#allocation6 + $0xb8] sm:$0xff] %v2105_v30  ;;  %3235 = vst [vmem:[#allocation8 + $0xa8] sm:$0xff] %v3032_v34  ;;  %v5513_v26 = vpop.f32.mrb[119].mxu0  ;;  %3680 = vadd.xlane.f32.xlu0 %v3622_v6  ;;  %v5247_v43 = vpop.f32.mrb[123].mxu1  ;;  %v3387_v46 = vmul.f32 %v3032_v34, %v3032_v34  ;;  %3570 = vadd.xlane.f32.xlu1 %v3510_v27 }
 0x3cb   :  { %v3623_v8 = vmul.f32 %v6043_v9, %v3032_v34  ;;  %v3511_v40 = vmul.f32 %v6045_v45, %v2105_v30  ;;  %v3313_v29 = vmul.f32 %v2105_v30, %v2105_v30  ;;  %v3350_v44 = vadd.f32 %v3312_v24, %v3274_v56 }
 0x3cc   :  { %v3462_v63 = vadd.f32 %v3461_v11, %v3424_v16  ;;  %v3425_v52 = vadd.f32 %v3387_v46, %v3349_v14  ;;  %v3278_v16 = vmul.f32 %v6048_v5, %v6048_v5 }
 0x3cd   :  { %v3351_v41 = vadd.f32 %v3313_v29, %v3275_v58  ;;  %v3279_v29 = vmul.f32 %v6049_v1, %v6049_v1  ;;  %v6051_v58 = vld [vmem:[#allocation4 + $0xe8] sm:$0xff] }
 0x3ce   :  { %3682 = vadd.xlane.f32.xlu0 %v3623_v8  ;;  %v3463_v54 = vadd.f32 %v3462_v63, %v3425_v52  ;;  %3572 = vadd.xlane.f32.xlu1 %v3511_v40  ;;  %v6050_v63 = vld [vmem:[#allocation4 + $0xe0] sm:$0xff] }
 0x3cf   :  { %v2110_v7 = vpop.f32.mrb[124].mxu1  ;;  %v3037_v18 = vpop.f32.mrb[120].mxu0 }
 0x3d0   :  { %3200 = vst [vmem:[#allocation6 + $0xc0] sm:$0xff] %v2110_v7  ;;  %v3512_v22 = vmul.f32 %v6046_v10, %v2110_v7  ;;  %3236 = vst [vmem:[#allocation8 + $0xb0] sm:$0xff] %v3037_v18  ;;  %v3388_v48 = vmul.f32 %v3037_v18, %v3037_v18  ;;  %v3624_v20 = vmul.f32 %v6044_v36, %v3037_v18  ;;  %v5250_v25 = vpop.f32.mrb[125].mxu1  ;;  %v5516_v57 = vpop.f32.mrb[121].mxu0 }
 0x3d1   :  { %v2113_v23 = vpop.f32.mrb[126].mxu1  ;;  %v3040_v19 = vpop.f32.mrb[122].mxu0  ;;  %v3314_v28 = vmul.f32 %v2110_v7, %v2110_v7 }
 0x3d2   :  { %v3426_v35 = vadd.f32 %v3388_v48, %v3350_v44  ;;  %3201 = vst [vmem:[#allocation6 + $0xc8] sm:$0xff] %v2113_v23  ;;  %3237 = vst [vmem:[#allocation8 + $0xb8] sm:$0xff] %v3040_v19  ;;  %v5517_v31 = vpop.f32.mrb[123].mxu0  ;;  %3684 = vadd.xlane.f32.xlu0 %v3624_v20  ;;  %v5251_v13 = vpop.f32.mrb[127].mxu1  ;;  %v3389_v2 = vmul.f32 %v3040_v19, %v3040_v19  ;;  %3574 = vadd.xlane.f32.xlu1 %v3512_v22 }
 0x3d3   :  { %v3625_v38 = vmul.f32 %v6045_v45, %v3040_v19  ;;  %v3513_v51 = vmul.f32 %v6047_v49, %v2113_v23  ;;  %v3315_v37 = vmul.f32 %v2113_v23, %v2113_v23  ;;  %v3352_v4 = vadd.f32 %v3314_v28, %v3276_v32 }
 0x3d4   :  { %v3464_v21 = vadd.f32 %v3463_v54, %v3426_v35  ;;  %v3427_v62 = vadd.f32 %v3389_v2, %v3351_v41  ;;  %v3280_v35 = vmul.f32 %v6050_v63, %v6050_v63 }
 0x3d5   :  { %v3353_v27 = vadd.f32 %v3315_v37, %v3277_v42  ;;  %v3281_v37 = vmul.f32 %v6051_v58, %v6051_v58  ;;  %v6053_v42 = vld [vmem:[#allocation4 + $0xf8] sm:$0xff] }
 0x3d6   :  { %3686 = vadd.xlane.f32.xlu0 %v3625_v38  ;;  %v3465_v39 = vadd.f32 %v3464_v21, %v3427_v62  ;;  %3576 = vadd.xlane.f32.xlu1 %v3513_v51  ;;  %v6052_v21 = vld [vmem:[#allocation4 + $0xf0] sm:$0xff] }
 0x3d7   :  { %v2118_v53 = vpop.f32.mrb[128].mxu1  ;;  %v3045_v55 = vpop.f32.mrb[124].mxu0 }
 0x3d8   :  { %3202 = vst [vmem:[#allocation6 + $0xd0] sm:$0xff] %v2118_v53  ;;  %v3514_v33 = vmul.f32 %v6048_v5, %v2118_v53  ;;  %3238 = vst [vmem:[#allocation8 + $0xc0] sm:$0xff] %v3045_v55  ;;  %v3390_v9 = vmul.f32 %v3045_v55, %v3045_v55  ;;  %v3626_v15 = vmul.f32 %v6046_v10, %v3045_v55  ;;  %v5254_v0 = vpop.f32.mrb[129].mxu1  ;;  %v5520_v60 = vpop.f32.mrb[125].mxu0 }
 0x3d9   :  { %v2121_v11 = vpop.f32.mrb[130].mxu1  ;;  %v3048_v17 = vpop.f32.mrb[126].mxu0  ;;  %v3316_v6 = vmul.f32 %v2118_v53, %v2118_v53 }
 0x3da   :  { %v3428_v59 = vadd.f32 %v3390_v9, %v3352_v4  ;;  %3203 = vst [vmem:[#allocation6 + $0xd8] sm:$0xff] %v2121_v11  ;;  %3239 = vst [vmem:[#allocation8 + $0xc8] sm:$0xff] %v3048_v17  ;;  %v5521_v50 = vpop.f32.mrb[127].mxu0  ;;  %3688 = vadd.xlane.f32.xlu0 %v3626_v15  ;;  %v5255_v36 = vpop.f32.mrb[131].mxu1  ;;  %v3391_v12 = vmul.f32 %v3048_v17, %v3048_v17  ;;  %3578 = vadd.xlane.f32.xlu1 %v3514_v33 }
 0x3db   :  { %v3627_v61 = vmul.f32 %v6047_v49, %v3048_v17  ;;  %v3515_v30 = vmul.f32 %v6049_v1, %v2121_v11  ;;  %v3317_v26 = vmul.f32 %v2121_v11, %v2121_v11  ;;  %v3354_v24 = vadd.f32 %v3316_v6, %v3278_v16 }
 0x3dc   :  { %v3466_v47 = vadd.f32 %v3465_v39, %v3428_v59  ;;  %v3429_v34 = vadd.f32 %v3391_v12, %v3353_v27  ;;  %v3282_v59 = vmul.f32 %v6052_v21, %v6052_v21 }
 0x3dd   :  { %v3355_v22 = vadd.f32 %v3317_v26, %v3279_v29  ;;  %v3283_v26 = vmul.f32 %v6053_v42, %v6053_v42  ;;  %v6055_v29 = vld [vmem:[#allocation4 + $0x108] sm:$0xff] }
 0x3de   :  { %3690 = vadd.xlane.f32.xlu0 %v3627_v61  ;;  %v3467_v43 = vadd.f32 %v3466_v47, %v3429_v34  ;;  %3580 = vadd.xlane.f32.xlu1 %v3515_v30  ;;  %v6054_v47 = vld [vmem:[#allocation4 + $0x100] sm:$0xff] }
 0x3df   :  { %v2126_v14 = vpop.f32.mrb[132].mxu1  ;;  %v3053_v46 = vpop.f32.mrb[128].mxu0 }
 0x3e0   :  { %3204 = vst [vmem:[#allocation6 + $0xe0] sm:$0xff] %v2126_v14  ;;  %v3516_v8 = vmul.f32 %v6050_v63, %v2126_v14  ;;  %3240 = vst [vmem:[#allocation8 + $0xd0] sm:$0xff] %v3053_v46  ;;  %v3392_v45 = vmul.f32 %v3053_v46, %v3053_v46  ;;  %v3628_v40 = vmul.f32 %v6048_v5, %v3053_v46  ;;  %v5258_v52 = vpop.f32.mrb[133].mxu1  ;;  %v5524_v56 = vpop.f32.mrb[129].mxu0 }
 0x3e1   :  { %v2129_v54 = vpop.f32.mrb[134].mxu1  ;;  %v3056_v7 = vpop.f32.mrb[130].mxu0  ;;  %v3318_v20 = vmul.f32 %v2126_v14, %v2126_v14 }
 0x3e2   :  { %v3430_v18 = vadd.f32 %v3392_v45, %v3354_v24  ;;  %3205 = vst [vmem:[#allocation6 + $0xe8] sm:$0xff] %v2129_v54  ;;  %3241 = vst [vmem:[#allocation8 + $0xd8] sm:$0xff] %v3056_v7  ;;  %v5525_v44 = vpop.f32.mrb[131].mxu0  ;;  %3692 = vadd.xlane.f32.xlu0 %v3628_v40  ;;  %v5259_v10 = vpop.f32.mrb[135].mxu1  ;;  %v3393_v48 = vmul.f32 %v3056_v7, %v3056_v7  ;;  %3582 = vadd.xlane.f32.xlu1 %v3516_v8 }
 0x3e3   :  { %v3629_v57 = vmul.f32 %v6049_v1, %v3056_v7  ;;  %v3517_v23 = vmul.f32 %v6051_v58, %v2129_v54  ;;  %v3319_v31 = vmul.f32 %v2129_v54, %v2129_v54  ;;  %v3356_v28 = vadd.f32 %v3318_v20, %v3280_v35 }
 0x3e4   :  { %v3468_v25 = vadd.f32 %v3467_v43, %v3430_v18  ;;  %v3431_v19 = vadd.f32 %v3393_v48, %v3355_v22  ;;  %v3284_v18 = vmul.f32 %v6054_v47, %v6054_v47 }
 0x3e5   :  { %v3357_v33 = vadd.f32 %v3319_v31, %v3281_v37  ;;  %v3285_v31 = vmul.f32 %v6055_v29, %v6055_v29  ;;  %v6057_v37 = vld [vmem:[#allocation4 + $0x118] sm:$0xff] }
 0x3e6   :  { %3694 = vadd.xlane.f32.xlu0 %v3629_v57  ;;  %v3469_v13 = vadd.f32 %v3468_v25, %v3431_v19  ;;  %3584 = vadd.xlane.f32.xlu1 %v3517_v23  ;;  %v6056_v25 = vld [vmem:[#allocation4 + $0x110] sm:$0xff] }
 0x3e7   :  { %v2134_v41 = vpop.f32.mrb[136].mxu1  ;;  %v3061_v2 = vpop.f32.mrb[132].mxu0 }
 0x3e8   :  { %3206 = vst [vmem:[#allocation6 + $0xf0] sm:$0xff] %v2134_v41  ;;  %v3518_v38 = vmul.f32 %v6052_v21, %v2134_v41  ;;  %3242 = vst [vmem:[#allocation8 + $0xe0] sm:$0xff] %v3061_v2  ;;  %v3394_v49 = vmul.f32 %v3061_v2, %v3061_v2  ;;  %v3630_v51 = vmul.f32 %v6050_v63, %v3061_v2  ;;  %v5262_v62 = vpop.f32.mrb[137].mxu1  ;;  %v5528_v32 = vpop.f32.mrb[133].mxu0 }
 0x3e9   :  { %v2137_v39 = vpop.f32.mrb[138].mxu1  ;;  %v3064_v53 = vpop.f32.mrb[134].mxu0  ;;  %v3320_v15 = vmul.f32 %v2134_v41, %v2134_v41 }
 0x3ea   :  { %v3432_v55 = vadd.f32 %v3394_v49, %v3356_v28  ;;  %3207 = vst [vmem:[#allocation6 + $0xf8] sm:$0xff] %v2137_v39  ;;  %3243 = vst [vmem:[#allocation8 + $0xe8] sm:$0xff] %v3064_v53  ;;  %v5529_v4 = vpop.f32.mrb[135].mxu0  ;;  %3696 = vadd.xlane.f32.xlu0 %v3630_v51  ;;  %v5263_v5 = vpop.f32.mrb[139].mxu1  ;;  %v3395_v9 = vmul.f32 %v3064_v53, %v3064_v53  ;;  %3586 = vadd.xlane.f32.xlu1 %v3518_v38 }
 0x3eb   :  { %v3631_v60 = vmul.f32 %v6051_v58, %v3064_v53  ;;  %v3519_v11 = vmul.f32 %v6053_v42, %v2137_v39  ;;  %v3321_v50 = vmul.f32 %v2137_v39, %v2137_v39  ;;  %v3358_v6 = vadd.f32 %v3320_v15, %v3282_v59 }
 0x3ec   :  { %v3470_v0 = vadd.f32 %v3469_v13, %v3432_v55  ;;  %v3433_v17 = vadd.f32 %v3395_v9, %v3357_v33  ;;  %v3286_v55 = vmul.f32 %v6056_v25, %v6056_v25  ;;  %v3287_v15 = vmul.f32 %v6057_v37, %v6057_v37 }
 0x3ed   :  { %v3359_v8 = vadd.f32 %v3321_v50, %v3283_v26 }
 0x3ee   :  { %3698 = vadd.xlane.f32.xlu0 %v3631_v60  ;;  %v3471_v36 = vadd.f32 %v3470_v0, %v3433_v17  ;;  %3588 = vadd.xlane.f32.xlu1 %v3519_v11  ;;  %v6058_v17 = vld [vmem:[#allocation4 + $0x120] sm:$0xff] }
 0x3ef   :  { %v2142_v27 = vpop.f32.mrb[140].mxu1  ;;  %v3069_v12 = vpop.f32.mrb[136].mxu0 }
 0x3f0   :  { %3208 = vst [vmem:[#allocation6 + $0x100] sm:$0xff] %v2142_v27  ;;  %v3520_v61 = vmul.f32 %v6054_v47, %v2142_v27  ;;  %3244 = vst [vmem:[#allocation8 + $0xf0] sm:$0xff] %v3069_v12  ;;  %v3396_v1 = vmul.f32 %v3069_v12, %v3069_v12  ;;  %v3632_v30 = vmul.f32 %v6052_v21, %v3069_v12  ;;  %v5266_v34 = vpop.f32.mrb[141].mxu1  ;;  %v5532_v16 = vpop.f32.mrb[137].mxu0 }
 0x3f1   :  { %v2145_v43 = vpop.f32.mrb[142].mxu1  ;;  %v3072_v14 = vpop.f32.mrb[138].mxu0  ;;  %v3322_v40 = vmul.f32 %v2142_v27, %v2142_v27 }
 0x3f2   :  { %v3434_v46 = vadd.f32 %v3396_v1, %v3358_v6  ;;  %3209 = vst [vmem:[#allocation6 + $0x108] sm:$0xff] %v2145_v43  ;;  %3245 = vst [vmem:[#allocation8 + $0xf8] sm:$0xff] %v3072_v14  ;;  %v5533_v24 = vpop.f32.mrb[139].mxu0  ;;  %3700 = vadd.xlane.f32.xlu0 %v3632_v30  ;;  %v5267_v63 = vpop.f32.mrb[143].mxu1  ;;  %v3397_v45 = vmul.f32 %v3072_v14, %v3072_v14  ;;  %3590 = vadd.xlane.f32.xlu1 %v3520_v61  ;;  %v3716_v6 = vld [vmem:[%s8582_s5] sm:$0xff] }
 0x3f3   :  { %v3633_v56 = vmul.f32 %v6053_v42, %v3072_v14  ;;  %v3521_v54 = vmul.f32 %v6055_v29, %v2145_v43  ;;  %v3323_v44 = vmul.f32 %v2145_v43, %v2145_v43  ;;  %v3360_v20 = vadd.f32 %v3322_v40, %v3284_v18  ;;  %v6059_v63 = vld [vmem:[#allocation4 + $0x128] sm:$0xff] }
 0x3f4   :  { %v3472_v52 = vadd.f32 %v3471_v36, %v3434_v46  ;;  %v3435_v7 = vadd.f32 %v3397_v45, %v3359_v8  ;;  %v3792_v45 = vld [vmem:[%s8583_s6] sm:$0xff]  ;;  %v3288_v40 = vmul.f32 %v6058_v17, %v6058_v17 }
 0x3f5   :  { %v3361_v38 = vadd.f32 %v3323_v44, %v3285_v31 }
 0x3f6   :  { %3702 = vadd.xlane.f32.xlu0 %v3633_v56  ;;  %v3473_v10 = vadd.f32 %v3472_v52, %v3435_v7  ;;  %3592 = vadd.xlane.f32.xlu1 %v3521_v54  ;;  %v3717_v56 = vld [vmem:[%s8582_s5 + $0x8] sm:$0xff]  ;;  %v3289_v54 = vmul.f32 %v6059_v63, %v6059_v63 }
 0x3f7   :  { %v2150_v22 = vpop.f32.mrb[144].mxu1  ;;  %v3077_v48 = vpop.f32.mrb[140].mxu0 }
 0x3f8   :  { %3210 = vst [vmem:[#allocation6 + $0x110] sm:$0xff] %v2150_v22  ;;  %v3522_v57 = vmul.f32 %v6056_v25, %v2150_v22  ;;  %3246 = vst [vmem:[#allocation8 + $0x100] sm:$0xff] %v3077_v48  ;;  %v3398_v58 = vmul.f32 %v3077_v48, %v3077_v48  ;;  %v3634_v23 = vmul.f32 %v6054_v47, %v3077_v48  ;;  %v5270_v19 = vpop.f32.mrb[145].mxu1  ;;  %v5536_v35 = vpop.f32.mrb[141].mxu0 }
 0x3f9   :  { %v2153_v13 = vpop.f32.mrb[146].mxu1  ;;  %v3080_v41 = vpop.f32.mrb[142].mxu0  ;;  %v3324_v51 = vmul.f32 %v2150_v22, %v2150_v22  ;;  %v3793_v19 = vld [vmem:[%s8583_s6 + $0x8] sm:$0xff] }
 0x3fa   :  { %v3436_v2 = vadd.f32 %v3398_v58, %v3360_v20  ;;  %3211 = vst [vmem:[#allocation6 + $0x118] sm:$0xff] %v2153_v13  ;;  %3247 = vst [vmem:[#allocation8 + $0x108] sm:$0xff] %v3080_v41  ;;  %v5537_v28 = vpop.f32.mrb[143].mxu0  ;;  %3704 = vadd.xlane.f32.xlu0 %v3634_v23  ;;  %v5271_v21 = vpop.f32.mrb[147].mxu1  ;;  %v3399_v49 = vmul.f32 %v3080_v41, %v3080_v41  ;;  %3594 = vadd.xlane.f32.xlu1 %v3522_v57 }
 0x3fb   :  { %v3635_v32 = vmul.f32 %v6055_v29, %v3080_v41  ;;  %v3523_v39 = vmul.f32 %v6057_v37, %v2153_v13  ;;  %v3325_v4 = vmul.f32 %v2153_v13, %v2153_v13  ;;  %v3362_v9 = vadd.f32 %v3324_v51, %v3286_v55  ;;  %v3718_v41 = vld [vmem:[%s8582_s5 + $0x10] sm:$0xff] }
 0x3fc   :  { %v3474_v62 = vadd.f32 %v3473_v10, %v3436_v2  ;;  %v3437_v53 = vadd.f32 %v3399_v49, %v3361_v38 }
 0x3fd   :  { %v3363_v27 = vadd.f32 %v3325_v4, %v3287_v15 }
 0x3fe   :  { %3706 = vadd.xlane.f32.xlu0 %v3635_v32  ;;  %v3475_v5 = vadd.f32 %v3474_v62, %v3437_v53  ;;  %3596 = vadd.xlane.f32.xlu1 %v3523_v39  ;;  %v3794_v53 = vld [vmem:[%s8583_s6 + $0x10] sm:$0xff] }
 0x3ff   :  { %v3085_v33 = vpop.f32.mrb[144].mxu0  ;;  %v2158_v42 = vpop.f32.mrb[148].mxu1 }
 0x400   :  { %3248 = vst [vmem:[#allocation8 + $0x110] sm:$0xff] %v3085_v33  ;;  %v3400_v0 = vmul.f32 %v3085_v33, %v3085_v33  ;;  %v3636_v60 = vmul.f32 %v6056_v25, %v3085_v33  ;;  %v5540_v11 = vpop.f32.mrb[145].mxu0  ;;  %3212 = vst [vmem:[#allocation6 + $0x120] sm:$0xff] %v2158_v42  ;;  %v3524_v59 = vmul.f32 %v6058_v17, %v2158_v42  ;;  %v5274_v50 = vpop.f32.mrb[149].mxu1  ;;  %v3719_v33 = vld [vmem:[%s8582_s5 + $0x18] sm:$0xff] }
 0x401   :  { %v3088_v36 = vpop.f32.mrb[146].mxu0  ;;  %v3527_v47 = vpop.xlane.xlu0 %3526  ;;  %v3326_v26 = vmul.f32 %v2158_v42, %v2158_v42 }
 0x402   :  { %v3438_v12 = vadd.f32 %v3400_v0, %v3362_v9  ;;  %3249 = vst [vmem:[#allocation8 + $0x118] sm:$0xff] %v3088_v36  ;;  %v3401_v61 = vmul.f32 %v3088_v36, %v3088_v36  ;;  %v2161_v1 = vpop.f32.mrb[150].mxu1  ;;  %3708 = vadd.xlane.f32.xlu0 %v3636_v60  ;;  %v5541_v30 = vpop.f32.mrb[147].mxu0  ;;  %3598 = vadd.xlane.f32.xlu1 %v3524_v59  ;;  %v3795_v59 = vld [vmem:[%s8583_s6 + $0x18] sm:$0xff] }
 0x403   :  { %3213 = vst [vmem:[#allocation6 + $0x128] sm:$0xff] %v2161_v1  ;;  %v5275_v34 = vpop.f32.mrb[151].mxu1  ;;  %v3637_v14 = vmul.f32 %v6057_v37, %v3088_v36  ;;  %v3529_v46 = vpop.xlane.xlu1 %3528  ;;  %v3754_v24 = vsub.f32 %v3527_v47, %v3716_v6  ;;  %v3525_v8 = vmul.f32 %v6059_v63, %v2161_v1  ;;  %v3327_v29 = vmul.f32 %v2161_v1, %v2161_v1  ;;  %v3720_v6 = vld [vmem:[%s8582_s5 + $0x20] sm:$0xff] }
 0x404   :  { %v3476_v16 = vadd.f32 %v3475_v5, %v3438_v12  ;;  %v3439_v43 = vadd.f32 %v3401_v61, %v3363_v27  ;;  %v3364_v44 = vadd.f32 %v3326_v26, %v3288_v40  ;;  %v3755_v58 = vsub.f32 %v3529_v46, %v3717_v56 }
 0x405   :  { %v3869_v57 = vmul.f32 %v3754_v24, %v3754_v24  ;;  %v3365_v35 = vadd.f32 %v3327_v29, %v3289_v54 }
 0x406   :  { %v3477_v52 = vadd.f32 %v3476_v16, %v3439_v43  ;;  %3710 = vadd.xlane.f32.xlu0 %v3637_v14  ;;  %3600 = vadd.xlane.f32.xlu1 %v3525_v8  ;;  %v3870_v55 = vmul.f32 %v3755_v58, %v3755_v58  ;;  %v3796_v43 = vld [vmem:[%s8583_s6 + $0x20] sm:$0xff] }
 0x407   :  { %v3093_v7 = vpop.f32.mrb[148].mxu0  ;;  %v3641_v18 = vpop.xlane.xlu0 %3640 }
 0x408   :  { %3250 = vst [vmem:[#allocation8 + $0x120] sm:$0xff] %v3093_v7  ;;  %v3402_v10 = vmul.f32 %v3093_v7, %v3093_v7  ;;  %v3638_v22 = vmul.f32 %v6058_v17, %v3093_v7  ;;  %v3830_v48 = vsub.f32 %v3641_v18, %v3792_v45  ;;  %v3531_v20 = vpop.xlane.xlu1 %3530  ;;  %v5544_v25 = vpop.f32.mrb[149].mxu0  ;;  %v3721_v45 = vld [vmem:[%s8582_s5 + $0x28] sm:$0xff]  ;;  %v3442_v7 = vld [vmem:[#allocation2] sm:$0x1] }
 0x409   :  { %v3096_v23 = vpop.f32.mrb[150].mxu0  ;;  %v3756_v39 = vsub.f32 %v3531_v20, %v3718_v41 }
 0x40a   :  { %v3440_v31 = vadd.f32 %v3402_v10, %v3364_v44  ;;  %v3907_v13 = vmul.f32 %v3830_v48, %v3830_v48  ;;  %3251 = vst [vmem:[#allocation8 + $0x128] sm:$0xff] %v3096_v23  ;;  %v3403_v2 = vmul.f32 %v3096_v23, %v3096_v23  ;;  %v5545_v28 = vpop.f32.mrb[151].mxu0  ;;  %3712 = vadd.xlane.f32.xlu0 %v3638_v22  ;;  %v3797_v44 = vld [vmem:[%s8583_s6 + $0x28] sm:$0xff] }
 0x40b   :  { %v3639_v21 = vmul.f32 %v6059_v63, %v3096_v23  ;;  %v3643_v38 = vpop.xlane.xlu0 %3642  ;;  %v3871_v11 = vmul.f32 %v3756_v39, %v3756_v39 }
 0x40c   :  { %v3478_v49 = vadd.f32 %v3477_v52, %v3440_v31  ;;  %v3945_v51 = vadd.f32 %v3907_v13, %v3869_v57  ;;  %v3441_v62 = vadd.f32 %v3403_v2, %v3365_v35  ;;  %v3831_v32 = vsub.f32 %v3643_v38, %v3793_v19  ;;  %v3533_v37 = vpop.xlane.xlu1 %3532 }
 0x40d   :  { %v3757_v17 = vsub.f32 %v3533_v37, %v3719_v33 }
 0x40e   :  { %v3479_v4 = vadd.f32 %v3478_v49, %v3441_v62  ;;  %v3908_v5 = vmul.f32 %v3831_v32, %v3831_v32  ;;  %3714 = vadd.xlane.f32.xlu0 %v3639_v21  ;;  %v3984_v50 = vsel %vm3983_vm0, %v3945_v51, 0.0 }
 0x40f   :  { %v3645_v9 = vpop.xlane.xlu0 %3644  ;;  %v3872_v46 = vmul.f32 %v3757_v17, %v3757_v17 }
 0x410   :  { %v3480_v15 = vrot.slane %v3479_v4, 4  ;;  %v3946_v0 = vadd.f32 %v3908_v5, %v3870_v55  ;;  %v3832_v60 = vsub.f32 %v3645_v9, %v3794_v53  ;;  %v3535_v42 = vpop.xlane.xlu1 %3534 }
 0x411   :  { %v3758_v26 = vsub.f32 %v3535_v42, %v3720_v6 }
 0x412   :  { %v3481_v36 = vadd.f32 %v3480_v15, %v3479_v4  ;;  %v3985_v27 = vsel %vm3983_vm0, %v3946_v0, 0.0  ;;  %v3909_v12 = vmul.f32 %v3832_v60, %v3832_v60 }
 0x413   :  { %v3986_v47 = vadd.f32 %v3985_v27, %v3984_v50  ;;  %v3647_v61 = vpop.xlane.xlu0 %3646  ;;  %v3873_v18 = vmul.f32 %v3758_v26, %v3758_v26 }
 0x414   :  { %v3482_v1 = vrot.slane %v3481_v36, 2  ;;  %v3947_v30 = vadd.f32 %v3909_v12, %v3871_v11  ;;  %v3833_v34 = vsub.f32 %v3647_v61, %v3795_v59  ;;  %v3537_v16 = vpop.xlane.xlu1 %3536 }
 0x415   :  { %v3759_v48 = vsub.f32 %v3537_v16, %v3721_v45 }
 0x416   :  { %v3483_v14 = vadd.f32 %v3482_v1, %v3481_v36  ;;  %v3987_v24 = vsel %vm3983_vm0, %v3947_v30, 0.0  ;;  %v3910_v63 = vmul.f32 %v3833_v34, %v3833_v34 }
 0x417   :  { %v3988_v8 = vadd.f32 %v3987_v24, %v3986_v47  ;;  %v3649_v40 = vpop.xlane.xlu0 %3648  ;;  %v3874_v31 = vmul.f32 %v3759_v48, %v3759_v48 }
 0x418   :  { %v3484_v52 = vrot.slane %v3483_v14, 1  ;;  %v3948_v56 = vadd.f32 %v3910_v63, %v3872_v46  ;;  %v3834_v29 = vsub.f32 %v3649_v40, %v3796_v43  ;;  %v8126_v54 = vpop.xlane.xlu1 %3538 }
 0x41a   :  { %v3485_v10 = vadd.f32 %v3484_v52, %v3483_v14  ;;  %v3989_v22 = vsel %vm3983_vm0, %v3948_v56, 0.0  ;;  %v3911_v20 = vmul.f32 %v3834_v29, %v3834_v29 }
 0x41b   :  { %v3990_v25 = vadd.f32 %v3989_v22, %v3988_v8  ;;  %v3651_v57 = vpop.xlane.xlu0 %3650 }
 0x41c   :  { %v3486_v58 = vadd.f32 %v3485_v10, %v3442_v7  ;;  %v3949_v23 = vadd.f32 %v3911_v20, %v3873_v18  ;;  %v3835_v19 = vsub.f32 %v3651_v57, %v3797_v44  ;;  %v8132_v35 = vpop.xlane.xlu1 %3540 }
 0x41e   :  { %3487 = vst [vmem:[#allocation2] sm:$0x1] %v3486_v58  ;;  %v3991_v13 = vsel %vm3983_vm0, %v3949_v23, 0.0  ;;  %v3912_v41 = vmul.f32 %v3835_v19, %v3835_v19 }
 0x41f   :  { %v3992_v2 = vadd.f32 %v3991_v13, %v3990_v25  ;;  %v8135_v28 = vpop.xlane.xlu0 %3652 }
 0x420   :  { %v3950_v21 = vadd.f32 %v3912_v41, %v3874_v31  ;;  %v8137_v38 = vpop.xlane.xlu1 %3542 }
 0x422   :  { %v3993_v49 = vsel %vm3983_vm0, %v3950_v21, 0.0 }
 0x423   :  { %v8140_v51 = vadd.f32 %v3993_v49, %v3992_v2  ;;  %v8142_v62 = vpop.xlane.xlu0 %3654 }
 0x424   :  { %v8144_v32 = vpop.xlane.xlu1 %3544 }
 0x425   :  { %v4071_v37 = vld [vmem:[#allocation2] sm:$0x1] }
 0x426   :  { %v4073_v39 = vsel %vm4072_vm1, %v4071_v37, 0.0 }
 0x427   :  { %v8146_v53 = vpop.xlane.xlu0 %3656  ;;  %4074 = vadd.xlane.f32.xlu1 %v4073_v39 }
 0x428   :  { %v8148_v55 = vpop.xlane.xlu1 %3546 }
 0x42b   :  { %v8152_v4 = vpop.xlane.xlu0 %3658 }
 0x42c   :  { %v8154_v5 = vpop.xlane.xlu1 %3548 }
 0x42f   :  { %v8156_v33 = vpop.xlane.xlu0 %3660 }
 0x430   :  { %v8158_v9 = vpop.xlane.xlu1 %3550 }
 0x433   :  { %v8160_v15 = vpop.xlane.xlu0 %3662 }
 0x434   :  { %v8162_v0 = vpop.xlane.xlu1 %3552 }
 0x437   :  { %v8164_v60 = vpop.xlane.xlu0 %3664 }
 0x438   :  { %v8166_v42 = vpop.xlane.xlu1 %3554 }
 0x439   :  { %6071 = shalt.err (!%p6068_p4)
}
 0x43a   :  { %s6072_s3 = scalar_lea.hbm %s8585_s8, 4864 }
 0x43b   :  { %p6073_p5 = scmp.ne.s32.totalorder %s8585_s8, %s6072_s3  ;;  %p6076_p6 = scmp.lt.u32.totalorder %s6072_s3, %s8585_s8 }
 0x43d   :  { %p6078_p7 = pnand %p6076_p6, %p6073_p5 }
 0x43f   :  { %6081 = shalt.err (!%p6078_p7)
}
 0x440   :  { %s6180_s19 = smov 128   ;;  %s6181_s20 = smov 8   ;;  %v8183_v3 = vpop.xlane.xlu0 %3666  ;;  %v8185_v11 = vpop.xlane.xlu1 %3556 }
 0x441   :  { %4104 = dma.vmem_to_hbm [thread:$0]  %s4099_s12, 4864, %s8585_s8, [#allocation7], %s6180_s19, %s6180_s19, %s6181_s20  }
 0x442   :  { %s6182_s23 = smov [#allocation4]   ;;  %s6183_s25 = smov [#allocation8]  }
 0x443   :  { %s4086_s24 = sshll.u32 %s6182_s23, 4  ;;  %s4110_s2 = sshll.u32 %s6183_s25, 4  ;;  %s4087_s24 = int_to_ptr.vmem [resolvable:$true] %s4086_s24  ;;  %s4111_s2 = int_to_ptr.vmem [resolvable:$true] %s4110_s2 }
 0x444   :  { %s6082_s26 = scalar_lea.vmem %s4087_s24, 4864  ;;  %p6087_p9 = scmp.lt.s32.totalorder %s4087_s24, %s4087_s24 }
 0x445   :  { %p6083_p8 = scmp.ne.s32.totalorder %s4087_s24, %s6082_s26  ;;  %p6088_p10 = scmp.lt.s32.totalorder %s6082_s26, %s6082_s26 }
 0x447   :  { %p6089_p11 = por %p6088_p10, %p6087_p9 }
 0x449   :  { %p6090_p12 = pnand %p6089_p11, %p6083_p8 }
 0x44b   :  { %6093 = shalt.err (!%p6090_p12)
}
 0x44c   :  { %s6094_s8 = scalar_lea.hbm %s8584_s7, 4864 }
 0x44d   :  { %p6095_p13 = scmp.ne.s32.totalorder %s8584_s7, %s6094_s8  ;;  %p6098_p0 = scmp.lt.u32.totalorder %s6094_s8, %s8584_s7 }
 0x44f   :  { %p6100_p1 = pnand %p6098_p0, %p6095_p13 }
 0x451   :  { %6103 = shalt.err (!%p6100_p1)
}
 0x452   :  { %4092 = dma.vmem_to_hbm [thread:$0]  %s4087_s24, 4864, %s8584_s7, [#allocation5], %s6180_s19, %s6180_s19, %s6181_s20   ;;  %v8202_v17 = vpop.xlane.xlu0 %3668 }
 0x453   :  { %s6104_s14 = scalar_lea.vmem %s4111_s2, 4864  ;;  %p6109_p3 = scmp.lt.s32.totalorder %s4111_s2, %s4111_s2 }
 0x454   :  { %p6105_p2 = scmp.ne.s32.totalorder %s4111_s2, %s6104_s14  ;;  %p6110_p4 = scmp.lt.s32.totalorder %s6104_s14, %s6104_s14 }
 0x456   :  { %p6111_p5 = por %p6110_p4, %p6109_p3 }
 0x458   :  { %p6112_p6 = pnand %p6111_p5, %p6105_p2 }
 0x45a   :  { %6115 = shalt.err (!%p6112_p6)
}
 0x45b   :  { %s6116_s16 = scalar_lea.hbm %s8586_s9, 4864 }
 0x45c   :  { %p6117_p7 = scmp.ne.s32.totalorder %s8586_s9, %s6116_s16  ;;  %p6120_p8 = scmp.lt.u32.totalorder %s6116_s16, %s8586_s9 }
 0x45e   :  { %p6122_p9 = pnand %p6120_p8, %p6117_p7 }
 0x460   :  { %6125 = shalt.err (!%p6122_p9)
}
 0x461   :  { %4116 = dma.vmem_to_hbm [thread:$0]  %s4111_s2, 4864, %s8586_s9, [#allocation7], %s6180_s19, %s6180_s19, %s6181_s20   ;;  %v8219_v59 = vpop.xlane.xlu1 %3558  ;;  %v8221_v50 = vpop.xlane.xlu0 %3670 }
 0x462   :  { %v3798_v30 = vld [vmem:[%s8583_s6 + $0x30] sm:$0xff]  ;;  %v3799_v43 = vld [vmem:[%s8583_s6 + $0x38] sm:$0xff]  ;;  %v3800_v46 = vld [vmem:[%s8583_s6 + $0x40] sm:$0xff]  ;;  %s6185_s16 = smov [#allocation11]  }
 0x463   :  { %v3722_v26 = vld [vmem:[%s8582_s5 + $0x30] sm:$0xff]  ;;  %v3836_v14 = vsub.f32 %v8135_v28, %v3798_v30  ;;  %v3723_v24 = vld [vmem:[%s8582_s5 + $0x38] sm:$0xff]  ;;  %v3724_v45 = vld [vmem:[%s8582_s5 + $0x40] sm:$0xff]  ;;  %v3837_v40 = vsub.f32 %v8142_v62, %v3799_v43  ;;  %v3838_v29 = vsub.f32 %v8146_v53, %v3800_v46  ;;  %s4133_s17 = sshll.u32 %s6185_s16, 4  ;;  %s4134_s17 = int_to_ptr.vmem [resolvable:$true] %s4133_s17 }
 0x464   :  { %v3760_v8 = vsub.f32 %v8126_v54, %v3722_v26  ;;  %v3801_v52 = vld [vmem:[%s8583_s6 + $0x48] sm:$0xff]  ;;  %v3761_v7 = vsub.f32 %v8132_v35, %v3723_v24  ;;  %v3802_v44 = vld [vmem:[%s8583_s6 + $0x50] sm:$0xff]  ;;  %v3762_v10 = vsub.f32 %v8137_v38, %v3724_v45  ;;  %v3803_v31 = vld [vmem:[%s8583_s6 + $0x58] sm:$0xff] }
 0x465   :  { %v8223_v36 = vpop.xlane.xlu1 %3560  ;;  %v8225_v27 = vpop.xlane.xlu0 %3672  ;;  %v3913_v18 = vmul.f32 %v3836_v14, %v3836_v14  ;;  %v3725_v54 = vld [vmem:[%s8582_s5 + $0x48] sm:$0xff]  ;;  %v3839_v22 = vsub.f32 %v8152_v4, %v3801_v52  ;;  %v3914_v25 = vmul.f32 %v3837_v40, %v3837_v40  ;;  %v3726_v57 = vld [vmem:[%s8582_s5 + $0x50] sm:$0xff]  ;;  %v3915_v19 = vmul.f32 %v3838_v29, %v3838_v29  ;;  %v3727_v38 = vld [vmem:[%s8582_s5 + $0x58] sm:$0xff] }
 0x466   :  { %v3875_v20 = vmul.f32 %v3760_v8, %v3760_v8  ;;  %v3763_v23 = vsub.f32 %v8144_v32, %v3725_v54  ;;  %v3840_v35 = vsub.f32 %v8156_v33, %v3802_v44  ;;  %v3876_v13 = vmul.f32 %v3761_v7, %v3761_v7  ;;  %v3804_v49 = vld [vmem:[%s8583_s6 + $0x60] sm:$0xff]  ;;  %v3805_v30 = vld [vmem:[%s8583_s6 + $0x68] sm:$0xff]  ;;  %v3806_v45 = vld [vmem:[%s8583_s6 + $0x70] sm:$0xff] }
 0x467   :  { %v3877_v2 = vmul.f32 %v3762_v10, %v3762_v10  ;;  %v3764_v28 = vsub.f32 %v8148_v55, %v3726_v57  ;;  %v3916_v21 = vmul.f32 %v3839_v22, %v3839_v22  ;;  %v3728_v37 = vld [vmem:[%s8582_s5 + $0x60] sm:$0xff]  ;;  %v3841_v39 = vsub.f32 %v8160_v15, %v3803_v31  ;;  %v3729_v15 = vld [vmem:[%s8582_s5 + $0x68] sm:$0xff]  ;;  %v3730_v54 = vld [vmem:[%s8582_s5 + $0x70] sm:$0xff] }
 0x468   :  { %v3951_v41 = vadd.f32 %v3913_v18, %v3875_v20  ;;  %v3952_v32 = vadd.f32 %v3914_v25, %v3876_v13  ;;  %v3878_v55 = vmul.f32 %v3763_v23, %v3763_v23  ;;  %v3917_v33 = vmul.f32 %v3840_v35, %v3840_v35  ;;  %v3807_v44 = vld [vmem:[%s8583_s6 + $0x78] sm:$0xff] }
 0x469   :  { %v8227_v12 = vpop.xlane.xlu1 %3562  ;;  %v8229_v6 = vpop.xlane.xlu0 %3674  ;;  %v3953_v4 = vadd.f32 %v3915_v19, %v3877_v2  ;;  %v3765_v43 = vsub.f32 %v8154_v5, %v3727_v38  ;;  %v3842_v14 = vsub.f32 %v8164_v60, %v3804_v49  ;;  %v3879_v46 = vmul.f32 %v3764_v28, %v3764_v28  ;;  %v3731_v19 = vld [vmem:[%s8582_s5 + $0x78] sm:$0xff]  ;;  %v3809_v2 = vld [vmem:[%s8583_s6 + $0x88] sm:$0xff] }
 0x46a   :  { %v3995_v26 = vsel %vm3983_vm0, %v3951_v41, 0.0  ;;  %v3954_v24 = vadd.f32 %v3916_v21, %v3878_v55  ;;  %v3766_v8 = vsub.f32 %v8158_v9, %v3728_v37  ;;  %v3997_v52 = vsel %vm3983_vm0, %v3952_v32, 0.0  ;;  %v3810_v55 = vld [vmem:[%s8583_s6 + $0x90] sm:$0xff] }
 0x46b   :  { %v3918_v29 = vmul.f32 %v3841_v39, %v3841_v39  ;;  %v3843_v5 = vsub.f32 %v8183_v3, %v3805_v30  ;;  %v3996_v7 = vadd.f32 %v3995_v26, %v8140_v51  ;;  %v3999_v9 = vsel %vm3983_vm0, %v3953_v4, 0.0  ;;  %v3808_v51 = vld [vmem:[%s8583_s6 + $0x80] sm:$0xff] }
 0x46c   :  { %v3955_v18 = vadd.f32 %v3917_v33, %v3879_v46  ;;  %v3880_v10 = vmul.f32 %v3765_v43, %v3765_v43  ;;  %v3767_v22 = vsub.f32 %v8162_v0, %v3729_v15  ;;  %v3919_v20 = vmul.f32 %v3842_v14, %v3842_v14  ;;  %v3734_v46 = vld [vmem:[%s8582_s5 + $0x90] sm:$0xff] }
 0x46d   :  { %v8231_v47 = vpop.xlane.xlu1 %3564  ;;  %v8233_v61 = vpop.xlane.xlu0 %3676  ;;  %v3844_v3 = vsub.f32 %v8202_v17, %v3806_v45  ;;  %v3998_v25 = vadd.f32 %v3997_v52, %v3996_v7  ;;  %v4001_v57 = vsel %vm3983_vm0, %v3954_v24, 0.0  ;;  %v3881_v23 = vmul.f32 %v3766_v8, %v3766_v8  ;;  %v3732_v17 = vld [vmem:[%s8582_s5 + $0x80] sm:$0xff] }
 0x46e   :  { %v3956_v31 = vadd.f32 %v3918_v29, %v3880_v10  ;;  %v3768_v0 = vsub.f32 %v8166_v42, %v3730_v54  ;;  %v3920_v13 = vmul.f32 %v3843_v5, %v3843_v5  ;;  %v3845_v41 = vsub.f32 %v8221_v50, %v3807_v44  ;;  %v3733_v50 = vld [vmem:[%s8582_s5 + $0x88] sm:$0xff] }
 0x46f   :  { %v4000_v21 = vadd.f32 %v3999_v9, %v3998_v25  ;;  %v4003_v38 = vsel %vm3983_vm0, %v3955_v18, 0.0  ;;  %v3846_v49 = vsub.f32 %v8225_v27, %v3808_v51  ;;  %v3882_v32 = vmul.f32 %v3767_v22, %v3767_v22 }
 0x470   :  { %v3957_v42 = vadd.f32 %v3919_v20, %v3881_v23  ;;  %v3769_v37 = vsub.f32 %v8185_v11, %v3731_v19  ;;  %v3921_v39 = vmul.f32 %v3844_v3, %v3844_v3  ;;  %v3770_v33 = vsub.f32 %v8219_v59, %v3732_v17  ;;  %v3736_v20 = vld [vmem:[%s8582_s5 + $0xa0] sm:$0xff]  ;;  %v3813_v19 = vld [vmem:[%s8583_s6 + $0xa8] sm:$0xff] }
 0x471   :  { %v8235_v1 = vpop.xlane.xlu1 %3566  ;;  %v8240_v34 = vpop.xlane.xlu0 %3678  ;;  %v4002_v4 = vadd.f32 %v4001_v57, %v4000_v21  ;;  %v3847_v30 = vsub.f32 %v8229_v6, %v3809_v2  ;;  %v4005_v27 = vsel %vm3983_vm0, %v3956_v31, 0.0  ;;  %v3883_v43 = vmul.f32 %v3768_v0, %v3768_v0  ;;  %v3811_v6 = vld [vmem:[%s8583_s6 + $0x98] sm:$0xff]  ;;  %v3737_v21 = vld [vmem:[%s8582_s5 + $0xa8] sm:$0xff] }
 0x472   :  { %v3958_v11 = vadd.f32 %v3920_v13, %v3882_v32  ;;  %v3922_v14 = vmul.f32 %v3845_v41, %v3845_v41  ;;  %v3771_v15 = vsub.f32 %v8223_v36, %v3733_v50  ;;  %v3923_v45 = vmul.f32 %v3846_v49, %v3846_v49  ;;  %v3735_v36 = vld [vmem:[%s8582_s5 + $0x98] sm:$0xff]  ;;  %v3738_v50 = vld [vmem:[%s8582_s5 + $0xb0] sm:$0xff] }
 0x473   :  { %v4004_v8 = vadd.f32 %v4003_v38, %v4002_v4  ;;  %v3848_v59 = vsub.f32 %v8233_v61, %v3810_v55  ;;  %v4007_v52 = vsel %vm3983_vm0, %v3957_v42, 0.0  ;;  %v3884_v29 = vmul.f32 %v3769_v37, %v3769_v37  ;;  %v3812_v61 = vld [vmem:[%s8583_s6 + $0xa0] sm:$0xff]  ;;  %v3814_v38 = vld [vmem:[%s8583_s6 + $0xb0] sm:$0xff]  ;;  %v3815_v55 = vld [vmem:[%s8583_s6 + $0xb8] sm:$0xff] }
 0x474   :  { %v3959_v5 = vadd.f32 %v3921_v39, %v3883_v43  ;;  %v3885_v9 = vmul.f32 %v3770_v33, %v3770_v33  ;;  %v3772_v18 = vsub.f32 %v8227_v12, %v3734_v46  ;;  %v3924_v54 = vmul.f32 %v3847_v30, %v3847_v30  ;;  %v3739_v46 = vld [vmem:[%s8582_s5 + $0xb8] sm:$0xff] }
 0x475   :  { %v8242_v16 = vpop.xlane.xlu1 %3568  ;;  %v8257_v63 = vpop.xlane.xlu0 %3680  ;;  %v4006_v7 = vadd.f32 %v4005_v27, %v4004_v8  ;;  %v4009_v10 = vsel %vm3983_vm0, %v3958_v11, 0.0  ;;  %v3960_v22 = vadd.f32 %v3922_v14, %v3884_v29  ;;  %v3849_v12 = vsub.f32 %v8240_v34, %v3811_v6  ;;  %v3816_v27 = vld [vmem:[%s8583_s6 + $0xc0] sm:$0xff]  ;;  %v3817_v6 = vld [vmem:[%s8583_s6 + $0xc8] sm:$0xff] }
 0x476   :  { %v3886_v25 = vmul.f32 %v3771_v15, %v3771_v15  ;;  %v3961_v57 = vadd.f32 %v3923_v45, %v3885_v9  ;;  %v3925_v23 = vmul.f32 %v3848_v59, %v3848_v59  ;;  %v4011_v31 = vsel %vm3983_vm0, %v3959_v5, 0.0 }
 0x477   :  { %v4008_v51 = vadd.f32 %v4007_v52, %v4006_v7  ;;  %v3773_v0 = vsub.f32 %v8231_v47, %v3735_v36  ;;  %v3850_v13 = vsub.f32 %v8257_v63, %v3812_v61  ;;  %v3887_v41 = vmul.f32 %v3772_v18, %v3772_v18 }
 0x478   :  { %v3962_v2 = vadd.f32 %v3924_v54, %v3886_v25  ;;  %v3774_v34 = vsub.f32 %v8235_v1, %v3736_v20  ;;  %v4013_v32 = vsel %vm3983_vm0, %v3960_v22, 0.0  ;;  %v3926_v47 = vmul.f32 %v3849_v12, %v3849_v12  ;;  %v3818_v22 = vld [vmem:[%s8583_s6 + $0xd0] sm:$0xff] }
 0x479   :  { %v8267_v56 = vpop.xlane.xlu1 %3570  ;;  %v8279_v48 = vpop.xlane.xlu0 %3682  ;;  %v4010_v17 = vadd.f32 %v4009_v10, %v4008_v51  ;;  %v4015_v1 = vsel %vm3983_vm0, %v3961_v57, 0.0  ;;  %v3963_v39 = vadd.f32 %v3925_v23, %v3887_v41  ;;  %v3888_v4 = vmul.f32 %v3773_v0, %v3773_v0 }
 0x47a   :  { %v3851_v63 = vsub.f32 %v8279_v48, %v3813_v19  ;;  %v3775_v33 = vsub.f32 %v8242_v16, %v3737_v21  ;;  %v3927_v30 = vmul.f32 %v3850_v13, %v3850_v13  ;;  %v4017_v11 = vsel %vm3983_vm0, %v3962_v2, 0.0  ;;  %v3820_v21 = vld [vmem:[%s8583_s6 + $0xe0] sm:$0xff] }
 0x47b   :  { %v4012_v37 = vadd.f32 %v4011_v31, %v4010_v17  ;;  %v3889_v14 = vmul.f32 %v3774_v34, %v3774_v34  ;;  %v3964_v15 = vadd.f32 %v3926_v47, %v3888_v4  ;;  %v3776_v45 = vsub.f32 %v8267_v56, %v3738_v50  ;;  %v3744_v4 = vld [vmem:[%s8582_s5 + $0xe0] sm:$0xff] }
 0x47c   :  { %v3928_v16 = vmul.f32 %v3851_v63, %v3851_v63  ;;  %v4019_v5 = vsel %vm3983_vm0, %v3963_v39, 0.0  ;;  %v3890_v9 = vmul.f32 %v3775_v33, %v3775_v33 }
 0x47d   :  { %v8284_v58 = vpop.xlane.xlu1 %3572  ;;  %v8298_v62 = vpop.xlane.xlu0 %3684  ;;  %v4014_v43 = vadd.f32 %v4013_v32, %v4012_v37  ;;  %v3965_v56 = vadd.f32 %v3927_v30, %v3889_v14  ;;  %v3891_v12 = vmul.f32 %v3776_v45, %v3776_v45  ;;  %v3822_v14 = vld [vmem:[%s8583_s6 + $0xf0] sm:$0xff] }
 0x47e   :  { %v3852_v48 = vsub.f32 %v8298_v62, %v3814_v38  ;;  %v3740_v62 = vld [vmem:[%s8582_s5 + $0xc0] sm:$0xff]  ;;  %v3777_v18 = vsub.f32 %v8284_v58, %v3739_v46  ;;  %v3966_v51 = vadd.f32 %v3928_v16, %v3890_v9 }
 0x47f   :  { %v4016_v29 = vadd.f32 %v4015_v1, %v4014_v43  ;;  %v4023_v31 = vsel %vm3983_vm0, %v3965_v56, 0.0 }
 0x480   :  { %v3929_v54 = vmul.f32 %v3852_v48, %v3852_v48  ;;  %v3892_v0 = vmul.f32 %v3777_v18, %v3777_v18  ;;  %v4025_v32 = vsel %vm3983_vm0, %v3966_v51, 0.0 }
 0x481   :  { %v8304_v53 = vpop.xlane.xlu1 %3574  ;;  %v8319_v40 = vpop.xlane.xlu0 %3686  ;;  %v4018_v36 = vadd.f32 %v4017_v11, %v4016_v29  ;;  %v3746_v29 = vld [vmem:[%s8582_s5 + $0xf0] sm:$0xff] }
 0x482   :  { %v3853_v59 = vsub.f32 %v8319_v40, %v3815_v55  ;;  %v3741_v40 = vld [vmem:[%s8582_s5 + $0xc8] sm:$0xff]  ;;  %v3778_v61 = vsub.f32 %v8304_v53, %v3740_v62  ;;  %v3742_v53 = vld [vmem:[%s8582_s5 + $0xd0] sm:$0xff]  ;;  %v3967_v13 = vadd.f32 %v3929_v54, %v3891_v12 }
 0x483   :  { %v4020_v57 = vadd.f32 %v4019_v5, %v4018_v36  ;;  %v3823_v5 = vld [vmem:[%s8583_s6 + $0xf8] sm:$0xff] }
 0x484   :  { %v3930_v58 = vmul.f32 %v3853_v59, %v3853_v59  ;;  %v3893_v2 = vmul.f32 %v3778_v61, %v3778_v61  ;;  %v4027_v33 = vsel %vm3983_vm0, %v3967_v13, 0.0  ;;  %v3747_v36 = vld [vmem:[%s8582_s5 + $0xf8] sm:$0xff] }
 0x485   :  { %v8323_v60 = vpop.xlane.xlu1 %3576  ;;  %v8342_v35 = vpop.xlane.xlu0 %3688 }
 0x486   :  { %v3854_v7 = vsub.f32 %v8342_v35, %v3816_v27  ;;  %v4021_v35 = vsel %vm3983_vm0, %v3964_v15, 0.0  ;;  %v3779_v23 = vsub.f32 %v8323_v60, %v3741_v40  ;;  %v3743_v60 = vld [vmem:[%s8582_s5 + $0xd8] sm:$0xff]  ;;  %v3968_v47 = vadd.f32 %v3930_v58, %v3892_v0 }
 0x487   :  { %v4022_v41 = vadd.f32 %v4021_v35, %v4020_v57  ;;  %v3748_v35 = vld [vmem:[%s8582_s5 + $0x100] sm:$0xff] }
 0x488   :  { %v3931_v19 = vmul.f32 %v3854_v7, %v3854_v7  ;;  %v3894_v50 = vmul.f32 %v3779_v23, %v3779_v23  ;;  %v4029_v15 = vsel %vm3983_vm0, %v3968_v47, 0.0 }
 0x489   :  { %v8352_v28 = vpop.xlane.xlu1 %3578  ;;  %v8365_v26 = vpop.xlane.xlu0 %3690  ;;  %v4024_v39 = vadd.f32 %v4023_v31, %v4022_v41  ;;  %v3749_v41 = vld [vmem:[%s8582_s5 + $0x108] sm:$0xff] }
 0x48a   :  { %v3855_v10 = vsub.f32 %v8365_v26, %v3817_v6  ;;  %v3819_v26 = vld [vmem:[%s8583_s6 + $0xd8] sm:$0xff]  ;;  %v3780_v63 = vsub.f32 %v8352_v28, %v3742_v53  ;;  %v3969_v55 = vadd.f32 %v3931_v19, %v3893_v2  ;;  %v3745_v28 = vld [vmem:[%s8582_s5 + $0xe8] sm:$0xff] }
 0x48b   :  { %v4026_v27 = vadd.f32 %v4025_v32, %v4024_v39  ;;  %v3825_v19 = vld [vmem:[%s8583_s6 + $0x108] sm:$0xff] }
 0x48c   :  { %v3932_v34 = vmul.f32 %v3855_v10, %v3855_v10  ;;  %v3895_v45 = vmul.f32 %v3780_v63, %v3780_v63  ;;  %v4031_v6 = vsel %vm3983_vm0, %v3969_v55, 0.0 }
 0x48d   :  { %v8371_v24 = vpop.xlane.xlu1 %3580  ;;  %v8386_v44 = vpop.xlane.xlu0 %3692  ;;  %v4028_v59 = vadd.f32 %v4027_v33, %v4026_v27 }
 0x48e   :  { %v3856_v17 = vsub.f32 %v8386_v44, %v3818_v22  ;;  %v3821_v44 = vld [vmem:[%s8583_s6 + $0xe8] sm:$0xff]  ;;  %v3781_v30 = vsub.f32 %v8371_v24, %v3743_v60  ;;  %v3970_v43 = vadd.f32 %v3932_v34, %v3894_v50 }
 0x48f   :  { %v4030_v54 = vadd.f32 %v4029_v15, %v4028_v59  ;;  %v3827_v15 = vld [vmem:[%s8583_s6 + $0x118] sm:$0xff] }
 0x490   :  { %v3933_v48 = vmul.f32 %v3856_v17, %v3856_v17  ;;  %v3896_v7 = vmul.f32 %v3781_v30, %v3781_v30  ;;  %v4033_v40 = vsel %vm3983_vm0, %v3970_v43, 0.0  ;;  %v3751_v30 = vld [vmem:[%s8582_s5 + $0x118] sm:$0xff] }
 0x491   :  { %v8393_v3 = vpop.xlane.xlu1 %3582  ;;  %v8408_v49 = vpop.xlane.xlu0 %3694  ;;  %v4032_v58 = vadd.f32 %v4031_v6, %v4030_v54  ;;  %v3752_v6 = vld [vmem:[%s8582_s5 + $0x120] sm:$0xff] }
 0x492   :  { %v3857_v37 = vsub.f32 %v8408_v49, %v3819_v26  ;;  %v3782_v16 = vsub.f32 %v8393_v3, %v3744_v4  ;;  %v3971_v9 = vadd.f32 %v3933_v48, %v3895_v45  ;;  %v3824_v3 = vld [vmem:[%s8583_s6 + $0x100] sm:$0xff] }
 0x494   :  { %v3934_v24 = vmul.f32 %v3857_v37, %v3857_v37  ;;  %v3897_v10 = vmul.f32 %v3782_v16, %v3782_v16  ;;  %v4035_v53 = vsel %vm3983_vm0, %v3971_v9, 0.0  ;;  %v3826_v37 = vld [vmem:[%s8583_s6 + $0x110] sm:$0xff] }
 0x495   :  { %v8412_v42 = vpop.xlane.xlu1 %3584  ;;  %v3697_v8 = vpop.xlane.xlu0 %3696 }
 0x496   :  { %v3858_v49 = vsub.f32 %v3697_v8, %v3820_v21  ;;  %v3783_v8 = vsub.f32 %v8412_v42, %v3745_v28  ;;  %v3972_v22 = vadd.f32 %v3934_v24, %v3896_v7 }
 0x498   :  { %v3935_v56 = vmul.f32 %v3858_v49, %v3858_v49  ;;  %v3898_v57 = vmul.f32 %v3783_v8, %v3783_v8  ;;  %v4037_v34 = vsel %vm3983_vm0, %v3972_v22, 0.0 }
 0x499   :  { %v8438_v52 = vpop.xlane.xlu1 %3586  ;;  %v3699_v20 = vpop.xlane.xlu0 %3698 }
 0x49a   :  { %v3859_v11 = vsub.f32 %v3699_v20, %v3821_v44  ;;  %v3784_v20 = vsub.f32 %v8438_v52, %v3746_v29  ;;  %v3973_v26 = vadd.f32 %v3935_v56, %v3897_v10  ;;  %v4034_v52 = vadd.f32 %v4033_v40, %v4032_v58  ;;  %v3753_v10 = vld [vmem:[%s8582_s5 + $0x128] sm:$0xff] }
 0x49c   :  { %v3936_v42 = vmul.f32 %v3859_v11, %v3859_v11  ;;  %v3899_v60 = vmul.f32 %v3784_v20, %v3784_v20  ;;  %v4036_v47 = vadd.f32 %v4035_v53, %v4034_v52  ;;  %v4039_v44 = vsel %vm3983_vm0, %v3973_v26, 0.0 }
 0x49d   :  { %v8452_v25 = vpop.xlane.xlu1 %3588  ;;  %v3701_v38 = vpop.xlane.xlu0 %3700 }
 0x49e   :  { %v3860_v18 = vsub.f32 %v3701_v38, %v3822_v14  ;;  %v3785_v31 = vsub.f32 %v8452_v25, %v3747_v36  ;;  %v3974_v13 = vadd.f32 %v3936_v42, %v3898_v57  ;;  %v3750_v25 = vld [vmem:[%s8582_s5 + $0x110] sm:$0xff]  ;;  %v4038_v55 = vadd.f32 %v4037_v34, %v4036_v47  ;;  %v3829_v57 = vld [vmem:[%s8583_s6 + $0x128] sm:$0xff]  ;;  %s6184_s5 = smov [#allocation9]  }
 0x4a0   :  { %v3937_v0 = vmul.f32 %v3860_v18, %v3860_v18  ;;  %v4041_v4 = vsel %vm3983_vm0, %v3974_v13, 0.0  ;;  %v4040_v11 = vadd.f32 %v4039_v44, %v4038_v55 }
 0x4a1   :  { %v3591_v1 = vpop.xlane.xlu1 %3590  ;;  %v3703_v46 = vpop.xlane.xlu0 %3702 }
 0x4a2   :  { %v3861_v12 = vsub.f32 %v3703_v46, %v3823_v5  ;;  %v3786_v17 = vsub.f32 %v3591_v1, %v3748_v35  ;;  %v3900_v1 = vmul.f32 %v3785_v31, %v3785_v31  ;;  %v3975_v39 = vadd.f32 %v3937_v0, %v3899_v60 }
 0x4a3   :  { %v4042_v59 = vadd.f32 %v4041_v4, %v4040_v11 }
 0x4a4   :  { %v3938_v21 = vmul.f32 %v3861_v12, %v3861_v12  ;;  %v3901_v33 = vmul.f32 %v3786_v17, %v3786_v17  ;;  %v4043_v45 = vsel %vm3983_vm0, %v3975_v39, 0.0 }
 0x4a5   :  { %v3593_v62 = vpop.xlane.xlu1 %3592  ;;  %v3705_v61 = vpop.xlane.xlu0 %3704  ;;  %v4044_v56 = vadd.f32 %v4043_v45, %v4042_v59 }
 0x4a6   :  { %v3862_v23 = vsub.f32 %v3705_v61, %v3824_v3  ;;  %v3787_v50 = vsub.f32 %v3593_v62, %v3749_v41  ;;  %v3976_v28 = vadd.f32 %v3938_v21, %v3900_v1  ;;  %v3828_v3 = vld [vmem:[%s8583_s6 + $0x120] sm:$0xff]  ;;  %s4123_s6 = sshll.u32 %s6184_s5, 4  ;;  %s4124_s6 = int_to_ptr.vmem [resolvable:$true] %s4123_s6 }
 0x4a7   :  { %s6126_s18 = scalar_lea.vmem %s4124_s6, 16  ;;  %s6130_s4 = scalar_lea.vmem %s4124_s6, 32 }
 0x4a8   :  { %v3939_v63 = vmul.f32 %v3862_v23, %v3862_v23  ;;  %v3902_v16 = vmul.f32 %v3787_v50, %v3787_v50  ;;  %v4045_v29 = vsel %vm3983_vm0, %v3976_v28, 0.0  ;;  %v3868_v50 = vld [vmem:[#allocation3] sm:$0x1]  ;;  %p6127_p10 = scmp.ne.s32.totalorder %s4124_s6, %s6126_s18  ;;  %p6131_p11 = scmp.lt.s32.totalorder %s4124_s6, %s4124_s6 }
 0x4a9   :  { %v3595_v51 = vpop.xlane.xlu1 %3594  ;;  %v3707_v2 = vpop.xlane.xlu0 %3706  ;;  %v4046_v61 = vadd.f32 %v4045_v29, %v4044_v56  ;;  %p6132_p12 = scmp.lt.s32.totalorder %s6130_s4, %s6126_s18 }
 0x4aa   :  { %v3863_v38 = vsub.f32 %v3707_v2, %v3825_v19  ;;  %v3788_v49 = vsub.f32 %v3595_v51, %v3750_v25  ;;  %v3977_v14 = vadd.f32 %v3939_v63, %v3901_v33 }
 0x4ab   :  { %p6133_p13 = por %p6132_p12, %p6131_p11 }
 0x4ac   :  { %v3940_v27 = vmul.f32 %v3863_v38, %v3863_v38  ;;  %v3903_v5 = vmul.f32 %v3788_v49, %v3788_v49  ;;  %v4047_v18 = vsel %vm3983_vm0, %v3977_v14, 0.0 }
 0x4ad   :  { %v3597_v32 = vpop.xlane.xlu1 %3596  ;;  %v3709_v48 = vpop.xlane.xlu0 %3708  ;;  %v4048_v58 = vadd.f32 %v4047_v18, %v4046_v61  ;;  %p6134_p0 = pnand %p6133_p13, %p6127_p10 }
 0x4ae   :  { %v3864_v43 = vsub.f32 %v3709_v48, %v3826_v37  ;;  %v3789_v24 = vsub.f32 %v3597_v32, %v3751_v30  ;;  %v3978_v7 = vadd.f32 %v3940_v27, %v3902_v16 }
 0x4b0   :  { %v3941_v62 = vmul.f32 %v3864_v43, %v3864_v43  ;;  %v3904_v54 = vmul.f32 %v3789_v24, %v3789_v24  ;;  %v4049_v35 = vsel %vm3983_vm0, %v3978_v7, 0.0 }
 0x4b1   :  { %v3599_v46 = vpop.xlane.xlu1 %3598  ;;  %v3711_v8 = vpop.xlane.xlu0 %3710  ;;  %v4050_v31 = vadd.f32 %v4049_v35, %v4048_v58 }
 0x4b2   :  { %v3865_v9 = vsub.f32 %v3711_v8, %v3827_v15  ;;  %v3979_v40 = vadd.f32 %v3941_v62, %v3903_v5  ;;  %v3790_v42 = vsub.f32 %v3599_v46, %v3752_v6 }
 0x4b4   :  { %v3942_v36 = vmul.f32 %v3865_v9, %v3865_v9  ;;  %v4051_v23 = vsel %vm3983_vm0, %v3979_v40, 0.0  ;;  %v3905_v19 = vmul.f32 %v3790_v42, %v3790_v42 }
 0x4b5   :  { %v3601_v22 = vpop.xlane.xlu1 %3600  ;;  %v3713_v20 = vpop.xlane.xlu0 %3712  ;;  %v4052_v41 = vadd.f32 %v4051_v23, %v4050_v31 }
 0x4b6   :  { %v3980_v12 = vadd.f32 %v3942_v36, %v3904_v54  ;;  %v3866_v51 = vsub.f32 %v3713_v20, %v3828_v3  ;;  %v3791_v53 = vsub.f32 %v3601_v22, %v3753_v10 }
 0x4b8   :  { %v3943_v26 = vmul.f32 %v3866_v51, %v3866_v51  ;;  %v4053_v52 = vsel %vm3983_vm0, %v3980_v12, 0.0  ;;  %v3906_v2 = vmul.f32 %v3791_v53, %v3791_v53 }
 0x4b9   :  { %v3715_v0 = vpop.xlane.xlu0 %3714  ;;  %v4054_v21 = vadd.f32 %v4053_v52, %v4052_v41  ;;  %v4075_v33 = vpop.xlane.xlu1 %4074 }
 0x4ba   :  { %v3981_v13 = vadd.f32 %v3943_v26, %v3905_v19  ;;  %v3867_v17 = vsub.f32 %v3715_v0, %v3829_v57  ;;  %v4076_v30 = vmul.f32 0.0033333334, %v4075_v33 }
 0x4bc   :  { %v4055_v34 = vsel %vm3983_vm0, %v3981_v13, 0.0  ;;  %v3944_v60 = vmul.f32 %v3867_v17, %v3867_v17  ;;  %4077 = vst.msk [vmem:[#allocation9] sm:$0x1] %vm40_vm3, %v4076_v30 }
 0x4bd   :  { %v4056_v32 = vadd.f32 %v4055_v34, %v4054_v21 }
 0x4be   :  { %v3982_v38 = vadd.f32 %v3944_v60, %v3906_v2 }
 0x4c0   :  { %v4057_v47 = vsel %vm3983_vm0, %v3982_v38, 0.0 }
 0x4c1   :  { %v4058_v63 = vadd.f32 %v4057_v47, %v4056_v32 }
 0x4c3   :  { %v4059_v25 = vrot.slane %v4058_v63, 4 }
 0x4c5   :  { %v4060_v37 = vadd.f32 %v4059_v25, %v4058_v63 }
 0x4c7   :  { %v4061_v44 = vrot.slane %v4060_v37, 2 }
 0x4c9   :  { %v4062_v1 = vadd.f32 %v4061_v44, %v4060_v37 }
 0x4cb   :  { %v4063_v39 = vrot.slane %v4062_v1, 1 }
 0x4cd   :  { %v4064_v55 = vadd.f32 %v4063_v39, %v4062_v1 }
 0x4cf   :  { %v4065_v4 = vadd.f32 %v4064_v55, %v3868_v50 }
 0x4d1   :  { %4067 = vst.msk [vmem:[#allocation3] sm:$0x1] %vm40_vm3, %v4065_v4 }
 0x4d2   :  { %6137 = shalt.err (!%p6134_p0)
}
 0x4d3   :  { %s6138_s22 = scalar_lea.hbm %s8587_s10, 16 }
 0x4d4   :  { %p6139_p1 = scmp.ne.s32.totalorder %s8587_s10, %s6138_s22  ;;  %p6142_p2 = scmp.lt.u32.totalorder %s6138_s22, %s8587_s10 }
 0x4d6   :  { %p6144_p3 = pnand %p6142_p2, %p6139_p1 }
 0x4d8   :  { %6147 = shalt.err (!%p6144_p3)
}
 0x4d9   :  { %4126 = dma.vmem_to_hbm [thread:$0]  %s4124_s6, 16, %s8587_s10, [#allocation10]   ;;  %v4078_v48 = vld [vmem:[#allocation3] sm:$0x1] }
 0x4da   :  { %v4079_v28 = vmul.f32 0.0033333334, %v4078_v48  ;;  %s6148_s2 = scalar_lea.vmem %s4134_s17, 16  ;;  %s6152_s26 = scalar_lea.vmem %s4134_s17, 32 }
 0x4db   :  { %p6149_p4 = scmp.ne.s32.totalorder %s4134_s17, %s6148_s2  ;;  %p6153_p5 = scmp.lt.s32.totalorder %s4134_s17, %s4134_s17 }
 0x4dc   :  { %4080 = vst.msk [vmem:[#allocation11] sm:$0x1] %vm40_vm3, %v4079_v28  ;;  %p6154_p6 = scmp.lt.s32.totalorder %s6152_s26, %s6148_s2 }
 0x4de   :  { %p6155_p7 = por %p6154_p6, %p6153_p5 }
 0x4e0   :  { %p6156_p8 = pnand %p6155_p7, %p6149_p4 }
 0x4e2   :  { %6159 = shalt.err (!%p6156_p8)
}
 0x4e3   :  { %s6160_s8 = scalar_lea.hbm %s8588_s11, 16 }
 0x4e4   :  { %p6161_p9 = scmp.ne.s32.totalorder %s8588_s11, %s6160_s8  ;;  %p6164_p10 = scmp.lt.u32.totalorder %s6160_s8, %s8588_s11 }
 0x4e6   :  { %p6166_p11 = pnand %p6164_p10, %p6161_p9 }
 0x4e8   :  { %6169 = shalt.err (!%p6166_p11)
}
 0x4e9   :  { %4136 = dma.vmem_to_hbm [thread:$0]  %s4134_s17, 16, %s8588_s11, [#allocation10]  }
 0x4ea   :  { %6170 = dma.done.wait [#allocation5], 4864  }
 0x4eb   :  { %6171 = vsyncadd [#allocation5], 4294962432 }
 0x4ec   :  { %6172 = dma.done.wait [#allocation7], 9728  }
 0x4ed   :  { %6173 = vsyncadd [#allocation7], 4294957568 }
 0x4ee   :  { %6174 = dma.done.wait [#allocation10], 32  }
 0x4ef   :  { %6175 = vsyncadd [#allocation10], 4294967264 }
 0x4f0   :  { %4152 = vsyncpa [#allocation5], 1 }
 0x4f1   :  { %4153 = vsyncpa [#allocation7], 1 }
 0x4f2   :  { %4154 = vsyncpa [#allocation10], 1 }

</bundles_post_ra>
